<compile_context>
chip_gen: v7x
topology: tpu7x:2x2x1
jax: 0.10.0
libtpu: 0.0.40
codegen_flags: <defaults>
</compile_context>

<pallas_src>
import functools
import numpy as np
import jax
import jax.numpy as jnp
from jax.experimental import pallas as pl
from jax.experimental.pallas import tpu as pltpu

PAD = 0
LN_EPS = 1e-3
_VMEM_LIMIT = 48 * 1024 * 1024     # explicit scoped-VMEM budget (< v7x 64 MiB physical)


# ------------------------------------------------------------------ Buffered(1) support

_HAS_SINGLE_BUFFER = None


def _single_buffer_supported():
    """Probe once whether BlockSpec(pipeline_mode=pl.Buffered(1)) lowers cleanly."""
    global _HAS_SINGLE_BUFFER
    if _HAS_SINGLE_BUFFER is None:
        try:
            def _probe(x_ref, o_ref):
                o_ref[...] = x_ref[...] + 1.0

            fn = pl.pallas_call(
                _probe,
                grid=(2,),
                in_specs=[pl.BlockSpec((8, 128), lambda i: (0, 0),
                                       pipeline_mode=pl.Buffered(1))],
                out_specs=pl.BlockSpec((8, 128), lambda i: (0, 0)),
                out_shape=jax.ShapeDtypeStruct((8, 128), jnp.float32))
            jax.block_until_ready(fn(jnp.zeros((8, 128), jnp.float32)))
            _HAS_SINGLE_BUFFER = True
        except Exception:
            _HAS_SINGLE_BUFFER = False
    return _HAS_SINGLE_BUFFER


def _const_spec(shape):
    """BlockSpec for a grid-invariant operand (weights / biases / LN params).

    Block index never changes across the grid, so double-buffering only wastes VMEM;
    request a single buffer when supported, else fall back to the default.
    """
    idx = lambda *_: (0,) * len(shape)
    if _single_buffer_supported():
        return pl.BlockSpec(shape, idx, pipeline_mode=pl.Buffered(1))
    return pl.BlockSpec(shape, idx)


# ----------------------------------------------------------------------------- kernels

def _mha_kernel(xq_ref, xkv_ref, kid_ref, wqkv_ref, wo_ref, bo_ref, g_ref, b_ref,
                o_ref, *, n_head, d_k, d_v, temper, causal, bq):
    """Fused multi-head attention sublayer for one (batch, query-tile) grid point.

    packed QKV matmul -> batched-head scaled-dot attention (mask rebuilt in-kernel from
    int32 key token ids) -> output projection -> residual add -> LayerNorm.
    Matmul operands bf16, accumulation / softmax / LayerNorm in f32.
    """
    xq = xq_ref[0]                     # (bq, D) f32  (kept f32 for residual + LN)
    xkv = xkv_ref[0]                   # (Lk, D) f32
    Lq, D = xq.shape
    Lk = xkv.shape[0]
    Hdk = n_head * d_k
    Hdv = n_head * d_v

    # packed projection weights [Wq | Wk | Wv] (bf16): one DMA, lane-dense output
    w = wqkv_ref[...]                                                    # (D, 2*Hdk+Hdv)
    q = jnp.dot(xq.astype(jnp.bfloat16), w[:, :Hdk],
                preferred_element_type=jnp.float32)                      # (Lq, Hdk)
    kv = jnp.dot(xkv.astype(jnp.bfloat16), w[:, Hdk:],
                 preferred_element_type=jnp.float32)                     # (Lk, Hdk+Hdv)
    k = kv[:, :Hdk]
    v = kv[:, Hdk:]

    # batched per-head layout (H, L, d) -> two einsums instead of an unrolled head loop
    qh = jnp.swapaxes(q.reshape(Lq, n_head, d_k), 0, 1)                  # (H, Lq, dk)
    kh = jnp.swapaxes(k.reshape(Lk, n_head, d_k), 0, 1)                  # (H, Lk, dk)
    vh = jnp.swapaxes(v.reshape(Lk, n_head, d_v), 0, 1)                  # (H, Lk, dv)

    s = jnp.einsum('hqd,hkd->hqk',
                   qh.astype(jnp.bfloat16), kh.astype(jnp.bfloat16),
                   preferred_element_type=jnp.float32) * (1.0 / temper)  # (H, Lq, Lk)

    # attention mask rebuilt in-kernel from the int32 key token ids (no HBM mask array)
    kid = kid_ref[0]                                      # (1, Lk) int32
    mask = jnp.broadcast_to(kid == PAD, (Lq, Lk))         # padding mask
    if causal:
        q_off = pl.program_id(1) * bq                     # global query offset of tile
        row = q_off + jax.lax.broadcasted_iota(jnp.int32, (Lq, Lk), 0)
        col = jax.lax.broadcasted_iota(jnp.int32, (Lq, Lk), 1)
        mask = mask | (col > row)                         # subsequent mask
    # NOTE: fully-masked rows get uniform 1/Lk weights (finite) instead of NaN.
    s = jnp.where(mask[None, :, :], jnp.float32(-1e30), s)

    m = jnp.max(s, axis=-1, keepdims=True)
    e = jnp.exp(s - m)
    p = e * pl.reciprocal(jnp.sum(e, axis=-1, keepdims=True), approx=True)

    oh = jnp.einsum('hqk,hkd->hqd',
                    p.astype(jnp.bfloat16), vh.astype(jnp.bfloat16),
                    preferred_element_type=jnp.float32)                  # (H, Lq, dv)
    o = jnp.swapaxes(oh, 0, 1).reshape(Lq, Hdv)                          # (Lq, H*dv)
    out = jnp.dot(o.astype(jnp.bfloat16), wo_ref[...],                   # single Wo dot
                  preferred_element_type=jnp.float32) + bo_ref[...]

    # residual add + LayerNormalization (unbiased std, sigma + eps), all f32
    z = out + xq
    mu = jnp.mean(z, axis=-1, keepdims=True)
    var = jnp.sum((z - mu) ** 2, axis=-1, keepdims=True) * (1.0 / (D - 1))
    inv = pl.reciprocal(jnp.sqrt(var) + LN_EPS, approx=True)
    o_ref[0] = ((z - mu) * inv) * g_ref[...] + b_ref[...]


def _ffn_kernel(x_ref, w1_ref, b1_ref, w2_ref, b2_ref, g_ref, b_ref, o_ref):
    """Fused position-wise FFN sublayer: matmul -> ReLU -> matmul -> add -> LayerNorm."""
    x = x_ref[...]                                                        # (bm, D) f32
    h = jnp.dot(x.astype(jnp.bfloat16), w1_ref[...],
                preferred_element_type=jnp.float32) + b1_ref[...]
    h = jnp.maximum(h, 0.0)
    y = jnp.dot(h.astype(jnp.bfloat16), w2_ref[...],
                preferred_element_type=jnp.float32) + b2_ref[...]
    z = y + x
    D = z.shape[-1]
    mu = jnp.mean(z, axis=-1, keepdims=True)
    var = jnp.sum((z - mu) ** 2, axis=-1, keepdims=True) * (1.0 / (D - 1))
    inv = pl.reciprocal(jnp.sqrt(var) + LN_EPS, approx=True)
    o_ref[...] = ((z - mu) * inv) * g_ref[...] + b_ref[...]


def _proj_kernel(x_ref, w_ref, o_ref):
    """Shared-embedding vocab projection: x @ W^T (bf16 operands, f32 accumulation)."""
    o_ref[...] = jax.lax.dot_general(
        x_ref[...].astype(jnp.bfloat16), w_ref[...],
        dimension_numbers=(((1,), (1,)), ((), ())),
        preferred_element_type=jnp.float32)


# ----------------------------------------------------------------------------- wrappers

def _row_block(m, cap=512):
    # Whole array when small (block == full dims is always legal), else `cap`-row tiles.
    return m if m <= cap else cap


def _q_block(lq, cap=256):
    # Query-tile size for attention: full Lq when small, else 128-row tiles.
    return lq if lq <= cap else 128


def fused_mha(x_q, x_kv, seq_k, p, cfg, *, causal):
    n_head, d_k, d_v, d_model = cfg["n_head"], cfg["d_k"], cfg["d_v"], cfg["d_model"]
    B, Lq, D = x_q.shape
    Lk = x_kv.shape[1]
    Hdk, Hdv = n_head * d_k, n_head * d_v
    temper = float(np.power(d_model, 0.5))
    bq = _q_block(Lq)
    nq = pl.cdiv(Lq, bq)

    kern = functools.partial(_mha_kernel, n_head=n_head, d_k=d_k, d_v=d_v,
                             temper=temper, causal=causal, bq=bq)
    seq_k3 = seq_k.astype(jnp.int32).reshape(B, 1, Lk)

    return pl.pallas_call(
        kern,
        grid=(B, nq),
        in_specs=[
            pl.BlockSpec((1, bq, D), lambda b, qi: (b, qi, 0)),    # x_q (query tile)
            pl.BlockSpec((1, Lk, D), lambda b, qi: (b, 0, 0)),     # x_kv (full keys)
            pl.BlockSpec((1, 1, Lk), lambda b, qi: (b, 0, 0)),     # key token ids
            _const_spec((D, 2 * Hdk + Hdv)),                       # packed Wq|Wk|Wv bf16
            _const_spec((Hdv, D)),                                 # Wo bf16
            _const_spec((1, D)),                                   # bo
            _const_spec((1, D)),                                   # ln gain
            _const_spec((1, D)),                                   # ln bias
        ],
        out_specs=pl.BlockSpec((1, bq, D), lambda b, qi: (b, qi, 0)),
        out_shape=jax.ShapeDtypeStruct((B, Lq, D), jnp.float32),
        compiler_params=pltpu.CompilerParams(
            dimension_semantics=("parallel", "parallel"),
            vmem_limit_bytes=_VMEM_LIMIT),
    )(x_q, x_kv, seq_k3, p["w_qkv"], p["wo"], p["bo"], p["ln_g"], p["ln_b"])


def fused_ffn(x, p):
    B, L, D = x.shape
    M = B * L
    Dh = p["w1"].shape[1]
    xf = x.reshape(M, D)
    bm = _row_block(M)
    out = pl.pallas_call(
        _ffn_kernel,
        grid=(pl.cdiv(M, bm),),
        in_specs=[pl.BlockSpec((bm, D), lambda i: (i, 0)),
                  _const_spec((D, Dh)),        # w1 bf16, single-buffered
                  _const_spec((1, Dh)),
                  _const_spec((Dh, D)),        # w2 bf16, single-buffered
                  _const_spec((1, D)),
                  _const_spec((1, D)),
                  _const_spec((1, D))],
        out_specs=pl.BlockSpec((bm, D), lambda i: (i, 0)),
        out_shape=jax.ShapeDtypeStruct((M, D), jnp.float32),
        compiler_params=pltpu.CompilerParams(
            dimension_semantics=("parallel",),
            vmem_limit_bytes=_VMEM_LIMIT),
    )(xf, p["w1"], p["b1"], p["w2"], p["b2"], p["ln_g"], p["ln_b"])
    return out.reshape(B, L, D)


def vocab_projection(x, emb_proj, n_vocab):
    """logits = x @ emb^T against a lane-padded bf16 copy of the shared embedding.

    Grid ordered (vocab outer, rows inner) so the large emb tile stays resident across
    row tiles and only x streams; output blocks are 128-lane multiples (no masked vst).
    """
    M, D = x.shape
    Vp = emb_proj.shape[0]                       # already padded to a multiple of 128
    bm = _row_block(M)
    bn = Vp if Vp <= 1024 else 512
    logits = pl.pallas_call(
        _proj_kernel,
        grid=(pl.cdiv(Vp, bn), pl.cdiv(M, bm)),  # rows inner -> emb read once
        in_specs=[pl.BlockSpec((bm, D), lambda j, i: (i, 0)),
                  pl.BlockSpec((bn, D), lambda j, i: (j, 0))],
        out_specs=pl.BlockSpec((bm, bn), lambda j, i: (i, j)),
        out_shape=jax.ShapeDtypeStruct((M, Vp), jnp.float32),
        compiler_params=pltpu.CompilerParams(
            dimension_semantics=("parallel", "parallel"),
            vmem_limit_bytes=_VMEM_LIMIT),
    )(x, emb_proj)
    return logits[:, :n_vocab] if Vp != n_vocab else logits


# ----------------------------------------------------------------------------- model glue

def position_encoding_init(n_position, d_pos_vec):
    pe = np.array([[pos / np.power(10000, 2 * (j // 2) / d_pos_vec)
                    for j in range(d_pos_vec)] if pos != 0 else np.zeros(d_pos_vec)
                   for pos in range(n_position)])
    pe[1:, 0::2] = np.sin(pe[1:, 0::2])
    pe[1:, 1::2] = np.cos(pe[1:, 1::2])
    return jnp.asarray(pe, dtype=jnp.float32)


def get_position(seq):
    L = seq.shape[1]
    pos = jnp.arange(1, L + 1, dtype=jnp.int32)[None, :]
    return jnp.where(seq != PAD, pos, 0)


def encoder_forward(params, src_seq, src_pos, cfg):
    # embedding / positional gathers stay in plain XLA (tiny, no Pallas win)
    x = jnp.take(params["emb"], src_seq, axis=0) + jnp.take(params["pos_enc"], src_pos, axis=0)
    for lp in params["enc_layers"]:
        x = fused_mha(x, x, src_seq, lp["slf"], cfg, causal=False)
        x = fused_ffn(x, lp["ffn"])
    return x


def decoder_forward(params, tgt_seq, tgt_pos, src_seq, enc_output, cfg):
    x = jnp.take(params["emb"], tgt_seq, axis=0) + jnp.take(params["pos_enc"], tgt_pos, axis=0)
    for lp in params["dec_layers"]:
        x = fused_mha(x, x, tgt_seq, lp["slf"], cfg, causal=True)            # masked self-attn
        x = fused_mha(x, enc_output, src_seq, lp["enc"], cfg, causal=False)  # enc-dec attn
        x = fused_ffn(x, lp["ffn"])
    return x


def transformer_forward(params, src_seq, tgt_seq, cfg):
    src_pos = get_position(src_seq)
    tgt_pos = get_position(tgt_seq)
    tgt_seq = tgt_seq[:, :-1]
    tgt_pos = tgt_pos[:, :-1]

    enc_output = encoder_forward(params, src_seq, src_pos, cfg)
    dec_output = decoder_forward(params, tgt_seq, tgt_pos, src_seq, enc_output, cfg)

    B, Lt, D = dec_output.shape
    n_vocab = params["emb"].shape[0]
    # tgt_word_proj shares weight with the embedding table (proj_share_weight=True);
    # contracted in-kernel as x @ emb^T against a lane-padded bf16 copy of the table.
    logits = vocab_projection(dec_output.reshape(B * Lt, D), params["emb_proj"], n_vocab)
    return logits.reshape(B, Lt, n_vocab)


# ----------------------------------------------------------------------------- params

def init_params(key, cfg):
    d_model, d_inner = cfg["d_model"], cfg["d_inner"]
    n_head, d_k, d_v = cfg["n_head"], cfg["d_k"], cfg["d_v"]
    n_vocab, n_max_seq = cfg["n_vocab"], cfg["n_max_seq"]

    keys = iter(jax.random.split(key, 256))

    def nrm(shape, scale=0.1):
        return scale * jax.random.normal(next(keys), shape, jnp.float32)

    def bf16(x):
        return x.astype(jnp.bfloat16)

    def mha_params():
        return {  # packed [Wq | Wk | Wv] -> (d_model, n_head*(2*d_k + d_v)), bf16 weights
            "w_qkv": bf16(nrm((d_model, n_head * (2 * d_k + d_v)))),
            "wo": bf16(nrm((n_head * d_v, d_model))),
            "bo": jnp.zeros((1, d_model), jnp.float32),
            "ln_g": jnp.ones((1, d_model), jnp.float32),
            "ln_b": jnp.zeros((1, d_model), jnp.float32)}

    def ffn_params():
        return {"w1": bf16(nrm((d_model, d_inner))),
                "b1": jnp.zeros((1, d_inner), jnp.float32),
                "w2": bf16(nrm((d_inner, d_model))),
                "b2": jnp.zeros((1, d_model), jnp.float32),
                "ln_g": jnp.ones((1, d_model), jnp.float32),
                "ln_b": jnp.zeros((1, d_model), jnp.float32)}

    emb = nrm((n_vocab, d_model), scale=0.5)
    emb = emb.at[PAD].set(0.0)            # padding_idx=PAD

    # One-time lane-padded bf16 copy of the shared embedding for the vocab projection:
    # rows padded to a multiple of 128 (lane-dense output stores), zero rows sliced off
    # the logits afterwards.  TODO(synk): d_model itself (toy 32) is left unpadded to
    # preserve LayerNorm / residual semantics; pad it at realistic sizes.
    v_pad = ((n_vocab + 127) // 128) * 128
    emb_proj = jnp.zeros((v_pad, d_model), jnp.bfloat16).at[:n_vocab].set(
        emb.astype(jnp.bfloat16))

    return {
        "emb": emb,
        "emb_proj": emb_proj,
        "pos_enc": position_encoding_init(n_max_seq + 1, d_model),
        "enc_layers": [{"slf": mha_params(), "ffn": ffn_params()}
                       for _ in range(cfg["n_layers"])],
        "dec_layers": [{"slf": mha_params(), "enc": mha_params(), "ffn": ffn_params()}
                       for _ in range(cfg["n_layers"])],
    }


# ----------------------------------------------------------------------------- main

if __name__ == "__main__":
    cfg = dict(n_vocab=50, n_max_seq=16, n_layers=2, n_head=4,
               d_model=32, d_k=8, d_v=8, d_inner=64)

    key = jax.random.PRNGKey(0)
    k_param, k_src, k_tgt = jax.random.split(key, 3)
    params = init_params(k_param, cfg)

    B, Ls, Lt0 = 2, 10, 9
    src_seq = jax.random.randint(k_src, (B, Ls), 3, cfg["n_vocab"], dtype=jnp.int32)
    src_seq = src_seq.at[1, -1].set(PAD)  # exercise the padding mask
    tgt_seq = jax.random.randint(k_tgt, (B, Lt0), 3, cfg["n_vocab"], dtype=jnp.int32)

    fwd = jax.jit(functools.partial(transformer_forward, cfg=cfg))
    logits = fwd(params, src_seq, tgt_seq)
    jax.block_until_ready(logits)

    assert logits.shape == (B, Lt0 - 1, cfg["n_vocab"])
    assert bool(jnp.all(jnp.isfinite(logits)))
    print("KERNEL_OK")
</pallas_src>

<mosaic_0001>
module attributes {stable_mosaic.version = 11 : i64} {
  func.func @_mha_kernel(%arg0: i32, %arg1: i32, %arg2: memref<1x8x32xf32, #tpu.memory_space<vmem>>, %arg3: memref<1x8x32xf32, #tpu.memory_space<vmem>>, %arg4: memref<1x1x8xi32, #tpu.memory_space<vmem>>, %arg5: memref<32x96xbf16, #tpu.memory_space<vmem>>, %arg6: memref<32x32xbf16, #tpu.memory_space<vmem>>, %arg7: memref<1x32xf32, #tpu.memory_space<vmem>>, %arg8: memref<1x32xf32, #tpu.memory_space<vmem>>, %arg9: memref<1x32xf32, #tpu.memory_space<vmem>>, %arg10: memref<1x8x32xf32, #tpu.memory_space<vmem>>) attributes {dimension_semantics = [#tpu.dimension_semantics<parallel>, #tpu.dimension_semantics<parallel>], iteration_bounds = array<i64: 2, 1>, scalar_prefetch = 0 : i64, scratch_operands = 0 : i64, tpu.core_type = #tpu.core_type<tc>, window_params = [{transform_indices = @transform_0, window_bounds = array<i64: 1, 8, 32>}, {transform_indices = @transform_1, window_bounds = array<i64: 1, 8, 32>}, {transform_indices = @transform_2, window_bounds = array<i64: 1, 1, 8>}, {pipeline_mode = #tpu.pipeline_mode<synchronous>, transform_indices = @transform_3, window_bounds = array<i64: 32, 96>}, {pipeline_mode = #tpu.pipeline_mode<synchronous>, transform_indices = @transform_4, window_bounds = array<i64: 32, 32>}, {pipeline_mode = #tpu.pipeline_mode<synchronous>, transform_indices = @transform_5, window_bounds = array<i64: 1, 32>}, {pipeline_mode = #tpu.pipeline_mode<synchronous>, transform_indices = @transform_6, window_bounds = array<i64: 1, 32>}, {pipeline_mode = #tpu.pipeline_mode<synchronous>, transform_indices = @transform_7, window_bounds = array<i64: 1, 32>}, {transform_indices = @transform_8, window_bounds = array<i64: 1, 8, 32>}]} {
    %c0 = arith.constant 0 : index
    %c0_0 = arith.constant 0 : index
    %c0_1 = arith.constant 0 : index
    %0 = vector.load %arg2[%c0, %c0_0, %c0_1] : memref<1x8x32xf32, #tpu.memory_space<vmem>>, vector<1x8x32xf32>
    %1 = vector.shape_cast %0 : vector<1x8x32xf32> to vector<8x32xf32>
    %c0_2 = arith.constant 0 : index
    %c0_3 = arith.constant 0 : index
    %c0_4 = arith.constant 0 : index
    %2 = vector.load %arg3[%c0_2, %c0_3, %c0_4] : memref<1x8x32xf32, #tpu.memory_space<vmem>>, vector<1x8x32xf32>
    %3 = vector.shape_cast %2 : vector<1x8x32xf32> to vector<8x32xf32>
    %c0_5 = arith.constant 0 : index
    %c0_6 = arith.constant 0 : index
    %4 = vector.load %arg5[%c0_5, %c0_6] : memref<32x96xbf16, #tpu.memory_space<vmem>>, vector<32x96xbf16>
    %5 = arith.truncf %1 : vector<8x32xf32> to vector<8x32xbf16>
    %6 = vector.extract_strided_slice %4 {offsets = [0, 0], sizes = [32, 32], strides = [1, 1]} : vector<32x96xbf16> to vector<32x32xbf16>
    %cst = arith.constant dense<0.000000e+00> : vector<8x32xf32>
    %7 = tpu.matmul %5, %6, %cst {dimension_numbers = #tpu.dot_dimension_numbers<[1], [0], [0], [1], [0, 0, 1, 1], [], []>} : vector<8x32xbf16>, vector<32x32xbf16>, vector<8x32xf32> -> vector<8x32xf32>
    %8 = arith.truncf %3 : vector<8x32xf32> to vector<8x32xbf16>
    %9 = vector.extract_strided_slice %4 {offsets = [0, 32], sizes = [32, 64], strides = [1, 1]} : vector<32x96xbf16> to vector<32x64xbf16>
    %cst_7 = arith.constant dense<0.000000e+00> : vector<8x64xf32>
    %10 = tpu.matmul %8, %9, %cst_7 {dimension_numbers = #tpu.dot_dimension_numbers<[1], [0], [0], [1], [0, 0, 1, 1], [], []>} : vector<8x32xbf16>, vector<32x64xbf16>, vector<8x64xf32> -> vector<8x64xf32>
    %11 = vector.extract_strided_slice %10 {offsets = [0, 0], sizes = [8, 32], strides = [1, 1]} : vector<8x64xf32> to vector<8x32xf32>
    %12 = vector.extract_strided_slice %10 {offsets = [0, 32], sizes = [8, 32], strides = [1, 1]} : vector<8x64xf32> to vector<8x32xf32>
    %13 = vector.shape_cast %7 : vector<8x32xf32> to vector<8x4x8xf32>
    %14 = tpu.transpose %13, [1, 0, 2] : vector<8x4x8xf32> -> vector<4x8x8xf32>
    %15 = vector.shape_cast %11 : vector<8x32xf32> to vector<8x4x8xf32>
    %16 = tpu.transpose %15, [1, 0, 2] : vector<8x4x8xf32> -> vector<4x8x8xf32>
    %17 = vector.shape_cast %12 : vector<8x32xf32> to vector<8x4x8xf32>
    %18 = tpu.transpose %17, [1, 0, 2] : vector<8x4x8xf32> -> vector<4x8x8xf32>
    %19 = arith.truncf %14 : vector<4x8x8xf32> to vector<4x8x8xbf16>
    %20 = arith.truncf %16 : vector<4x8x8xf32> to vector<4x8x8xbf16>
    "tpu.trace_start"() <{level = 10 : i32, message = "hqd,hkd->hqk"}> : () -> ()
    %cst_8 = arith.constant dense<0.000000e+00> : vector<4x8x8xf32>
    %21 = tpu.matmul %19, %20, %cst_8 {dimension_numbers = #tpu.dot_dimension_numbers<[2], [2], [1], [1], [0, 0, 0, 1, 1, 1], [0], [0]>} : vector<4x8x8xbf16>, vector<4x8x8xbf16>, vector<4x8x8xf32> -> vector<4x8x8xf32>
    "tpu.trace_stop"() : () -> ()
    %cst_9 = arith.constant 0.176776692 : f32
    %22 = vector.broadcast %cst_9 : f32 to vector<4x8x8xf32>
    %23 = arith.mulf %21, %22 : vector<4x8x8xf32>
    %c0_10 = arith.constant 0 : index
    %c0_11 = arith.constant 0 : index
    %c0_12 = arith.constant 0 : index
    %24 = vector.load %arg4[%c0_10, %c0_11, %c0_12] : memref<1x1x8xi32, #tpu.memory_space<vmem>>, vector<1x1x8xi32>
    %25 = vector.shape_cast %24 : vector<1x1x8xi32> to vector<1x8xi32>
    %c0_i32 = arith.constant 0 : i32
    %26 = vector.broadcast %c0_i32 : i32 to vector<1x8xi32>
    %27 = arith.cmpi eq, %25, %26 : vector<1x8xi32>
    %28 = vector.shape_cast %27 : vector<1x8xi1> to vector<1x8xi1>
    %29 = vector.broadcast %28 : vector<1x8xi1> to vector<8x8xi1>
    %c8_i32 = arith.constant 8 : i32
    %30 = arith.muli %arg1, %c8_i32 : i32
    %31 = tpu.iota {dimensions = array<i32: 0>} : vector<8x8xi32>
    %32 = vector.broadcast %30 : i32 to vector<8x8xi32>
    %33 = arith.addi %32, %31 : vector<8x8xi32>
    %34 = tpu.iota {dimensions = array<i32: 1>} : vector<8x8xi32>
    %35 = arith.cmpi sgt, %34, %33 : vector<8x8xi32>
    %36 = arith.ori %29, %35 : vector<8x8xi1>
    %37 = vector.shape_cast %36 : vector<8x8xi1> to vector<1x8x8xi1>
    %cst_13 = arith.constant -1.000000e+30 : f32
    %38 = vector.shape_cast %37 : vector<1x8x8xi1> to vector<1x8x8xi1>
    %39 = vector.broadcast %38 : vector<1x8x8xi1> to vector<4x8x8xi1>
    %40 = vector.broadcast %cst_13 : f32 to vector<4x8x8xf32>
    %41 = arith.select %39, %40, %23 : vector<4x8x8xi1>, vector<4x8x8xf32>
    %cst_14 = arith.constant dense<0xFF800000> : vector<4x8xf32>
    %42 = vector.multi_reduction <maximumf>, %41, %cst_14 [2] : vector<4x8x8xf32> to vector<4x8xf32>
    %43 = vector.shape_cast %42 : vector<4x8xf32> to vector<4x8x1xf32>
    %44 = vector.broadcast %43 : vector<4x8x1xf32> to vector<4x8x8xf32>
    %45 = arith.subf %41, %44 : vector<4x8x8xf32>
    %46 = math.exp %45 : vector<4x8x8xf32>
    %cst_15 = arith.constant dense<0.000000e+00> : vector<4x8xf32>
    %47 = vector.multi_reduction <add>, %46, %cst_15 [2] : vector<4x8x8xf32> to vector<4x8xf32>
    %48 = vector.shape_cast %47 : vector<4x8xf32> to vector<4x8x1xf32>
    %49 = tpu.reciprocal %48 {approx = true} : vector<4x8x1xf32> -> vector<4x8x1xf32>
    %50 = vector.broadcast %49 : vector<4x8x1xf32> to vector<4x8x8xf32>
    %51 = arith.mulf %46, %50 : vector<4x8x8xf32>
    %52 = arith.truncf %51 : vector<4x8x8xf32> to vector<4x8x8xbf16>
    %53 = arith.truncf %18 : vector<4x8x8xf32> to vector<4x8x8xbf16>
    "tpu.trace_start"() <{level = 10 : i32, message = "hqk,hkd->hqd"}> : () -> ()
    %cst_16 = arith.constant dense<0.000000e+00> : vector<4x8x8xf32>
    %54 = tpu.matmul %52, %53, %cst_16 {dimension_numbers = #tpu.dot_dimension_numbers<[2], [1], [1], [2], [0, 0, 0, 1, 1, 2], [0], [0]>} : vector<4x8x8xbf16>, vector<4x8x8xbf16>, vector<4x8x8xf32> -> vector<4x8x8xf32>
    "tpu.trace_stop"() : () -> ()
    %55 = tpu.transpose %54, [1, 0, 2] : vector<4x8x8xf32> -> vector<8x4x8xf32>
    %56 = vector.shape_cast %55 : vector<8x4x8xf32> to vector<8x32xf32>
    %57 = arith.truncf %56 : vector<8x32xf32> to vector<8x32xbf16>
    %c0_17 = arith.constant 0 : index
    %c0_18 = arith.constant 0 : index
    %58 = vector.load %arg6[%c0_17, %c0_18] : memref<32x32xbf16, #tpu.memory_space<vmem>>, vector<32x32xbf16>
    %cst_19 = arith.constant dense<0.000000e+00> : vector<8x32xf32>
    %59 = tpu.matmul %57, %58, %cst_19 {dimension_numbers = #tpu.dot_dimension_numbers<[1], [0], [0], [1], [0, 0, 1, 1], [], []>} : vector<8x32xbf16>, vector<32x32xbf16>, vector<8x32xf32> -> vector<8x32xf32>
    %c0_20 = arith.constant 0 : index
    %c0_21 = arith.constant 0 : index
    %60 = vector.load %arg7[%c0_20, %c0_21] : memref<1x32xf32, #tpu.memory_space<vmem>>, vector<1x32xf32>
    %61 = vector.broadcast %60 : vector<1x32xf32> to vector<8x32xf32>
    %62 = arith.addf %59, %61 : vector<8x32xf32>
    %63 = arith.addf %62, %1 : vector<8x32xf32>
    %cst_22 = arith.constant dense<0.000000e+00> : vector<8xf32>
    %64 = vector.multi_reduction <add>, %63, %cst_22 [1] : vector<8x32xf32> to vector<8xf32>
    %65 = vector.shape_cast %64 : vector<8xf32> to vector<8x1xf32>
    %cst_23 = arith.constant 3.200000e+01 : f32
    %66 = vector.broadcast %cst_23 : f32 to vector<8x1xf32>
    %67 = arith.divf %65, %66 : vector<8x1xf32>
    %68 = vector.broadcast %67 : vector<8x1xf32> to vector<8x32xf32>
    %69 = arith.subf %63, %68 : vector<8x32xf32>
    %70 = arith.mulf %69, %69 : vector<8x32xf32>
    %cst_24 = arith.constant dense<0.000000e+00> : vector<8xf32>
    %71 = vector.multi_reduction <add>, %70, %cst_24 [1] : vector<8x32xf32> to vector<8xf32>
    %72 = vector.shape_cast %71 : vector<8xf32> to vector<8x1xf32>
    %cst_25 = arith.constant 0.0322580636 : f32
    %73 = vector.broadcast %cst_25 : f32 to vector<8x1xf32>
    %74 = arith.mulf %72, %73 : vector<8x1xf32>
    %75 = math.sqrt %74 : vector<8x1xf32>
    %cst_26 = arith.constant 1.000000e-03 : f32
    %76 = vector.broadcast %cst_26 : f32 to vector<8x1xf32>
    %77 = arith.addf %75, %76 : vector<8x1xf32>
    %78 = tpu.reciprocal %77 {approx = true} : vector<8x1xf32> -> vector<8x1xf32>
    %79 = vector.broadcast %67 : vector<8x1xf32> to vector<8x32xf32>
    %80 = arith.subf %63, %79 : vector<8x32xf32>
    %81 = vector.broadcast %78 : vector<8x1xf32> to vector<8x32xf32>
    %82 = arith.mulf %80, %81 : vector<8x32xf32>
    %c0_27 = arith.constant 0 : index
    %c0_28 = arith.constant 0 : index
    %83 = vector.load %arg8[%c0_27, %c0_28] : memref<1x32xf32, #tpu.memory_space<vmem>>, vector<1x32xf32>
    %84 = vector.broadcast %83 : vector<1x32xf32> to vector<8x32xf32>
    %85 = arith.mulf %82, %84 : vector<8x32xf32>
    %c0_29 = arith.constant 0 : index
    %c0_30 = arith.constant 0 : index
    %86 = vector.load %arg9[%c0_29, %c0_30] : memref<1x32xf32, #tpu.memory_space<vmem>>, vector<1x32xf32>
    %87 = vector.broadcast %86 : vector<1x32xf32> to vector<8x32xf32>
    %88 = arith.addf %85, %87 : vector<8x32xf32>
    %c0_31 = arith.constant 0 : index
    %c0_32 = arith.constant 0 : index
    %c0_33 = arith.constant 0 : index
    %89 = vector.load %arg10[%c0_31, %c0_32, %c0_33] : memref<1x8x32xf32, #tpu.memory_space<vmem>>, vector<1x8x32xf32>
    %90 = vector.shape_cast %89 : vector<1x8x32xf32> to vector<8x32xf32>
    %91 = vector.shape_cast %88 : vector<8x32xf32> to vector<1x8x32xf32>
    tpu.vector_store %arg10[%c0_31, %c0_32, %c0_33], %91 {strides = array<i32>} : memref<1x8x32xf32, #tpu.memory_space<vmem>>, vector<1x8x32xf32>,
    return
  }
  func.func @transform_0(%arg0: i32, %arg1: i32) -> (i32, i32, i32) {
    %c0_i32 = arith.constant 0 : i32
    %c0_i32_0 = arith.constant 0 : i32
    return %arg0, %arg1, %c0_i32 : i32, i32, i32
  }
  func.func @transform_1(%arg0: i32, %arg1: i32) -> (i32, i32, i32) {
    %c0_i32 = arith.constant 0 : i32
    %c0_i32_0 = arith.constant 0 : i32
    %c0_i32_1 = arith.constant 0 : i32
    return %arg0, %c0_i32, %c0_i32_0 : i32, i32, i32
  }
  func.func @transform_2(%arg0: i32, %arg1: i32) -> (i32, i32, i32) {
    %c0_i32 = arith.constant 0 : i32
    %c0_i32_0 = arith.constant 0 : i32
    %c0_i32_1 = arith.constant 0 : i32
    return %arg0, %c0_i32, %c0_i32_0 : i32, i32, i32
  }
  func.func @transform_3(%arg0: i32, %arg1: i32) -> (i32, i32) {
    %c0_i32 = arith.constant 0 : i32
    %c0_i32_0 = arith.constant 0 : i32
    %c0_i32_1 = arith.constant 0 : i32
    return %c0_i32, %c0_i32_0 : i32, i32
  }
  func.func @transform_4(%arg0: i32, %arg1: i32) -> (i32, i32) {
    %c0_i32 = arith.constant 0 : i32
    %c0_i32_0 = arith.constant 0 : i32
    %c0_i32_1 = arith.constant 0 : i32
    return %c0_i32, %c0_i32_0 : i32, i32
  }
  func.func @transform_5(%arg0: i32, %arg1: i32) -> (i32, i32) {
    %c0_i32 = arith.constant 0 : i32
    %c0_i32_0 = arith.constant 0 : i32
    %c0_i32_1 = arith.constant 0 : i32
    return %c0_i32, %c0_i32_0 : i32, i32
  }
  func.func @transform_6(%arg0: i32, %arg1: i32) -> (i32, i32) {
    %c0_i32 = arith.constant 0 : i32
    %c0_i32_0 = arith.constant 0 : i32
    %c0_i32_1 = arith.constant 0 : i32
    return %c0_i32, %c0_i32_0 : i32, i32
  }
  func.func @transform_7(%arg0: i32, %arg1: i32) -> (i32, i32) {
    %c0_i32 = arith.constant 0 : i32
    %c0_i32_0 = arith.constant 0 : i32
    %c0_i32_1 = arith.constant 0 : i32
    return %c0_i32, %c0_i32_0 : i32, i32
  }
  func.func @transform_8(%arg0: i32, %arg1: i32) -> (i32, i32, i32) {
    %c0_i32 = arith.constant 0 : i32
    %c0_i32_0 = arith.constant 0 : i32
    return %arg0, %arg1, %c0_i32 : i32, i32, i32
  }
}

module attributes {stable_mosaic.version = 11 : i64} {
  func.func @_mha_kernel(%arg0: i32, %arg1: i32, %arg2: memref<1x10x32xf32, #tpu.memory_space<vmem>>, %arg3: memref<1x10x32xf32, #tpu.memory_space<vmem>>, %arg4: memref<1x1x10xi32, #tpu.memory_space<vmem>>, %arg5: memref<32x96xbf16, #tpu.memory_space<vmem>>, %arg6: memref<32x32xbf16, #tpu.memory_space<vmem>>, %arg7: memref<1x32xf32, #tpu.memory_space<vmem>>, %arg8: memref<1x32xf32, #tpu.memory_space<vmem>>, %arg9: memref<1x32xf32, #tpu.memory_space<vmem>>, %arg10: memref<1x10x32xf32, #tpu.memory_space<vmem>>) attributes {dimension_semantics = [#tpu.dimension_semantics<parallel>, #tpu.dimension_semantics<parallel>], iteration_bounds = array<i64: 2, 1>, scalar_prefetch = 0 : i64, scratch_operands = 0 : i64, tpu.core_type = #tpu.core_type<tc>, window_params = [{transform_indices = @transform_0, window_bounds = array<i64: 1, 10, 32>}, {transform_indices = @transform_1, window_bounds = array<i64: 1, 10, 32>}, {transform_indices = @transform_2, window_bounds = array<i64: 1, 1, 10>}, {pipeline_mode = #tpu.pipeline_mode<synchronous>, transform_indices = @transform_3, window_bounds = array<i64: 32, 96>}, {pipeline_mode = #tpu.pipeline_mode<synchronous>, transform_indices = @transform_4, window_bounds = array<i64: 32, 32>}, {pipeline_mode = #tpu.pipeline_mode<synchronous>, transform_indices = @transform_5, window_bounds = array<i64: 1, 32>}, {pipeline_mode = #tpu.pipeline_mode<synchronous>, transform_indices = @transform_6, window_bounds = array<i64: 1, 32>}, {pipeline_mode = #tpu.pipeline_mode<synchronous>, transform_indices = @transform_7, window_bounds = array<i64: 1, 32>}, {transform_indices = @transform_8, window_bounds = array<i64: 1, 10, 32>}]} {
    %c0 = arith.constant 0 : index
    %c0_0 = arith.constant 0 : index
    %c0_1 = arith.constant 0 : index
    %0 = vector.load %arg2[%c0, %c0_0, %c0_1] : memref<1x10x32xf32, #tpu.memory_space<vmem>>, vector<1x10x32xf32>
    %1 = vector.shape_cast %0 : vector<1x10x32xf32> to vector<10x32xf32>
    %c0_2 = arith.constant 0 : index
    %c0_3 = arith.constant 0 : index
    %c0_4 = arith.constant 0 : index
    %2 = vector.load %arg3[%c0_2, %c0_3, %c0_4] : memref<1x10x32xf32, #tpu.memory_space<vmem>>, vector<1x10x32xf32>
    %3 = vector.shape_cast %2 : vector<1x10x32xf32> to vector<10x32xf32>
    %c0_5 = arith.constant 0 : index
    %c0_6 = arith.constant 0 : index
    %4 = vector.load %arg5[%c0_5, %c0_6] : memref<32x96xbf16, #tpu.memory_space<vmem>>, vector<32x96xbf16>
    %5 = arith.truncf %1 : vector<10x32xf32> to vector<10x32xbf16>
    %6 = vector.extract_strided_slice %4 {offsets = [0, 0], sizes = [32, 32], strides = [1, 1]} : vector<32x96xbf16> to vector<32x32xbf16>
    %cst = arith.constant dense<0.000000e+00> : vector<10x32xf32>
    %7 = tpu.matmul %5, %6, %cst {dimension_numbers = #tpu.dot_dimension_numbers<[1], [0], [0], [1], [0, 0, 1, 1], [], []>} : vector<10x32xbf16>, vector<32x32xbf16>, vector<10x32xf32> -> vector<10x32xf32>
    %8 = arith.truncf %3 : vector<10x32xf32> to vector<10x32xbf16>
    %9 = vector.extract_strided_slice %4 {offsets = [0, 32], sizes = [32, 64], strides = [1, 1]} : vector<32x96xbf16> to vector<32x64xbf16>
    %cst_7 = arith.constant dense<0.000000e+00> : vector<10x64xf32>
    %10 = tpu.matmul %8, %9, %cst_7 {dimension_numbers = #tpu.dot_dimension_numbers<[1], [0], [0], [1], [0, 0, 1, 1], [], []>} : vector<10x32xbf16>, vector<32x64xbf16>, vector<10x64xf32> -> vector<10x64xf32>
    %11 = vector.extract_strided_slice %10 {offsets = [0, 0], sizes = [10, 32], strides = [1, 1]} : vector<10x64xf32> to vector<10x32xf32>
    %12 = vector.extract_strided_slice %10 {offsets = [0, 32], sizes = [10, 32], strides = [1, 1]} : vector<10x64xf32> to vector<10x32xf32>
    %13 = vector.shape_cast %7 : vector<10x32xf32> to vector<10x4x8xf32>
    %14 = tpu.transpose %13, [1, 0, 2] : vector<10x4x8xf32> -> vector<4x10x8xf32>
    %15 = vector.shape_cast %11 : vector<10x32xf32> to vector<10x4x8xf32>
    %16 = tpu.transpose %15, [1, 0, 2] : vector<10x4x8xf32> -> vector<4x10x8xf32>
    %17 = vector.shape_cast %12 : vector<10x32xf32> to vector<10x4x8xf32>
    %18 = tpu.transpose %17, [1, 0, 2] : vector<10x4x8xf32> -> vector<4x10x8xf32>
    %19 = arith.truncf %14 : vector<4x10x8xf32> to vector<4x10x8xbf16>
    %20 = arith.truncf %16 : vector<4x10x8xf32> to vector<4x10x8xbf16>
    "tpu.trace_start"() <{level = 10 : i32, message = "hqd,hkd->hqk"}> : () -> ()
    %cst_8 = arith.constant dense<0.000000e+00> : vector<4x10x10xf32>
    %21 = tpu.matmul %19, %20, %cst_8 {dimension_numbers = #tpu.dot_dimension_numbers<[2], [2], [1], [1], [0, 0, 0, 1, 1, 1], [0], [0]>} : vector<4x10x8xbf16>, vector<4x10x8xbf16>, vector<4x10x10xf32> -> vector<4x10x10xf32>
    "tpu.trace_stop"() : () -> ()
    %cst_9 = arith.constant 0.176776692 : f32
    %22 = vector.broadcast %cst_9 : f32 to vector<4x10x10xf32>
    %23 = arith.mulf %21, %22 : vector<4x10x10xf32>
    %c0_10 = arith.constant 0 : index
    %c0_11 = arith.constant 0 : index
    %c0_12 = arith.constant 0 : index
    %24 = vector.load %arg4[%c0_10, %c0_11, %c0_12] : memref<1x1x10xi32, #tpu.memory_space<vmem>>, vector<1x1x10xi32>
    %25 = vector.shape_cast %24 : vector<1x1x10xi32> to vector<1x10xi32>
    %c0_i32 = arith.constant 0 : i32
    %26 = vector.broadcast %c0_i32 : i32 to vector<1x10xi32>
    %27 = arith.cmpi eq, %25, %26 : vector<1x10xi32>
    %28 = vector.shape_cast %27 : vector<1x10xi1> to vector<1x10xi1>
    %29 = vector.broadcast %28 : vector<1x10xi1> to vector<10x10xi1>
    %30 = vector.shape_cast %29 : vector<10x10xi1> to vector<1x10x10xi1>
    %cst_13 = arith.constant -1.000000e+30 : f32
    %31 = vector.shape_cast %30 : vector<1x10x10xi1> to vector<1x10x10xi1>
    %32 = vector.broadcast %31 : vector<1x10x10xi1> to vector<4x10x10xi1>
    %33 = vector.broadcast %cst_13 : f32 to vector<4x10x10xf32>
    %34 = arith.select %32, %33, %23 : vector<4x10x10xi1>, vector<4x10x10xf32>
    %cst_14 = arith.constant dense<0xFF800000> : vector<4x10xf32>
    %35 = vector.multi_reduction <maximumf>, %34, %cst_14 [2] : vector<4x10x10xf32> to vector<4x10xf32>
    %36 = vector.shape_cast %35 : vector<4x10xf32> to vector<4x10x1xf32>
    %37 = vector.broadcast %36 : vector<4x10x1xf32> to vector<4x10x10xf32>
    %38 = arith.subf %34, %37 : vector<4x10x10xf32>
    %39 = math.exp %38 : vector<4x10x10xf32>
    %cst_15 = arith.constant dense<0.000000e+00> : vector<4x10xf32>
    %40 = vector.multi_reduction <add>, %39, %cst_15 [2] : vector<4x10x10xf32> to vector<4x10xf32>
    %41 = vector.shape_cast %40 : vector<4x10xf32> to vector<4x10x1xf32>
    %42 = tpu.reciprocal %41 {approx = true} : vector<4x10x1xf32> -> vector<4x10x1xf32>
    %43 = vector.broadcast %42 : vector<4x10x1xf32> to vector<4x10x10xf32>
    %44 = arith.mulf %39, %43 : vector<4x10x10xf32>
    %45 = arith.truncf %44 : vector<4x10x10xf32> to vector<4x10x10xbf16>
    %46 = arith.truncf %18 : vector<4x10x8xf32> to vector<4x10x8xbf16>
    "tpu.trace_start"() <{level = 10 : i32, message = "hqk,hkd->hqd"}> : () -> ()
    %cst_16 = arith.constant dense<0.000000e+00> : vector<4x10x8xf32>
    %47 = tpu.matmul %45, %46, %cst_16 {dimension_numbers = #tpu.dot_dimension_numbers<[2], [1], [1], [2], [0, 0, 0, 1, 1, 2], [0], [0]>} : vector<4x10x10xbf16>, vector<4x10x8xbf16>, vector<4x10x8xf32> -> vector<4x10x8xf32>
    "tpu.trace_stop"() : () -> ()
    %48 = tpu.transpose %47, [1, 0, 2] : vector<4x10x8xf32> -> vector<10x4x8xf32>
    %49 = vector.shape_cast %48 : vector<10x4x8xf32> to vector<10x32xf32>
    %50 = arith.truncf %49 : vector<10x32xf32> to vector<10x32xbf16>
    %c0_17 = arith.constant 0 : index
    %c0_18 = arith.constant 0 : index
    %51 = vector.load %arg6[%c0_17, %c0_18] : memref<32x32xbf16, #tpu.memory_space<vmem>>, vector<32x32xbf16>
    %cst_19 = arith.constant dense<0.000000e+00> : vector<10x32xf32>
    %52 = tpu.matmul %50, %51, %cst_19 {dimension_numbers = #tpu.dot_dimension_numbers<[1], [0], [0], [1], [0, 0, 1, 1], [], []>} : vector<10x32xbf16>, vector<32x32xbf16>, vector<10x32xf32> -> vector<10x32xf32>
    %c0_20 = arith.constant 0 : index
    %c0_21 = arith.constant 0 : index
    %53 = vector.load %arg7[%c0_20, %c0_21] : memref<1x32xf32, #tpu.memory_space<vmem>>, vector<1x32xf32>
    %54 = vector.broadcast %53 : vector<1x32xf32> to vector<10x32xf32>
    %55 = arith.addf %52, %54 : vector<10x32xf32>
    %56 = arith.addf %55, %1 : vector<10x32xf32>
    %cst_22 = arith.constant dense<0.000000e+00> : vector<10xf32>
    %57 = vector.multi_reduction <add>, %56, %cst_22 [1] : vector<10x32xf32> to vector<10xf32>
    %58 = vector.shape_cast %57 : vector<10xf32> to vector<10x1xf32>
    %cst_23 = arith.constant 3.200000e+01 : f32
    %59 = vector.broadcast %cst_23 : f32 to vector<10x1xf32>
    %60 = arith.divf %58, %59 : vector<10x1xf32>
    %61 = vector.broadcast %60 : vector<10x1xf32> to vector<10x32xf32>
    %62 = arith.subf %56, %61 : vector<10x32xf32>
    %63 = arith.mulf %62, %62 : vector<10x32xf32>
    %cst_24 = arith.constant dense<0.000000e+00> : vector<10xf32>
    %64 = vector.multi_reduction <add>, %63, %cst_24 [1] : vector<10x32xf32> to vector<10xf32>
    %65 = vector.shape_cast %64 : vector<10xf32> to vector<10x1xf32>
    %cst_25 = arith.constant 0.0322580636 : f32
    %66 = vector.broadcast %cst_25 : f32 to vector<10x1xf32>
    %67 = arith.mulf %65, %66 : vector<10x1xf32>
    %68 = math.sqrt %67 : vector<10x1xf32>
    %cst_26 = arith.constant 1.000000e-03 : f32
    %69 = vector.broadcast %cst_26 : f32 to vector<10x1xf32>
    %70 = arith.addf %68, %69 : vector<10x1xf32>
    %71 = tpu.reciprocal %70 {approx = true} : vector<10x1xf32> -> vector<10x1xf32>
    %72 = vector.broadcast %60 : vector<10x1xf32> to vector<10x32xf32>
    %73 = arith.subf %56, %72 : vector<10x32xf32>
    %74 = vector.broadcast %71 : vector<10x1xf32> to vector<10x32xf32>
    %75 = arith.mulf %73, %74 : vector<10x32xf32>
    %c0_27 = arith.constant 0 : index
    %c0_28 = arith.constant 0 : index
    %76 = vector.load %arg8[%c0_27, %c0_28] : memref<1x32xf32, #tpu.memory_space<vmem>>, vector<1x32xf32>
    %77 = vector.broadcast %76 : vector<1x32xf32> to vector<10x32xf32>
    %78 = arith.mulf %75, %77 : vector<10x32xf32>
    %c0_29 = arith.constant 0 : index
    %c0_30 = arith.constant 0 : index
    %79 = vector.load %arg9[%c0_29, %c0_30] : memref<1x32xf32, #tpu.memory_space<vmem>>, vector<1x32xf32>
    %80 = vector.broadcast %79 : vector<1x32xf32> to vector<10x32xf32>
    %81 = arith.addf %78, %80 : vector<10x32xf32>
    %c0_31 = arith.constant 0 : index
    %c0_32 = arith.constant 0 : index
    %c0_33 = arith.constant 0 : index
    %82 = vector.load %arg10[%c0_31, %c0_32, %c0_33] : memref<1x10x32xf32, #tpu.memory_space<vmem>>, vector<1x10x32xf32>
    %83 = vector.shape_cast %82 : vector<1x10x32xf32> to vector<10x32xf32>
    %84 = vector.shape_cast %81 : vector<10x32xf32> to vector<1x10x32xf32>
    tpu.vector_store %arg10[%c0_31, %c0_32, %c0_33], %84 {strides = array<i32>} : memref<1x10x32xf32, #tpu.memory_space<vmem>>, vector<1x10x32xf32>,
    return
  }
  func.func @transform_0(%arg0: i32, %arg1: i32) -> (i32, i32, i32) {
    %c0_i32 = arith.constant 0 : i32
    %c0_i32_0 = arith.constant 0 : i32
    return %arg0, %arg1, %c0_i32 : i32, i32, i32
  }
  func.func @transform_1(%arg0: i32, %arg1: i32) -> (i32, i32, i32) {
    %c0_i32 = arith.constant 0 : i32
    %c0_i32_0 = arith.constant 0 : i32
    %c0_i32_1 = arith.constant 0 : i32
    return %arg0, %c0_i32, %c0_i32_0 : i32, i32, i32
  }
  func.func @transform_2(%arg0: i32, %arg1: i32) -> (i32, i32, i32) {
    %c0_i32 = arith.constant 0 : i32
    %c0_i32_0 = arith.constant 0 : i32
    %c0_i32_1 = arith.constant 0 : i32
    return %arg0, %c0_i32, %c0_i32_0 : i32, i32, i32
  }
  func.func @transform_3(%arg0: i32, %arg1: i32) -> (i32, i32) {
    %c0_i32 = arith.constant 0 : i32
    %c0_i32_0 = arith.constant 0 : i32
    %c0_i32_1 = arith.constant 0 : i32
    return %c0_i32, %c0_i32_0 : i32, i32
  }
  func.func @transform_4(%arg0: i32, %arg1: i32) -> (i32, i32) {
    %c0_i32 = arith.constant 0 : i32
    %c0_i32_0 = arith.constant 0 : i32
    %c0_i32_1 = arith.constant 0 : i32
    return %c0_i32, %c0_i32_0 : i32, i32
  }
  func.func @transform_5(%arg0: i32, %arg1: i32) -> (i32, i32) {
    %c0_i32 = arith.constant 0 : i32
    %c0_i32_0 = arith.constant 0 : i32
    %c0_i32_1 = arith.constant 0 : i32
    return %c0_i32, %c0_i32_0 : i32, i32
  }
  func.func @transform_6(%arg0: i32, %arg1: i32) -> (i32, i32) {
    %c0_i32 = arith.constant 0 : i32
    %c0_i32_0 = arith.constant 0 : i32
    %c0_i32_1 = arith.constant 0 : i32
    return %c0_i32, %c0_i32_0 : i32, i32
  }
  func.func @transform_7(%arg0: i32, %arg1: i32) -> (i32, i32) {
    %c0_i32 = arith.constant 0 : i32
    %c0_i32_0 = arith.constant 0 : i32
    %c0_i32_1 = arith.constant 0 : i32
    return %c0_i32, %c0_i32_0 : i32, i32
  }
  func.func @transform_8(%arg0: i32, %arg1: i32) -> (i32, i32, i32) {
    %c0_i32 = arith.constant 0 : i32
    %c0_i32_0 = arith.constant 0 : i32
    return %arg0, %arg1, %c0_i32 : i32, i32, i32
  }
}

module attributes {stable_mosaic.version = 11 : i64} {
  func.func @_ffn_kernel(%arg0: i32, %arg1: memref<20x32xf32, #tpu.memory_space<vmem>>, %arg2: memref<32x64xbf16, #tpu.memory_space<vmem>>, %arg3: memref<1x64xf32, #tpu.memory_space<vmem>>, %arg4: memref<64x32xbf16, #tpu.memory_space<vmem>>, %arg5: memref<1x32xf32, #tpu.memory_space<vmem>>, %arg6: memref<1x32xf32, #tpu.memory_space<vmem>>, %arg7: memref<1x32xf32, #tpu.memory_space<vmem>>, %arg8: memref<20x32xf32, #tpu.memory_space<vmem>>) attributes {dimension_semantics = [#tpu.dimension_semantics<parallel>], iteration_bounds = array<i64: 1>, scalar_prefetch = 0 : i64, scratch_operands = 0 : i64, tpu.core_type = #tpu.core_type<tc>, window_params = [{transform_indices = @transform_0, window_bounds = array<i64: 20, 32>}, {pipeline_mode = #tpu.pipeline_mode<synchronous>, transform_indices = @transform_1, window_bounds = array<i64: 32, 64>}, {pipeline_mode = #tpu.pipeline_mode<synchronous>, transform_indices = @transform_2, window_bounds = array<i64: 1, 64>}, {pipeline_mode = #tpu.pipeline_mode<synchronous>, transform_indices = @transform_3, window_bounds = array<i64: 64, 32>}, {pipeline_mode = #tpu.pipeline_mode<synchronous>, transform_indices = @transform_4, window_bounds = array<i64: 1, 32>}, {pipeline_mode = #tpu.pipeline_mode<synchronous>, transform_indices = @transform_5, window_bounds = array<i64: 1, 32>}, {pipeline_mode = #tpu.pipeline_mode<synchronous>, transform_indices = @transform_6, window_bounds = array<i64: 1, 32>}, {transform_indices = @transform_7, window_bounds = array<i64: 20, 32>}]} {
    %c0 = arith.constant 0 : index
    %c0_0 = arith.constant 0 : index
    %0 = vector.load %arg1[%c0, %c0_0] : memref<20x32xf32, #tpu.memory_space<vmem>>, vector<20x32xf32>
    %1 = arith.truncf %0 : vector<20x32xf32> to vector<20x32xbf16>
    %c0_1 = arith.constant 0 : index
    %c0_2 = arith.constant 0 : index
    %2 = vector.load %arg2[%c0_1, %c0_2] : memref<32x64xbf16, #tpu.memory_space<vmem>>, vector<32x64xbf16>
    %cst = arith.constant dense<0.000000e+00> : vector<20x64xf32>
    %3 = tpu.matmul %1, %2, %cst {dimension_numbers = #tpu.dot_dimension_numbers<[1], [0], [0], [1], [0, 0, 1, 1], [], []>} : vector<20x32xbf16>, vector<32x64xbf16>, vector<20x64xf32> -> vector<20x64xf32>
    %c0_3 = arith.constant 0 : index
    %c0_4 = arith.constant 0 : index
    %4 = vector.load %arg3[%c0_3, %c0_4] : memref<1x64xf32, #tpu.memory_space<vmem>>, vector<1x64xf32>
    %5 = vector.broadcast %4 : vector<1x64xf32> to vector<20x64xf32>
    %6 = arith.addf %3, %5 : vector<20x64xf32>
    %cst_5 = arith.constant 0.000000e+00 : f32
    %7 = vector.broadcast %cst_5 : f32 to vector<20x64xf32>
    %8 = arith.maximumf %6, %7 : vector<20x64xf32>
    %9 = arith.truncf %8 : vector<20x64xf32> to vector<20x64xbf16>
    %c0_6 = arith.constant 0 : index
    %c0_7 = arith.constant 0 : index
    %10 = vector.load %arg4[%c0_6, %c0_7] : memref<64x32xbf16, #tpu.memory_space<vmem>>, vector<64x32xbf16>
    %cst_8 = arith.constant dense<0.000000e+00> : vector<20x32xf32>
    %11 = tpu.matmul %9, %10, %cst_8 {dimension_numbers = #tpu.dot_dimension_numbers<[1], [0], [0], [1], [0, 0, 1, 1], [], []>} : vector<20x64xbf16>, vector<64x32xbf16>, vector<20x32xf32> -> vector<20x32xf32>
    %c0_9 = arith.constant 0 : index
    %c0_10 = arith.constant 0 : index
    %12 = vector.load %arg5[%c0_9, %c0_10] : memref<1x32xf32, #tpu.memory_space<vmem>>, vector<1x32xf32>
    %13 = vector.broadcast %12 : vector<1x32xf32> to vector<20x32xf32>
    %14 = arith.addf %11, %13 : vector<20x32xf32>
    %15 = arith.addf %14, %0 : vector<20x32xf32>
    %cst_11 = arith.constant dense<0.000000e+00> : vector<20xf32>
    %16 = vector.multi_reduction <add>, %15, %cst_11 [1] : vector<20x32xf32> to vector<20xf32>
    %17 = vector.shape_cast %16 : vector<20xf32> to vector<20x1xf32>
    %cst_12 = arith.constant 3.200000e+01 : f32
    %18 = vector.broadcast %cst_12 : f32 to vector<20x1xf32>
    %19 = arith.divf %17, %18 : vector<20x1xf32>
    %20 = vector.broadcast %19 : vector<20x1xf32> to vector<20x32xf32>
    %21 = arith.subf %15, %20 : vector<20x32xf32>
    %22 = arith.mulf %21, %21 : vector<20x32xf32>
    %cst_13 = arith.constant dense<0.000000e+00> : vector<20xf32>
    %23 = vector.multi_reduction <add>, %22, %cst_13 [1] : vector<20x32xf32> to vector<20xf32>
    %24 = vector.shape_cast %23 : vector<20xf32> to vector<20x1xf32>
    %cst_14 = arith.constant 0.0322580636 : f32
    %25 = vector.broadcast %cst_14 : f32 to vector<20x1xf32>
    %26 = arith.mulf %24, %25 : vector<20x1xf32>
    %27 = math.sqrt %26 : vector<20x1xf32>
    %cst_15 = arith.constant 1.000000e-03 : f32
    %28 = vector.broadcast %cst_15 : f32 to vector<20x1xf32>
    %29 = arith.addf %27, %28 : vector<20x1xf32>
    %30 = tpu.reciprocal %29 {approx = true} : vector<20x1xf32> -> vector<20x1xf32>
    %31 = vector.broadcast %19 : vector<20x1xf32> to vector<20x32xf32>
    %32 = arith.subf %15, %31 : vector<20x32xf32>
    %33 = vector.broadcast %30 : vector<20x1xf32> to vector<20x32xf32>
    %34 = arith.mulf %32, %33 : vector<20x32xf32>
    %c0_16 = arith.constant 0 : index
    %c0_17 = arith.constant 0 : index
    %35 = vector.load %arg6[%c0_16, %c0_17] : memref<1x32xf32, #tpu.memory_space<vmem>>, vector<1x32xf32>
    %36 = vector.broadcast %35 : vector<1x32xf32> to vector<20x32xf32>
    %37 = arith.mulf %34, %36 : vector<20x32xf32>
    %c0_18 = arith.constant 0 : index
    %c0_19 = arith.constant 0 : index
    %38 = vector.load %arg7[%c0_18, %c0_19] : memref<1x32xf32, #tpu.memory_space<vmem>>, vector<1x32xf32>
    %39 = vector.broadcast %38 : vector<1x32xf32> to vector<20x32xf32>
    %40 = arith.addf %37, %39 : vector<20x32xf32>
    %c0_20 = arith.constant 0 : index
    %c0_21 = arith.constant 0 : index
    %41 = vector.load %arg8[%c0_20, %c0_21] : memref<20x32xf32, #tpu.memory_space<vmem>>, vector<20x32xf32>
    tpu.vector_store %arg8[%c0_20, %c0_21], %40 {strides = array<i32>} : memref<20x32xf32, #tpu.memory_space<vmem>>, vector<20x32xf32>,
    return
  }
  func.func @transform_0(%arg0: i32) -> (i32, i32) {
    %c0_i32 = arith.constant 0 : i32
    %c0_i32_0 = arith.constant 0 : i32
    return %arg0, %c0_i32 : i32, i32
  }
  func.func @transform_1(%arg0: i32) -> (i32, i32) {
    %c0_i32 = arith.constant 0 : i32
    %c0_i32_0 = arith.constant 0 : i32
    %c0_i32_1 = arith.constant 0 : i32
    return %c0_i32, %c0_i32_0 : i32, i32
  }
  func.func @transform_2(%arg0: i32) -> (i32, i32) {
    %c0_i32 = arith.constant 0 : i32
    %c0_i32_0 = arith.constant 0 : i32
    %c0_i32_1 = arith.constant 0 : i32
    return %c0_i32, %c0_i32_0 : i32, i32
  }
  func.func @transform_3(%arg0: i32) -> (i32, i32) {
    %c0_i32 = arith.constant 0 : i32
    %c0_i32_0 = arith.constant 0 : i32
    %c0_i32_1 = arith.constant 0 : i32
    return %c0_i32, %c0_i32_0 : i32, i32
  }
  func.func @transform_4(%arg0: i32) -> (i32, i32) {
    %c0_i32 = arith.constant 0 : i32
    %c0_i32_0 = arith.constant 0 : i32
    %c0_i32_1 = arith.constant 0 : i32
    return %c0_i32, %c0_i32_0 : i32, i32
  }
  func.func @transform_5(%arg0: i32) -> (i32, i32) {
    %c0_i32 = arith.constant 0 : i32
    %c0_i32_0 = arith.constant 0 : i32
    %c0_i32_1 = arith.constant 0 : i32
    return %c0_i32, %c0_i32_0 : i32, i32
  }
  func.func @transform_6(%arg0: i32) -> (i32, i32) {
    %c0_i32 = arith.constant 0 : i32
    %c0_i32_0 = arith.constant 0 : i32
    %c0_i32_1 = arith.constant 0 : i32
    return %c0_i32, %c0_i32_0 : i32, i32
  }
  func.func @transform_7(%arg0: i32) -> (i32, i32) {
    %c0_i32 = arith.constant 0 : i32
    %c0_i32_0 = arith.constant 0 : i32
    return %arg0, %c0_i32 : i32, i32
  }
}

module attributes {stable_mosaic.version = 11 : i64} {
  func.func @_mha_kernel(%arg0: i32, %arg1: i32, %arg2: memref<1x8x32xf32, #tpu.memory_space<vmem>>, %arg3: memref<1x10x32xf32, #tpu.memory_space<vmem>>, %arg4: memref<1x1x10xi32, #tpu.memory_space<vmem>>, %arg5: memref<32x96xbf16, #tpu.memory_space<vmem>>, %arg6: memref<32x32xbf16, #tpu.memory_space<vmem>>, %arg7: memref<1x32xf32, #tpu.memory_space<vmem>>, %arg8: memref<1x32xf32, #tpu.memory_space<vmem>>, %arg9: memref<1x32xf32, #tpu.memory_space<vmem>>, %arg10: memref<1x8x32xf32, #tpu.memory_space<vmem>>) attributes {dimension_semantics = [#tpu.dimension_semantics<parallel>, #tpu.dimension_semantics<parallel>], iteration_bounds = array<i64: 2, 1>, scalar_prefetch = 0 : i64, scratch_operands = 0 : i64, tpu.core_type = #tpu.core_type<tc>, window_params = [{transform_indices = @transform_0, window_bounds = array<i64: 1, 8, 32>}, {transform_indices = @transform_1, window_bounds = array<i64: 1, 10, 32>}, {transform_indices = @transform_2, window_bounds = array<i64: 1, 1, 10>}, {pipeline_mode = #tpu.pipeline_mode<synchronous>, transform_indices = @transform_3, window_bounds = array<i64: 32, 96>}, {pipeline_mode = #tpu.pipeline_mode<synchronous>, transform_indices = @transform_4, window_bounds = array<i64: 32, 32>}, {pipeline_mode = #tpu.pipeline_mode<synchronous>, transform_indices = @transform_5, window_bounds = array<i64: 1, 32>}, {pipeline_mode = #tpu.pipeline_mode<synchronous>, transform_indices = @transform_6, window_bounds = array<i64: 1, 32>}, {pipeline_mode = #tpu.pipeline_mode<synchronous>, transform_indices = @transform_7, window_bounds = array<i64: 1, 32>}, {transform_indices = @transform_8, window_bounds = array<i64: 1, 8, 32>}]} {
    %c0 = arith.constant 0 : index
    %c0_0 = arith.constant 0 : index
    %c0_1 = arith.constant 0 : index
    %0 = vector.load %arg2[%c0, %c0_0, %c0_1] : memref<1x8x32xf32, #tpu.memory_space<vmem>>, vector<1x8x32xf32>
    %1 = vector.shape_cast %0 : vector<1x8x32xf32> to vector<8x32xf32>
    %c0_2 = arith.constant 0 : index
    %c0_3 = arith.constant 0 : index
    %c0_4 = arith.constant 0 : index
    %2 = vector.load %arg3[%c0_2, %c0_3, %c0_4] : memref<1x10x32xf32, #tpu.memory_space<vmem>>, vector<1x10x32xf32>
    %3 = vector.shape_cast %2 : vector<1x10x32xf32> to vector<10x32xf32>
    %c0_5 = arith.constant 0 : index
    %c0_6 = arith.constant 0 : index
    %4 = vector.load %arg5[%c0_5, %c0_6] : memref<32x96xbf16, #tpu.memory_space<vmem>>, vector<32x96xbf16>
    %5 = arith.truncf %1 : vector<8x32xf32> to vector<8x32xbf16>
    %6 = vector.extract_strided_slice %4 {offsets = [0, 0], sizes = [32, 32], strides = [1, 1]} : vector<32x96xbf16> to vector<32x32xbf16>
    %cst = arith.constant dense<0.000000e+00> : vector<8x32xf32>
    %7 = tpu.matmul %5, %6, %cst {dimension_numbers = #tpu.dot_dimension_numbers<[1], [0], [0], [1], [0, 0, 1, 1], [], []>} : vector<8x32xbf16>, vector<32x32xbf16>, vector<8x32xf32> -> vector<8x32xf32>
    %8 = arith.truncf %3 : vector<10x32xf32> to vector<10x32xbf16>
    %9 = vector.extract_strided_slice %4 {offsets = [0, 32], sizes = [32, 64], strides = [1, 1]} : vector<32x96xbf16> to vector<32x64xbf16>
    %cst_7 = arith.constant dense<0.000000e+00> : vector<10x64xf32>
    %10 = tpu.matmul %8, %9, %cst_7 {dimension_numbers = #tpu.dot_dimension_numbers<[1], [0], [0], [1], [0, 0, 1, 1], [], []>} : vector<10x32xbf16>, vector<32x64xbf16>, vector<10x64xf32> -> vector<10x64xf32>
    %11 = vector.extract_strided_slice %10 {offsets = [0, 0], sizes = [10, 32], strides = [1, 1]} : vector<10x64xf32> to vector<10x32xf32>
    %12 = vector.extract_strided_slice %10 {offsets = [0, 32], sizes = [10, 32], strides = [1, 1]} : vector<10x64xf32> to vector<10x32xf32>
    %13 = vector.shape_cast %7 : vector<8x32xf32> to vector<8x4x8xf32>
    %14 = tpu.transpose %13, [1, 0, 2] : vector<8x4x8xf32> -> vector<4x8x8xf32>
    %15 = vector.shape_cast %11 : vector<10x32xf32> to vector<10x4x8xf32>
    %16 = tpu.transpose %15, [1, 0, 2] : vector<10x4x8xf32> -> vector<4x10x8xf32>
    %17 = vector.shape_cast %12 : vector<10x32xf32> to vector<10x4x8xf32>
    %18 = tpu.transpose %17, [1, 0, 2] : vector<10x4x8xf32> -> vector<4x10x8xf32>
    %19 = arith.truncf %14 : vector<4x8x8xf32> to vector<4x8x8xbf16>
    %20 = arith.truncf %16 : vector<4x10x8xf32> to vector<4x10x8xbf16>
    "tpu.trace_start"() <{level = 10 : i32, message = "hqd,hkd->hqk"}> : () -> ()
    %cst_8 = arith.constant dense<0.000000e+00> : vector<4x8x10xf32>
    %21 = tpu.matmul %19, %20, %cst_8 {dimension_numbers = #tpu.dot_dimension_numbers<[2], [2], [1], [1], [0, 0, 0, 1, 1, 1], [0], [0]>} : vector<4x8x8xbf16>, vector<4x10x8xbf16>, vector<4x8x10xf32> -> vector<4x8x10xf32>
    "tpu.trace_stop"() : () -> ()
    %cst_9 = arith.constant 0.176776692 : f32
    %22 = vector.broadcast %cst_9 : f32 to vector<4x8x10xf32>
    %23 = arith.mulf %21, %22 : vector<4x8x10xf32>
    %c0_10 = arith.constant 0 : index
    %c0_11 = arith.constant 0 : index
    %c0_12 = arith.constant 0 : index
    %24 = vector.load %arg4[%c0_10, %c0_11, %c0_12] : memref<1x1x10xi32, #tpu.memory_space<vmem>>, vector<1x1x10xi32>
    %25 = vector.shape_cast %24 : vector<1x1x10xi32> to vector<1x10xi32>
    %c0_i32 = arith.constant 0 : i32
    %26 = vector.broadcast %c0_i32 : i32 to vector<1x10xi32>
    %27 = arith.cmpi eq, %25, %26 : vector<1x10xi32>
    %28 = vector.shape_cast %27 : vector<1x10xi1> to vector<1x10xi1>
    %29 = vector.broadcast %28 : vector<1x10xi1> to vector<8x10xi1>
    %30 = vector.shape_cast %29 : vector<8x10xi1> to vector<1x8x10xi1>
    %cst_13 = arith.constant -1.000000e+30 : f32
    %31 = vector.shape_cast %30 : vector<1x8x10xi1> to vector<1x8x10xi1>
    %32 = vector.broadcast %31 : vector<1x8x10xi1> to vector<4x8x10xi1>
    %33 = vector.broadcast %cst_13 : f32 to vector<4x8x10xf32>
    %34 = arith.select %32, %33, %23 : vector<4x8x10xi1>, vector<4x8x10xf32>
    %cst_14 = arith.constant dense<0xFF800000> : vector<4x8xf32>
    %35 = vector.multi_reduction <maximumf>, %34, %cst_14 [2] : vector<4x8x10xf32> to vector<4x8xf32>
    %36 = vector.shape_cast %35 : vector<4x8xf32> to vector<4x8x1xf32>
    %37 = vector.broadcast %36 : vector<4x8x1xf32> to vector<4x8x10xf32>
    %38 = arith.subf %34, %37 : vector<4x8x10xf32>
    %39 = math.exp %38 : vector<4x8x10xf32>
    %cst_15 = arith.constant dense<0.000000e+00> : vector<4x8xf32>
    %40 = vector.multi_reduction <add>, %39, %cst_15 [2] : vector<4x8x10xf32> to vector<4x8xf32>
    %41 = vector.shape_cast %40 : vector<4x8xf32> to vector<4x8x1xf32>
    %42 = tpu.reciprocal %41 {approx = true} : vector<4x8x1xf32> -> vector<4x8x1xf32>
    %43 = vector.broadcast %42 : vector<4x8x1xf32> to vector<4x8x10xf32>
    %44 = arith.mulf %39, %43 : vector<4x8x10xf32>
    %45 = arith.truncf %44 : vector<4x8x10xf32> to vector<4x8x10xbf16>
    %46 = arith.truncf %18 : vector<4x10x8xf32> to vector<4x10x8xbf16>
    "tpu.trace_start"() <{level = 10 : i32, message = "hqk,hkd->hqd"}> : () -> ()
    %cst_16 = arith.constant dense<0.000000e+00> : vector<4x8x8xf32>
    %47 = tpu.matmul %45, %46, %cst_16 {dimension_numbers = #tpu.dot_dimension_numbers<[2], [1], [1], [2], [0, 0, 0, 1, 1, 2], [0], [0]>} : vector<4x8x10xbf16>, vector<4x10x8xbf16>, vector<4x8x8xf32> -> vector<4x8x8xf32>
    "tpu.trace_stop"() : () -> ()
    %48 = tpu.transpose %47, [1, 0, 2] : vector<4x8x8xf32> -> vector<8x4x8xf32>
    %49 = vector.shape_cast %48 : vector<8x4x8xf32> to vector<8x32xf32>
    %50 = arith.truncf %49 : vector<8x32xf32> to vector<8x32xbf16>
    %c0_17 = arith.constant 0 : index
    %c0_18 = arith.constant 0 : index
    %51 = vector.load %arg6[%c0_17, %c0_18] : memref<32x32xbf16, #tpu.memory_space<vmem>>, vector<32x32xbf16>
    %cst_19 = arith.constant dense<0.000000e+00> : vector<8x32xf32>
    %52 = tpu.matmul %50, %51, %cst_19 {dimension_numbers = #tpu.dot_dimension_numbers<[1], [0], [0], [1], [0, 0, 1, 1], [], []>} : vector<8x32xbf16>, vector<32x32xbf16>, vector<8x32xf32> -> vector<8x32xf32>
    %c0_20 = arith.constant 0 : index
    %c0_21 = arith.constant 0 : index
    %53 = vector.load %arg7[%c0_20, %c0_21] : memref<1x32xf32, #tpu.memory_space<vmem>>, vector<1x32xf32>
    %54 = vector.broadcast %53 : vector<1x32xf32> to vector<8x32xf32>
    %55 = arith.addf %52, %54 : vector<8x32xf32>
    %56 = arith.addf %55, %1 : vector<8x32xf32>
    %cst_22 = arith.constant dense<0.000000e+00> : vector<8xf32>
    %57 = vector.multi_reduction <add>, %56, %cst_22 [1] : vector<8x32xf32> to vector<8xf32>
    %58 = vector.shape_cast %57 : vector<8xf32> to vector<8x1xf32>
    %cst_23 = arith.constant 3.200000e+01 : f32
    %59 = vector.broadcast %cst_23 : f32 to vector<8x1xf32>
    %60 = arith.divf %58, %59 : vector<8x1xf32>
    %61 = vector.broadcast %60 : vector<8x1xf32> to vector<8x32xf32>
    %62 = arith.subf %56, %61 : vector<8x32xf32>
    %63 = arith.mulf %62, %62 : vector<8x32xf32>
    %cst_24 = arith.constant dense<0.000000e+00> : vector<8xf32>
    %64 = vector.multi_reduction <add>, %63, %cst_24 [1] : vector<8x32xf32> to vector<8xf32>
    %65 = vector.shape_cast %64 : vector<8xf32> to vector<8x1xf32>
    %cst_25 = arith.constant 0.0322580636 : f32
    %66 = vector.broadcast %cst_25 : f32 to vector<8x1xf32>
    %67 = arith.mulf %65, %66 : vector<8x1xf32>
    %68 = math.sqrt %67 : vector<8x1xf32>
    %cst_26 = arith.constant 1.000000e-03 : f32
    %69 = vector.broadcast %cst_26 : f32 to vector<8x1xf32>
    %70 = arith.addf %68, %69 : vector<8x1xf32>
    %71 = tpu.reciprocal %70 {approx = true} : vector<8x1xf32> -> vector<8x1xf32>
    %72 = vector.broadcast %60 : vector<8x1xf32> to vector<8x32xf32>
    %73 = arith.subf %56, %72 : vector<8x32xf32>
    %74 = vector.broadcast %71 : vector<8x1xf32> to vector<8x32xf32>
    %75 = arith.mulf %73, %74 : vector<8x32xf32>
    %c0_27 = arith.constant 0 : index
    %c0_28 = arith.constant 0 : index
    %76 = vector.load %arg8[%c0_27, %c0_28] : memref<1x32xf32, #tpu.memory_space<vmem>>, vector<1x32xf32>
    %77 = vector.broadcast %76 : vector<1x32xf32> to vector<8x32xf32>
    %78 = arith.mulf %75, %77 : vector<8x32xf32>
    %c0_29 = arith.constant 0 : index
    %c0_30 = arith.constant 0 : index
    %79 = vector.load %arg9[%c0_29, %c0_30] : memref<1x32xf32, #tpu.memory_space<vmem>>, vector<1x32xf32>
    %80 = vector.broadcast %79 : vector<1x32xf32> to vector<8x32xf32>
    %81 = arith.addf %78, %80 : vector<8x32xf32>
    %c0_31 = arith.constant 0 : index
    %c0_32 = arith.constant 0 : index
    %c0_33 = arith.constant 0 : index
    %82 = vector.load %arg10[%c0_31, %c0_32, %c0_33] : memref<1x8x32xf32, #tpu.memory_space<vmem>>, vector<1x8x32xf32>
    %83 = vector.shape_cast %82 : vector<1x8x32xf32> to vector<8x32xf32>
    %84 = vector.shape_cast %81 : vector<8x32xf32> to vector<1x8x32xf32>
    tpu.vector_store %arg10[%c0_31, %c0_32, %c0_33], %84 {strides = array<i32>} : memref<1x8x32xf32, #tpu.memory_space<vmem>>, vector<1x8x32xf32>,
    return
  }
  func.func @transform_0(%arg0: i32, %arg1: i32) -> (i32, i32, i32) {
    %c0_i32 = arith.constant 0 : i32
    %c0_i32_0 = arith.constant 0 : i32
    return %arg0, %arg1, %c0_i32 : i32, i32, i32
  }
  func.func @transform_1(%arg0: i32, %arg1: i32) -> (i32, i32, i32) {
    %c0_i32 = arith.constant 0 : i32
    %c0_i32_0 = arith.constant 0 : i32
    %c0_i32_1 = arith.constant 0 : i32
    return %arg0, %c0_i32, %c0_i32_0 : i32, i32, i32
  }
  func.func @transform_2(%arg0: i32, %arg1: i32) -> (i32, i32, i32) {
    %c0_i32 = arith.constant 0 : i32
    %c0_i32_0 = arith.constant 0 : i32
    %c0_i32_1 = arith.constant 0 : i32
    return %arg0, %c0_i32, %c0_i32_0 : i32, i32, i32
  }
  func.func @transform_3(%arg0: i32, %arg1: i32) -> (i32, i32) {
    %c0_i32 = arith.constant 0 : i32
    %c0_i32_0 = arith.constant 0 : i32
    %c0_i32_1 = arith.constant 0 : i32
    return %c0_i32, %c0_i32_0 : i32, i32
  }
  func.func @transform_4(%arg0: i32, %arg1: i32) -> (i32, i32) {
    %c0_i32 = arith.constant 0 : i32
    %c0_i32_0 = arith.constant 0 : i32
    %c0_i32_1 = arith.constant 0 : i32
    return %c0_i32, %c0_i32_0 : i32, i32
  }
  func.func @transform_5(%arg0: i32, %arg1: i32) -> (i32, i32) {
    %c0_i32 = arith.constant 0 : i32
    %c0_i32_0 = arith.constant 0 : i32
    %c0_i32_1 = arith.constant 0 : i32
    return %c0_i32, %c0_i32_0 : i32, i32
  }
  func.func @transform_6(%arg0: i32, %arg1: i32) -> (i32, i32) {
    %c0_i32 = arith.constant 0 : i32
    %c0_i32_0 = arith.constant 0 : i32
    %c0_i32_1 = arith.constant 0 : i32
    return %c0_i32, %c0_i32_0 : i32, i32
  }
  func.func @transform_7(%arg0: i32, %arg1: i32) -> (i32, i32) {
    %c0_i32 = arith.constant 0 : i32
    %c0_i32_0 = arith.constant 0 : i32
    %c0_i32_1 = arith.constant 0 : i32
    return %c0_i32, %c0_i32_0 : i32, i32
  }
  func.func @transform_8(%arg0: i32, %arg1: i32) -> (i32, i32, i32) {
    %c0_i32 = arith.constant 0 : i32
    %c0_i32_0 = arith.constant 0 : i32
    return %arg0, %arg1, %c0_i32 : i32, i32, i32
  }
}

module attributes {stable_mosaic.version = 11 : i64} {
  func.func @_ffn_kernel(%arg0: i32, %arg1: memref<16x32xf32, #tpu.memory_space<vmem>>, %arg2: memref<32x64xbf16, #tpu.memory_space<vmem>>, %arg3: memref<1x64xf32, #tpu.memory_space<vmem>>, %arg4: memref<64x32xbf16, #tpu.memory_space<vmem>>, %arg5: memref<1x32xf32, #tpu.memory_space<vmem>>, %arg6: memref<1x32xf32, #tpu.memory_space<vmem>>, %arg7: memref<1x32xf32, #tpu.memory_space<vmem>>, %arg8: memref<16x32xf32, #tpu.memory_space<vmem>>) attributes {dimension_semantics = [#tpu.dimension_semantics<parallel>], iteration_bounds = array<i64: 1>, scalar_prefetch = 0 : i64, scratch_operands = 0 : i64, tpu.core_type = #tpu.core_type<tc>, window_params = [{transform_indices = @transform_0, window_bounds = array<i64: 16, 32>}, {pipeline_mode = #tpu.pipeline_mode<synchronous>, transform_indices = @transform_1, window_bounds = array<i64: 32, 64>}, {pipeline_mode = #tpu.pipeline_mode<synchronous>, transform_indices = @transform_2, window_bounds = array<i64: 1, 64>}, {pipeline_mode = #tpu.pipeline_mode<synchronous>, transform_indices = @transform_3, window_bounds = array<i64: 64, 32>}, {pipeline_mode = #tpu.pipeline_mode<synchronous>, transform_indices = @transform_4, window_bounds = array<i64: 1, 32>}, {pipeline_mode = #tpu.pipeline_mode<synchronous>, transform_indices = @transform_5, window_bounds = array<i64: 1, 32>}, {pipeline_mode = #tpu.pipeline_mode<synchronous>, transform_indices = @transform_6, window_bounds = array<i64: 1, 32>}, {transform_indices = @transform_7, window_bounds = array<i64: 16, 32>}]} {
    %c0 = arith.constant 0 : index
    %c0_0 = arith.constant 0 : index
    %0 = vector.load %arg1[%c0, %c0_0] : memref<16x32xf32, #tpu.memory_space<vmem>>, vector<16x32xf32>
    %1 = arith.truncf %0 : vector<16x32xf32> to vector<16x32xbf16>
    %c0_1 = arith.constant 0 : index
    %c0_2 = arith.constant 0 : index
    %2 = vector.load %arg2[%c0_1, %c0_2] : memref<32x64xbf16, #tpu.memory_space<vmem>>, vector<32x64xbf16>
    %cst = arith.constant dense<0.000000e+00> : vector<16x64xf32>
    %3 = tpu.matmul %1, %2, %cst {dimension_numbers = #tpu.dot_dimension_numbers<[1], [0], [0], [1], [0, 0, 1, 1], [], []>} : vector<16x32xbf16>, vector<32x64xbf16>, vector<16x64xf32> -> vector<16x64xf32>
    %c0_3 = arith.constant 0 : index
    %c0_4 = arith.constant 0 : index
    %4 = vector.load %arg3[%c0_3, %c0_4] : memref<1x64xf32, #tpu.memory_space<vmem>>, vector<1x64xf32>
    %5 = vector.broadcast %4 : vector<1x64xf32> to vector<16x64xf32>
    %6 = arith.addf %3, %5 : vector<16x64xf32>
    %cst_5 = arith.constant 0.000000e+00 : f32
    %7 = vector.broadcast %cst_5 : f32 to vector<16x64xf32>
    %8 = arith.maximumf %6, %7 : vector<16x64xf32>
    %9 = arith.truncf %8 : vector<16x64xf32> to vector<16x64xbf16>
    %c0_6 = arith.constant 0 : index
    %c0_7 = arith.constant 0 : index
    %10 = vector.load %arg4[%c0_6, %c0_7] : memref<64x32xbf16, #tpu.memory_space<vmem>>, vector<64x32xbf16>
    %cst_8 = arith.constant dense<0.000000e+00> : vector<16x32xf32>
    %11 = tpu.matmul %9, %10, %cst_8 {dimension_numbers = #tpu.dot_dimension_numbers<[1], [0], [0], [1], [0, 0, 1, 1], [], []>} : vector<16x64xbf16>, vector<64x32xbf16>, vector<16x32xf32> -> vector<16x32xf32>
    %c0_9 = arith.constant 0 : index
    %c0_10 = arith.constant 0 : index
    %12 = vector.load %arg5[%c0_9, %c0_10] : memref<1x32xf32, #tpu.memory_space<vmem>>, vector<1x32xf32>
    %13 = vector.broadcast %12 : vector<1x32xf32> to vector<16x32xf32>
    %14 = arith.addf %11, %13 : vector<16x32xf32>
    %15 = arith.addf %14, %0 : vector<16x32xf32>
    %cst_11 = arith.constant dense<0.000000e+00> : vector<16xf32>
    %16 = vector.multi_reduction <add>, %15, %cst_11 [1] : vector<16x32xf32> to vector<16xf32>
    %17 = vector.shape_cast %16 : vector<16xf32> to vector<16x1xf32>
    %cst_12 = arith.constant 3.200000e+01 : f32
    %18 = vector.broadcast %cst_12 : f32 to vector<16x1xf32>
    %19 = arith.divf %17, %18 : vector<16x1xf32>
    %20 = vector.broadcast %19 : vector<16x1xf32> to vector<16x32xf32>
    %21 = arith.subf %15, %20 : vector<16x32xf32>
    %22 = arith.mulf %21, %21 : vector<16x32xf32>
    %cst_13 = arith.constant dense<0.000000e+00> : vector<16xf32>
    %23 = vector.multi_reduction <add>, %22, %cst_13 [1] : vector<16x32xf32> to vector<16xf32>
    %24 = vector.shape_cast %23 : vector<16xf32> to vector<16x1xf32>
    %cst_14 = arith.constant 0.0322580636 : f32
    %25 = vector.broadcast %cst_14 : f32 to vector<16x1xf32>
    %26 = arith.mulf %24, %25 : vector<16x1xf32>
    %27 = math.sqrt %26 : vector<16x1xf32>
    %cst_15 = arith.constant 1.000000e-03 : f32
    %28 = vector.broadcast %cst_15 : f32 to vector<16x1xf32>
    %29 = arith.addf %27, %28 : vector<16x1xf32>
    %30 = tpu.reciprocal %29 {approx = true} : vector<16x1xf32> -> vector<16x1xf32>
    %31 = vector.broadcast %19 : vector<16x1xf32> to vector<16x32xf32>
    %32 = arith.subf %15, %31 : vector<16x32xf32>
    %33 = vector.broadcast %30 : vector<16x1xf32> to vector<16x32xf32>
    %34 = arith.mulf %32, %33 : vector<16x32xf32>
    %c0_16 = arith.constant 0 : index
    %c0_17 = arith.constant 0 : index
    %35 = vector.load %arg6[%c0_16, %c0_17] : memref<1x32xf32, #tpu.memory_space<vmem>>, vector<1x32xf32>
    %36 = vector.broadcast %35 : vector<1x32xf32> to vector<16x32xf32>
    %37 = arith.mulf %34, %36 : vector<16x32xf32>
    %c0_18 = arith.constant 0 : index
    %c0_19 = arith.constant 0 : index
    %38 = vector.load %arg7[%c0_18, %c0_19] : memref<1x32xf32, #tpu.memory_space<vmem>>, vector<1x32xf32>
    %39 = vector.broadcast %38 : vector<1x32xf32> to vector<16x32xf32>
    %40 = arith.addf %37, %39 : vector<16x32xf32>
    %c0_20 = arith.constant 0 : index
    %c0_21 = arith.constant 0 : index
    %41 = vector.load %arg8[%c0_20, %c0_21] : memref<16x32xf32, #tpu.memory_space<vmem>>, vector<16x32xf32>
    tpu.vector_store %arg8[%c0_20, %c0_21], %40 {strides = array<i32>} : memref<16x32xf32, #tpu.memory_space<vmem>>, vector<16x32xf32>,
    return
  }
  func.func @transform_0(%arg0: i32) -> (i32, i32) {
    %c0_i32 = arith.constant 0 : i32
    %c0_i32_0 = arith.constant 0 : i32
    return %arg0, %c0_i32 : i32, i32
  }
  func.func @transform_1(%arg0: i32) -> (i32, i32) {
    %c0_i32 = arith.constant 0 : i32
    %c0_i32_0 = arith.constant 0 : i32
    %c0_i32_1 = arith.constant 0 : i32
    return %c0_i32, %c0_i32_0 : i32, i32
  }
  func.func @transform_2(%arg0: i32) -> (i32, i32) {
    %c0_i32 = arith.constant 0 : i32
    %c0_i32_0 = arith.constant 0 : i32
    %c0_i32_1 = arith.constant 0 : i32
    return %c0_i32, %c0_i32_0 : i32, i32
  }
  func.func @transform_3(%arg0: i32) -> (i32, i32) {
    %c0_i32 = arith.constant 0 : i32
    %c0_i32_0 = arith.constant 0 : i32
    %c0_i32_1 = arith.constant 0 : i32
    return %c0_i32, %c0_i32_0 : i32, i32
  }
  func.func @transform_4(%arg0: i32) -> (i32, i32) {
    %c0_i32 = arith.constant 0 : i32
    %c0_i32_0 = arith.constant 0 : i32
    %c0_i32_1 = arith.constant 0 : i32
    return %c0_i32, %c0_i32_0 : i32, i32
  }
  func.func @transform_5(%arg0: i32) -> (i32, i32) {
    %c0_i32 = arith.constant 0 : i32
    %c0_i32_0 = arith.constant 0 : i32
    %c0_i32_1 = arith.constant 0 : i32
    return %c0_i32, %c0_i32_0 : i32, i32
  }
  func.func @transform_6(%arg0: i32) -> (i32, i32) {
    %c0_i32 = arith.constant 0 : i32
    %c0_i32_0 = arith.constant 0 : i32
    %c0_i32_1 = arith.constant 0 : i32
    return %c0_i32, %c0_i32_0 : i32, i32
  }
  func.func @transform_7(%arg0: i32) -> (i32, i32) {
    %c0_i32 = arith.constant 0 : i32
    %c0_i32_0 = arith.constant 0 : i32
    return %arg0, %c0_i32 : i32, i32
  }
}

module attributes {stable_mosaic.version = 11 : i64} {
  func.func @_proj_kernel(%arg0: i32, %arg1: i32, %arg2: memref<16x32xf32, #tpu.memory_space<vmem>>, %arg3: memref<128x32xbf16, #tpu.memory_space<vmem>>, %arg4: memref<16x128xf32, #tpu.memory_space<vmem>>) attributes {dimension_semantics = [#tpu.dimension_semantics<parallel>, #tpu.dimension_semantics<parallel>], iteration_bounds = array<i64: 1, 1>, scalar_prefetch = 0 : i64, scratch_operands = 0 : i64, tpu.core_type = #tpu.core_type<tc>, window_params = [{transform_indices = @transform_0, window_bounds = array<i64: 16, 32>}, {transform_indices = @transform_1, window_bounds = array<i64: 128, 32>}, {transform_indices = @transform_2, window_bounds = array<i64: 16, 128>}]} {
    %c0 = arith.constant 0 : index
    %c0_0 = arith.constant 0 : index
    %0 = vector.load %arg2[%c0, %c0_0] : memref<16x32xf32, #tpu.memory_space<vmem>>, vector<16x32xf32>
    %1 = arith.truncf %0 : vector<16x32xf32> to vector<16x32xbf16>
    %c0_1 = arith.constant 0 : index
    %c0_2 = arith.constant 0 : index
    %2 = vector.load %arg3[%c0_1, %c0_2] : memref<128x32xbf16, #tpu.memory_space<vmem>>, vector<128x32xbf16>
    %cst = arith.constant dense<0.000000e+00> : vector<16x128xf32>
    %3 = tpu.matmul %1, %2, %cst {dimension_numbers = #tpu.dot_dimension_numbers<[1], [1], [0], [0], [0, 0, 1, 0], [], []>} : vector<16x32xbf16>, vector<128x32xbf16>, vector<16x128xf32> -> vector<16x128xf32>
    %c0_3 = arith.constant 0 : index
    %c0_4 = arith.constant 0 : index
    %4 = vector.load %arg4[%c0_3, %c0_4] : memref<16x128xf32, #tpu.memory_space<vmem>>, vector<16x128xf32>
    tpu.vector_store %arg4[%c0_3, %c0_4], %3 {strides = array<i32>} : memref<16x128xf32, #tpu.memory_space<vmem>>, vector<16x128xf32>,
    return
  }
  func.func @transform_0(%arg0: i32, %arg1: i32) -> (i32, i32) {
    %c0_i32 = arith.constant 0 : i32
    %c0_i32_0 = arith.constant 0 : i32
    return %arg1, %c0_i32 : i32, i32
  }
  func.func @transform_1(%arg0: i32, %arg1: i32) -> (i32, i32) {
    %c0_i32 = arith.constant 0 : i32
    %c0_i32_0 = arith.constant 0 : i32
    return %arg0, %c0_i32 : i32, i32
  }
  func.func @transform_2(%arg0: i32, %arg1: i32) -> (i32, i32) {
    %c0_i32 = arith.constant 0 : i32
    return %arg1, %arg0 : i32, i32
  }
}

</mosaic_0001>

<bundles_post_ra>
// kernel: transformer_forward.12
= control target key start
LH: loop header
LB: loop body
LE: loop exit
PB: predicated region body
PF: predicated region fallthrough
CT: control target
= control target key end

     0   :  { %vm55_vm0 = vcmask 261120   ;;  %vm154_vm1 = vcmask 523264   ;;  %vm218_vm2 = vcmask 257024   ;;  %s462_s1 = inlined_call_operand.vmem [shape: bf16[32,64], index: 1, kind: input, shape index: {}]   ;;  %s463_s0 = inlined_call_operand.vmem [shape: f32[20,32], index: 0, kind: input, shape index: {}]   ;;  %s464_s3 = inlined_call_operand.vmem [shape: bf16[64,32], index: 3, kind: input, shape index: {}]   ;;  %s465_s2 = inlined_call_operand.vmem [shape: f32[1,64], index: 2, kind: input, shape index: {}]   ;;  %s466_s4 = inlined_call_operand.vmem [shape: f32[1,32], index: 4, kind: input, shape index: {}]   ;;  %s467_s5 = inlined_call_operand.vmem [shape: f32[1,32], index: 5, kind: input, shape index: {}]   ;;  %s468_s6 = inlined_call_operand.vmem [shape: f32[1,32], index: 6, kind: input, shape index: {}]   ;;  %s469_s7 = inlined_call_operand.vmem [shape: f32[20,32], index: 7, kind: output, shape index: {}]  }
   0x1   :  { %v345_v0 = vld [vmem:[%s462_s1] sm:$0xff]   ;;  %v346_v1 = vld [vmem:[%s462_s1 + $0x8] sm:$0xff]   ;;  %v29_v4 = vld [vmem:[%s463_s0 + $0x10] sm:$0xf] }
   0x2   :  { %325 = vmatprep.subr.bf16.mxu0 %v345_v0  ;;  %v27_v2 = vld [vmem:[%s463_s0] sm:$0xff]  ;;  %v28_v3 = vld [vmem:[%s463_s0 + $0x8] sm:$0xff]  ;;  %v31_v8 = vpack.c.bf16 %v29_v4, %v29_v4  ;;  %v349_v9 = vld [vmem:[%s464_s3 + $0x10] sm:$0xff]  }
   0x3   :  { %326 = vmatpush3.bf16.msra.mxu0 %v345_v0  ;;  %v30_v5 = vpack.c.bf16 %v28_v3, %v27_v2  ;;  %v347_v6 = vld [vmem:[%s464_s3] sm:$0xff]   ;;  %v348_v7 = vld [vmem:[%s464_s3 + $0x8] sm:$0xff]   ;;  %v350_v10 = vld [vmem:[%s464_s3 + $0x18] sm:$0xff]  }
   0x4   :  { %327 = vmatprep.subr.bf16.mxu0 %v346_v1  ;;  %333 = vmatprep.subr.bf16.mxu1 %v347_v6  ;;  %v301_v11 = vld [vmem:[%s465_s2] ss:$0 sm:$0xff] }
   0x5   :  { %329 = vmatprep.mubr.msk.bf16.mxu0 %vm55_vm0, %v30_v5  ;;  %334 = vmatpush3.bf16.msra.mxu1 %v347_v6  ;;  %v306_v24 = vld [vmem:[%s466_s4] ss:$0 sm:$0xff] }
   0x6   :  { %335 = vmatprep.subr.bf16.mxu1 %v348_v7 }
   0x7   :  { %328 = vmatpush3.bf16.msra.mxu0 %v346_v1 }
   0x9   :  { %336 = vmatpush3.bf16.msra.mxu1 %v348_v7 }
   0xa   :  { %330 = vmatmul.mubr.msk.bf16.vlgmr.msra.gmra.mrb[0].mxu0 %vm55_vm0, %v31_v8  ;;  %337 = vmatprep.subr.bf16.mxu1 %v349_v9 }
   0xd   :  { %338 = vmatpush3.bf16.msra.mxu1 %v349_v9 }
   0xe   :  { %339 = vmatprep.subr.bf16.mxu1 %v350_v10 }
  0x11   :  { %340 = vmatpush3.bf16.msra.mxu1 %v350_v10 }
  0xdd   :  { %v331_v12 = vpop.f32.mrb[0].mxu0 }
  0xde   :  { %v105_v13 = vadd.f32 %v331_v12, %v301_v11  ;;  %v96_v14 = vpop.f32.mrb[1].mxu0 }
  0xdf   :  { %v97_v15 = vadd.f32 %v301_v11, %v96_v14  ;;  %v332_v16 = vpop.f32.mrb[2].mxu0  ;;  %v313_v14 = vld [vmem:[%s467_s5] ss:$0 sm:$0xff] }
  0xe0   :  { %v99_v17 = vpop.f32.mrb[3].mxu0  ;;  %v112_v19 = vmax.f32 %v105_v13, 0.0  ;;  %v314_v16 = vld [vmem:[%s468_s6] ss:$0 sm:$0xff] }
  0xe1   :  { %v100_v18 = vadd.f32 %v301_v11, %v99_v17  ;;  %v110_v20 = vmax.f32 %v97_v15, 0.0 }
  0xe2   :  { %v114_v23 = vpack.c.bf16 %v112_v19, %v112_v19 }
  0xe3   :  { %v111_v21 = vmax.f32 %v100_v18, 0.0 }
  0xe5   :  { %v113_v22 = vpack.c.bf16 %v111_v21, %v110_v20 }
  0xe7   :  { %341 = vmatprep.mubr.msk.bf16.mxu1 %vm154_vm1, %v113_v22 }
  0xe8   :  { %342 = vmatmul.mubr.msk.bf16.vlgmr.msra.gmra.mrb[0].mxu1 %vm154_vm1, %v114_v23 }
 0x1bb   :  { %v343_v25 = vpop.f32.mrb[0].mxu1 }
 0x1bc   :  { %v204_v26 = vadd.f32 %v343_v25, %v306_v24  ;;  %v195_v27 = vpop.f32.mrb[1].mxu1 }
 0x1bd   :  { %v196_v28 = vadd.f32 %v306_v24, %v195_v27  ;;  %v344_v29 = vpop.f32.mrb[2].mxu1 }
 0x1be   :  { %v198_v30 = vpop.f32.mrb[3].mxu1  ;;  %v211_v31 = vadd.f32 %v204_v26, %v29_v4 }
 0x1bf   :  { %v199_v32 = vadd.f32 %v306_v24, %v198_v30  ;;  %v209_v33 = vadd.f32 %v196_v28, %v27_v2 }
 0x1c0   :  { %v219_v34 = vsel %vm218_vm2, %v211_v31, 0.0 }
 0x1c1   :  { %220 = vadd.xlane.f32.xlu1 %v219_v34  ;;  %v212_v35 = vsel %vm55_vm0, %v209_v33, 0.0  ;;  %v210_v36 = vadd.f32 %v199_v32, %v28_v3 }
 0x1c2   :  { %213 = vadd.xlane.f32.xlu0 %v212_v35 }
 0x1c3   :  { %v215_v37 = vsel %vm55_vm0, %v210_v36, 0.0 }
 0x1c6   :  { %216 = vadd.xlane.f32.xlu0 %v215_v37 }
 0x24e   :  { %v221_v38 = vpop.xlane.xlu1 %220 }
 0x24f   :  { %v225_v39 = vmul.f32 0.03125, %v221_v38  ;;  %v214_v40 = vpop.xlane.xlu0 %213 }
 0x250   :  { %v223_v41 = vmul.f32 0.03125, %v214_v40 }
 0x251   :  { %v228_v42 = vsub.f32 %v211_v31, %v225_v39 }
 0x252   :  { %v226_v43 = vsub.f32 %v209_v33, %v223_v41 }
 0x253   :  { %v217_v44 = vpop.xlane.xlu0 %216  ;;  %v231_v49 = vmul.f32 %v228_v42, %v228_v42 }
 0x254   :  { %v224_v45 = vmul.f32 0.03125, %v217_v44  ;;  %v229_v46 = vmul.f32 %v226_v43, %v226_v43 }
 0x255   :  { %v238_v51 = vsel %vm218_vm2, %v231_v49, 0.0 }
 0x256   :  { %v227_v47 = vsub.f32 %v210_v36, %v224_v45  ;;  %v232_v48 = vsel %vm55_vm0, %v229_v46, 0.0 }
 0x257   :  { %233 = vadd.xlane.f32.xlu1 %v232_v48 }
 0x258   :  { %v230_v50 = vmul.f32 %v227_v47, %v227_v47 }
 0x25a   :  { %v235_v52 = vsel %vm55_vm0, %v230_v50, 0.0 }
 0x25b   :  { %239 = vadd.xlane.f32.xlu1 %v238_v51  ;;  %236 = vadd.xlane.f32.xlu0 %v235_v52 }
 0x2e4   :  { %v234_v53 = vpop.xlane.xlu1 %233 }
 0x2e5   :  { %v241_v54 = vmul.f32 0.032258064, %v234_v53 }
 0x2e7   :  { %351 = vrsqrt.f32 %v241_v54  ;;  %vm246_vm3 = vcmp.eq.f32.partialorder %v241_v54, inf  ;;  %v249_v61 = vand.u32 2147483648, %v241_v54  ;;  %vm248_vm4 = vcmp.eq.f32.partialorder %v241_v54, 0.0 }
 0x2e8   :  { %v240_v55 = vpop.xlane.xlu1 %239  ;;  %v237_v56 = vpop.xlane.xlu0 %236 }
 0x2e9   :  { %v243_v57 = vmul.f32 0.032258064, %v240_v55  ;;  %v242_v58 = vmul.f32 0.032258064, %v237_v56 }
 0x2eb   :  { %353 = vrsqrt.f32 %v243_v57  ;;  %vm260_vm5 = vcmp.eq.f32.partialorder %v243_v57, inf  ;;  %vm262_vm6 = vcmp.eq.f32.partialorder %v243_v57, 0.0  ;;  %v263_v4 = vand.u32 2147483648, %v243_v57 }
 0x2ec   :  { %355 = vrsqrt.f32 %v242_v58  ;;  %vm253_vm7 = vcmp.eq.f32.partialorder %v242_v58, inf  ;;  %v256_v7 = vand.u32 2147483648, %v242_v58  ;;  %vm255_vm8 = vcmp.eq.f32.partialorder %v242_v58, 0.0 }
 0x2f1   :  { %v352_v59 = vpop.eup %351 }
 0x2f2   :  { %v245_v60 = vmul.f32 %v352_v59, %v241_v54 }
 0x2f4   :  { %v247_v62 = vsel %vm246_vm3, %v241_v54, %v245_v60 }
 0x2f5   :  { %v354_v63 = vpop.eup %353  ;;  %v250_v0 = vsel %vm248_vm4, %v249_v61, %v247_v62 }
 0x2f6   :  { %v356_v1 = vpop.eup %355  ;;  %v265_v2 = vadd.f32 0.001, %v250_v0  ;;  %v259_v3 = vmul.f32 %v354_v63, %v243_v57 }
 0x2f7   :  { %v252_v5 = vmul.f32 %v356_v1, %v242_v58 }
 0x2f8   :  { %357 = vrcp.f32 %v265_v2  ;;  %v261_v6 = vsel %vm260_vm5, %v243_v57, %v259_v3 }
 0x2f9   :  { %v264_v8 = vsel %vm262_vm6, %v263_v4, %v261_v6  ;;  %v254_v9 = vsel %vm253_vm7, %v242_v58, %v252_v5 }
 0x2fa   :  { %v267_v10 = vadd.f32 0.001, %v264_v8  ;;  %v257_v11 = vsel %vm255_vm8, %v256_v7, %v254_v9 }
 0x2fb   :  { %v266_v12 = vadd.f32 0.001, %v257_v11 }
 0x2fc   :  { %359 = vrcp.f32 %v267_v10 }
 0x2fd   :  { %361 = vrcp.f32 %v266_v12 }
 0x302   :  { %v358_v13 = vpop.eup %357 }
 0x303   :  { %v271_v15 = vmul.f32 %v358_v13, %v226_v43 }
 0x305   :  { %v281_v17 = vmul.f32 %v313_v14, %v271_v15 }
 0x306   :  { %v360_v18 = vpop.eup %359 }
 0x307   :  { %v362_v19 = vpop.eup %361  ;;  %v291_v20 = vadd.f32 %v314_v16, %v281_v17  ;;  %v273_v21 = vmul.f32 %v360_v18, %v228_v42 }
 0x308   :  { %v272_v22 = vmul.f32 %v362_v19, %v227_v47 }
 0x309   :  { %294 = vst.msk [vmem:[%s469_s7] sm:$0xff] %vm55_vm0, %v291_v20  ;;  %v283_v23 = vmul.f32 %v313_v14, %v273_v21 }
 0x30a   :  { %v282_v24 = vmul.f32 %v313_v14, %v272_v22 }
 0x30b   :  { %v293_v25 = vadd.f32 %v314_v16, %v283_v23 }
 0x30c   :  { %v292_v26 = vadd.f32 %v314_v16, %v282_v24 }
 0x30d   :  { %296 = vst.msk [vmem:[%s469_s7 + $0x10] sm:$0xf] %vm218_vm2, %v293_v25 }
 0x30e   :  { %295 = vst.msk [vmem:[%s469_s7 + $0x8] sm:$0xff] %vm55_vm0, %v292_v26 }

// kernel: transformer_forward.15
= control target key start
LH: loop header
LB: loop body
LE: loop exit
PB: predicated region body
PF: predicated region fallthrough
CT: control target
= control target key end

     0   :  { %s2002_s27 = smov 0   ;;  %s2004_s28 = smov 0   ;;  %s2283_s0 = inlined_call_operand.vmem [shape: f32[2,8,32], index: 0, kind: input, shape index: {}, may-alias: {0,1}]   ;;  %s2284_s1 = inlined_call_operand.vmem [shape: f32[2,8,32], index: 1, kind: input, shape index: {}, may-alias: {0,1}]   ;;  %s2285_s2 = inlined_call_operand.vmem [shape: s32[2,1,8], index: 2, kind: input, shape index: {}]   ;;  %s2286_s3 = inlined_call_operand.vmem [shape: bf16[32,96], index: 3, kind: input, shape index: {}]   ;;  %s2287_s4 = inlined_call_operand.vmem [shape: bf16[32,32], index: 4, kind: input, shape index: {}]   ;;  %s2288_s5 = inlined_call_operand.vmem [shape: f32[1,32], index: 5, kind: input, shape index: {}]   ;;  %s2289_s6 = inlined_call_operand.vmem [shape: f32[1,32], index: 6, kind: input, shape index: {}]   ;;  %s2290_s7 = inlined_call_operand.vmem [shape: f32[1,32], index: 7, kind: input, shape index: {}]   ;;  %s2291_s8 = inlined_call_operand.vmem [shape: f32[2,8,32], index: 8, kind: output, shape index: {}]  }
   0x1   :  { %s2006_s29 = smov 0  }
   0x2 LB: > { %s30_s30 = sadd.s32 1, %s1939_s28  ;;  %p1732_p0 = scmp.ge.s32.totalorder %s1943_s29, 1  ;;  %s1943_s29 = sphi %s2006_s29, %s18_s29   ;;  %s1939_s28 = sphi %s2004_s28, %s2295_s28   ;;  %s1935_s27 = sphi %s2002_s27, %s2294_s27  }
   0x3   : > { %p32_p1 = scmp.ge.s32.totalorder %s30_s30, 2  ;;  %p297_p2 = scmp.lt.s32.totalorder %s1943_s29, 3 }
   0x5   : > { %s2297_s30 = smov (%p32_p1, %s30_s30), 0  ;;  %p298_p3 = pnand %p1732_p0, %p297_p2 }
   0x6   : > { %v1897_v0 = vld [vmem:[%s2286_s3] sm:$0xff] (!%p298_p3)   ;;  %s1945_s11 = smov (!%p298_p3), 96   ;;  %v1898_v1 = vld [vmem:[%s2286_s3 + $0x8] sm:$0xff] (!%p298_p3)   ;;  %v1946_v2 = vmov (!%p298_p3), 0.0   ;;  %p342_p4 = scmp.lt.s32.totalorder (!%p298_p3), %s1935_s27, 1  ;;  %vm1947_vm0 = vmmov (!%p298_p3), 0   ;;  %v492_v19 = vlaneseq (!%p298_p3) }
   0x7   : > { %301 = sbr.rel (%p298_p3) target bundleno = 1975 (0x7b7), region = 52  ;;  %428 = vrot.lane.b32.xlu0 (!%p298_p3), %v1897_v0, %s1945_s11  ;;  %1797 = vmatprep.subr.bf16.mxu1 (!%p298_p3), %v1946_v2  ;;  %vm383_vm1 = vcmask (!%p298_p3), 261120   ;;  %s1948_s21 = smov (!%p298_p3), 104   ;;  %v1951_v17 = vmov (!%p298_p3), 1983009808   ;;  %vm925_vm2 = vcmask (!%p298_p3), 64512  }
   0x8   : > { %1789 = vmatprep.subr.bf16.mxu0 (!%p298_p3), %v1946_v2  ;;  %1801 = vmatprep.mubr.msk.bf16.mxu1 (!%p298_p3), %vm1947_vm0, %v1946_v2  ;;  %s1949_s22 = smov (!%p298_p3), 120   ;;  %s1950_s23 = smov (!%p298_p3), 112   ;;  %v490_v18 = vunpack.c.l.s4 (!%p298_p3), %v1951_v17  ;;  %v1952_v20 = vmov (!%p298_p3), 1934713408   ;;  %v2072_v23 = vshrl.u32 (!%p298_p3), %v492_v19, 7  ;;  %vm1192_vm7 = vcmask (!%p298_p3), 1043456  }
   0x9   : > { %1790 = vmatpush3.bf16.msra.mxu0 (!%p298_p3), %v1897_v0  ;;  %1793 = vmatprep.mubr.msk.bf16.mxu0 (!%p298_p3), %vm1947_vm0, %v1946_v2  ;;  %v522_v21 = vunpack.c.l.s4 (!%p298_p3), %v1952_v20  ;;  %s1954_s12 = smov (!%p298_p3), 16   ;;  %s1955_s13 = smov (!%p298_p3), 8   ;;  %vm1523_vm8 = vcmask (!%p298_p3), 130048   ;;  %vm1525_vm9 = vcmask (!%p298_p3), 195584  }
   0xa   : > { %1791 = vmatprep.subr.bf16.mxu0 (!%p298_p3), %v1946_v2  ;;  %v491_v22 = vunpack.c.0.s8 (!%p298_p3), %v490_v18  ;;  %s1956_s15 = smov (!%p298_p3), 24  }
   0xb   : > { %430 = vrot.lane.b32.xlu0 (!%p298_p3), %v1898_v1, %s1945_s11  ;;  %v523_v26 = vunpack.c.0.s8 (!%p298_p3), %v522_v21 }
   0xc   : > { %v2079_v27 = vsub.s32 (!%p298_p3), %v491_v22, %v2072_v23 }
   0xd   : > { %1792 = vmatpush3.bf16.msra.mxu0 (!%p298_p3), %v1898_v1  ;;  %v2092_v33 = vsub.s32 (!%p298_p3), %v523_v26, %v2072_v23 }
   0xe   : > { %s2299_s27 = smov (!%p342_p4, %s1935_s27), 1  ;;  %1805 = vmatprep.subr.bf16.mxu0 %v1946_v2 }
   0xf   : > { %s2038_s14 = sshll.u32 %s2299_s27, 3  ;;  %s355_s26 = scalar_lea.vmem %s2285_s2, %s2299_s27 }
  0x10   : > { %s348_s17 = scalar_lea.vmem %s2283_s0, %s2038_s14  ;;  %s352_s20 = scalar_lea.vmem %s2284_s1, %s2038_s14 }
  0x11   : > { %v2044_v3 = vld [vmem:[%s348_s17] sm:$0xff]  ;;  %s362_s24 = scalar_lea.vmem %s2291_s8, %s2038_s14 }
  0x12   : > { %v370_v4 = vpack.c.bf16 %v2044_v3, %v2044_v3  ;;  %v365_v6 = vld [vmem:[%s352_s20] sm:$0xff] }
  0x13   : > { %v427_v8 = vpack.c.bf16 %v365_v6, %v365_v6 }
  0x14   : > { %1794 = vmatmul.mubr.msk.bf16.vlgmr.msra.gmra.mrb[0].mxu0 %vm383_vm1, %v370_v4 }
  0x15   : > { %1807 = vmatprep.mubr.msk.bf16.mxu0 %vm1947_vm0, %v1946_v2 }
  0x79   : > { %v429_v5 = vpop.permute.xlu0 %428 }
  0x7a   : > { %1798 = vmatpush3.bf16.msra.mxu1 %v429_v5 }
  0x7b   : > { %1799 = vmatprep.subr.bf16.mxu1 %v1946_v2 }
  0x7d   : > { %v431_v7 = vpop.permute.xlu0 %430 }
  0x7e   : > { %1800 = vmatpush3.bf16.msra.mxu1 %v431_v7 }
  0x7f   : > { %1811 = vmatprep.subr.bf16.mxu1 %v1946_v2 }
  0x81   : > { %1802 = vmatmul.mubr.msk.bf16.vlgmr.msra.gmra.mrb[0].mxu1 %vm383_vm1, %v427_v8 }
  0x82   : > { %1813 = vmatprep.mubr.msk.bf16.mxu1 %vm1947_vm0, %v1946_v2 }
  0xe7   : > { %v2061_v9 = vpop.f32.mrb[0].mxu0 }
  0xe8   : > { %v1795_v10 = vpop.f32.mrb[1].mxu0 }
  0xe9   : > { %v424_v11 = vpop.f32.mrb[2].mxu0 }
  0xea   : > { %v1796_v12 = vpop.f32.mrb[3].mxu0 }
 0x154   : > { %v2063_v13 = vpop.f32.mrb[0].mxu1 }
 0x155   : > { %630 = vrot.lane.b32.xlu0 %v2063_v13, %s1948_s21  ;;  %624 = vrot.lane.b32.xlu1 %v2063_v13, %s1949_s22  ;;  %v1803_v14 = vpop.f32.mrb[1].mxu1 }
 0x156   : > { %v474_v15 = vpop.f32.mrb[2].mxu1 }
 0x157   : > { %v1804_v16 = vpop.f32.mrb[3].mxu1 }
 0x159   : > { %627 = vrot.lane.b32.xlu1 %v2063_v13, %s1950_s23  ;;  %481 = vrot.lane.b32.xlu0 %v2061_v9, %s1950_s23 }
 0x15d   : > { %478 = vrot.lane.b32.xlu1 %v2061_v9, %s1949_s22 }
 0x161   : > { %484 = vrot.lane.b32.xlu1 %v2061_v9, %s1948_s21 }
 0x1c7   : > { %v2074_v24 = vpop.permute.xlu0 %630  ;;  %v2076_v25 = vpop.permute.xlu1 %624 }
 0x1c8   : > { %v649_v28 = vcombine.low %v2076_v25, %v2074_v24  ;;  %v650_v29 = vcombine.high %v2076_v25, %v2074_v24 }
 0x1ca   : > { %v657_v34 = vrot.slane %v649_v28, %v2079_v27  ;;  %v664_v35 = vrot.slane %v650_v29, %v2079_v27 }
 0x1cb   : > { %v2085_v30 = vpop.permute.xlu1 %627  ;;  %v482_v43 = vpop.permute.xlu0 %481 }
 0x1cc   : > { %v633_v31 = vcombine.low %v2063_v13, %v2085_v30  ;;  %v634_v32 = vcombine.high %v2063_v13, %v2085_v30  ;;  %v487_v48 = vcombine.low %v2061_v9, %v482_v43  ;;  %v488_v49 = vcombine.high %v2061_v9, %v482_v43 }
 0x1ce   : > { %v641_v36 = vrot.slane %v633_v31, %v2079_v27  ;;  %v648_v37 = vrot.slane %v634_v32, %v2079_v27  ;;  %v495_v61 = vrot.slane %v487_v48, %v2079_v27  ;;  %v502_v62 = vrot.slane %v488_v49, %v2079_v27 }
 0x1cf   : > { %v479_v38 = vpop.permute.xlu1 %478 }
 0x1d0   : > { %v665_v39 = vcombine.low %v641_v36, %v657_v34  ;;  %v666_v40 = vcombine.high %v641_v36, %v657_v34  ;;  %v681_v41 = vcombine.low %v648_v37, %v664_v35  ;;  %v682_v42 = vcombine.high %v648_v37, %v664_v35 }
 0x1d2   : > { %v673_v44 = vrot.slane %v665_v39, %v2092_v33  ;;  %v680_v45 = vrot.slane %v666_v40, %v2092_v33  ;;  %v689_v46 = vrot.slane %v681_v41, %v2092_v33  ;;  %v696_v47 = vrot.slane %v682_v42, %v2092_v33 }
 0x1d3   : > { %v485_v50 = vpop.permute.xlu1 %484 }
 0x1d4   : > { %v701_v51 = vcombine.low %v673_v44, %v680_v45  ;;  %v1742_v52 = vcombine.high %v673_v44, %v680_v45  ;;  %v717_v53 = vcombine.low %v689_v46, %v696_v47  ;;  %v1743_v54 = vcombine.high %v689_v46, %v696_v47 }
 0x1d5   : > { %v503_v55 = vcombine.low %v479_v38, %v485_v50  ;;  %v504_v56 = vcombine.high %v479_v38, %v485_v50 }
 0x1d6   : > { %v708_v57 = vrot.slane %v701_v51, %v2079_v27  ;;  %v716_v58 = vrot.slane %v1742_v52, %v2079_v27  ;;  %v724_v59 = vrot.slane %v717_v53, %v2079_v27  ;;  %v732_v60 = vrot.slane %v1743_v54, %v2079_v27 }
 0x1d7   : > { %v511_v63 = vrot.slane %v503_v55, %v2079_v27  ;;  %v518_v0 = vrot.slane %v504_v56, %v2079_v27 }
 0x1d8   : > { %v733_v1 = vcombine.low %v708_v57, %v716_v58  ;;  %v749_v4 = vcombine.low %v724_v59, %v732_v60  ;;  %v734_v5 = vcombine.high %v708_v57, %v716_v58  ;;  %v750_v6 = vcombine.high %v724_v59, %v732_v60 }
 0x1d9   : > { %v519_v7 = vcombine.low %v495_v61, %v511_v63  ;;  %v520_v8 = vcombine.high %v495_v61, %v511_v63  ;;  %v535_v9 = vcombine.low %v502_v62, %v518_v0  ;;  %v536_v10 = vcombine.high %v502_v62, %v518_v0  ;;  %v1114_v63 = vld [vmem:[%s355_s26] sm:$0x1] }
 0x1da   : > { %v741_v11 = vrot.slane %v733_v1, %v2092_v33  ;;  %v757_v12 = vrot.slane %v749_v4, %v2092_v33  ;;  %v748_v21 = vrot.slane %v734_v5, %v2092_v33  ;;  %v764_v22 = vrot.slane %v750_v6, %v2092_v33 }
 0x1db   : > { %v527_v14 = vrot.slane %v519_v7, %v2092_v33  ;;  %v534_v15 = vrot.slane %v520_v8, %v2092_v33  ;;  %v543_v16 = vrot.slane %v535_v9, %v2092_v33  ;;  %v550_v17 = vrot.slane %v536_v10, %v2092_v33 }
 0x1dc   : > { %v765_v18 = vcombine.low %v741_v11, %v757_v12  ;;  %v766_v20 = vcombine.high %v741_v11, %v757_v12  ;;  %v767_v43 = vcombine.low %v748_v21, %v764_v22  ;;  %v768_v44 = vcombine.high %v748_v21, %v764_v22 }
 0x1dd   : > { %v555_v26 = vcombine.low %v527_v14, %v534_v15  ;;  %v1740_v28 = vcombine.high %v527_v14, %v534_v15  ;;  %v571_v29 = vcombine.low %v543_v16, %v550_v17  ;;  %v1741_v31 = vcombine.high %v543_v16, %v550_v17 }
 0x1de   : > { %v921_v32 = vpack.c.bf16 %v765_v18, %v765_v18  ;;  %v922_v34 = vpack.c.bf16 %v766_v20, %v766_v20  ;;  %v923_v51 = vpack.c.bf16 %v767_v43, %v767_v43  ;;  %v924_v52 = vpack.c.bf16 %v768_v44, %v768_v44 }
 0x1df   : > { %v562_v35 = vrot.slane %v555_v26, %v2079_v27  ;;  %v570_v36 = vrot.slane %v1740_v28, %v2079_v27  ;;  %v578_v37 = vrot.slane %v571_v29, %v2079_v27  ;;  %v586_v38 = vrot.slane %v1741_v31, %v2079_v27 }
 0x1e0   : > { %v930_v39 = vsel %vm925_vm2, %v921_v32, 0  ;;  %v976_v40 = vsel %vm925_vm2, %v922_v34, 0  ;;  %v1022_v57 = vsel %vm925_vm2, %v923_v51, 0  ;;  %v1068_v58 = vsel %vm925_vm2, %v924_v52, 0 }
 0x1e1   : > { %v587_v41 = vcombine.low %v562_v35, %v570_v36  ;;  %v603_v42 = vcombine.low %v578_v37, %v586_v38  ;;  %1806 = vmatpush3.bf16.xpose.msra.mxu0 %v930_v39  ;;  %1812 = vmatpush3.bf16.xpose.msra.mxu1 %v976_v40  ;;  %v588_v45 = vcombine.high %v562_v35, %v570_v36  ;;  %vm1115_vm3 = vcmp.eq.s32.totalorder %v1114_v63, 0 }
 0x1e2   : > { %1817 = vmatprep.subr.bf16.mxu0 %v1946_v2  ;;  %v604_v46 = vcombine.high %v578_v37, %v586_v38  ;;  %1823 = vmatprep.subr.bf16.mxu1 %v1946_v2  ;;  %v1119_v0 = vsub.s32 0, %v2072_v23  ;;  %v1953_v1 = vmov 0   ;;  %v1128_v6 = vand.u32 127, %v492_v19 }
 0x1e3   : > { %v595_v47 = vrot.slane %v587_v41, %v2092_v33  ;;  %v611_v48 = vrot.slane %v603_v42, %v2092_v33  ;;  %v602_v55 = vrot.slane %v588_v45, %v2092_v33  ;;  %v1116_v4 = vsel %vm1115_vm3, 1, %v1953_v1 }
 0x1e4   : > { %v618_v56 = vrot.slane %v604_v46, %v2092_v33  ;;  %v1120_v5 = vrot.slane %v1116_v4, %v1119_v0  ;;  %vm1129_vm5 = vcmp.gt.s32.totalorder %v1128_v6, %v2072_v23 }
 0x1e5   : > { %v619_v49 = vcombine.low %v595_v47, %v611_v48  ;;  %v620_v50 = vcombine.high %v595_v47, %v611_v48 }
 0x1e6   : > { %v621_v59 = vcombine.low %v602_v55, %v618_v56  ;;  %v622_v60 = vcombine.high %v602_v55, %v618_v56  ;;  %vm1121_vm4 = vcmp.eq.s32.totalorder %v1120_v5, 1 }
 0x1e7   : > { %v917_v53 = vpack.c.bf16 %v619_v49, %v619_v49  ;;  %v918_v54 = vpack.c.bf16 %v620_v50, %v620_v50  ;;  %vm2155_vm6 = vmor %vm1121_vm4, %vm1129_vm5 }
 0x1e8   : > { %v919_v61 = vpack.c.bf16 %v621_v59, %v621_v59  ;;  %v920_v62 = vpack.c.bf16 %v622_v60, %v622_v60 }
 0x1e9   : > { %1808 = vmatmul.mubr.msk.bf16.vlgmr.msra.gmra.mrb[4].mxu0 %vm925_vm2, %v917_v53  ;;  %1814 = vmatmul.mubr.msk.bf16.vlgmr.msra.gmra.mrb[4].mxu1 %vm925_vm2, %v918_v54 }
 0x1ea   : > { %1818 = vmatpush3.bf16.xpose.msra.mxu0 %v1022_v57  ;;  %1824 = vmatpush3.bf16.xpose.msra.mxu1 %v1068_v58 }
 0x1eb   : > { %1819 = vmatprep.mubr.msk.bf16.mxu0 %vm1947_vm0, %v1946_v2  ;;  %1825 = vmatprep.mubr.msk.bf16.mxu1 %vm1947_vm0, %v1946_v2 }
 0x1ec   : > { %1829 = vmatprep.subr.bf16.mxu0 %v1946_v2  ;;  %1835 = vmatprep.subr.bf16.mxu1 %v1946_v2 }
 0x1f1   : > { %1820 = vmatmul.mubr.msk.bf16.vlgmr.msra.gmra.mrb[8].mxu0 %vm925_vm2, %v919_v61  ;;  %1826 = vmatmul.mubr.msk.bf16.vlgmr.msra.gmra.mrb[8].mxu1 %vm925_vm2, %v920_v62 }
 0x1f2   : > { %1831 = vmatprep.mubr.msk.bf16.mxu0 %vm1947_vm0, %v1946_v2  ;;  %1837 = vmatprep.mubr.msk.bf16.mxu1 %vm1947_vm0, %v1946_v2 }
 0x2bc   : > { %v966_v7 = vpop.f32.mrb[4].mxu0  ;;  %v1012_v8 = vpop.f32.mrb[4].mxu1 }
 0x2bd   : > { %v1110_v10 = vmul.f32 0.17677669, %v966_v7  ;;  %v1111_v11 = vmul.f32 0.17677669, %v1012_v8  ;;  %v1809_v12 = vpop.f32.mrb[5].mxu0  ;;  %v1815_v14 = vpop.f32.mrb[5].mxu1 }
 0x2be   : > { %v969_v15 = vpop.f32.mrb[6].mxu0  ;;  %v1015_v16 = vpop.f32.mrb[6].mxu1 }
 0x2bf   : > { %v1810_v17 = vpop.f32.mrb[7].mxu0  ;;  %v1816_v18 = vpop.f32.mrb[7].mxu1  ;;  %v1134_v19 = vsel %vm2155_vm6, -1e+30, %v1111_v11  ;;  %v1133_v23 = vsel %vm2155_vm6, -1e+30, %v1110_v10 }
 0x2c0   : > { %v1140_v20 = vsel %vm925_vm2, %v1134_v19, -inf  ;;  %v1137_v21 = vsel %vm925_vm2, %v1133_v23, -inf }
 0x2c1   : > { %1141 = vmax.xlane.f32.xlu1 %v1140_v20  ;;  %1138 = vmax.xlane.f32.xlu0 %v1137_v21 }
 0x2c4   : > { %v1058_v22 = vpop.f32.mrb[8].mxu0  ;;  %v1104_v26 = vpop.f32.mrb[8].mxu1 }
 0x2c5   : > { %v1112_v28 = vmul.f32 0.17677669, %v1058_v22  ;;  %v1113_v29 = vmul.f32 0.17677669, %v1104_v26  ;;  %v1821_v31 = vpop.f32.mrb[9].mxu0  ;;  %v1827_v32 = vpop.f32.mrb[9].mxu1 }
 0x2c6   : > { %v1061_v34 = vpop.f32.mrb[10].mxu0  ;;  %v1107_v35 = vpop.f32.mrb[10].mxu1 }
 0x2c7   : > { %v1822_v36 = vpop.f32.mrb[11].mxu0  ;;  %v1828_v37 = vpop.f32.mrb[11].mxu1  ;;  %v1135_v38 = vsel %vm2155_vm6, -1e+30, %v1112_v28  ;;  %v1136_v40 = vsel %vm2155_vm6, -1e+30, %v1113_v29 }
 0x2c8   : > { %v1143_v39 = vsel %vm925_vm2, %v1135_v38, -inf  ;;  %v1146_v41 = vsel %vm925_vm2, %v1136_v40, -inf }
 0x2c9   : > { %1144 = vmax.xlane.f32.xlu0 %v1143_v39 }
 0x2cd   : > { %1147 = vmax.xlane.f32.xlu0 %v1146_v41 }
 0x2d2   : > { %769 = vrot.lane.b32.xlu1 %v2063_v13, %s1945_s11 }
 0x34e   : > { %v1142_v42 = vpop.xlane.xlu1 %1141  ;;  %v1139_v43 = vpop.xlane.xlu0 %1138 }
 0x34f   : > { %v1150_v44 = vsub.f32 %v1134_v19, %v1142_v42  ;;  %v1149_v45 = vsub.f32 %v1133_v23, %v1139_v43 }
 0x351   : > { %v1155_v46 = vmul.f32 1.442695, %v1150_v44  ;;  %v1153_v47 = vmul.f32 1.442695, %v1149_v45 }
 0x353   : > { %1901 = vpow2.f32 %v1155_v46 }
 0x354   : > { %1903 = vpow2.f32 %v1153_v47 }
 0x356   : > { %v1145_v13 = vpop.xlane.xlu0 %1144 }
 0x357   : > { %v1151_v52 = vsub.f32 %v1135_v38, %v1145_v13 }
 0x359   : > { %v1157_v54 = vmul.f32 1.442695, %v1151_v52 }
 0x35a   : > { %v1148_v53 = vpop.xlane.xlu0 %1147 }
 0x35b   : > { %v1152_v55 = vsub.f32 %v1136_v40, %v1148_v53  ;;  %1905 = vpow2.f32 %v1157_v54 }
 0x35d   : > { %v2173_v48 = vpop.eup %1901  ;;  %v1159_v56 = vmul.f32 1.442695, %v1152_v55 }
 0x35e   : > { %v2175_v49 = vpop.eup %1903  ;;  %v1164_v50 = vsel %vm925_vm2, %v2173_v48, 0.0 }
 0x35f   : > { %v1161_v51 = vsel %vm925_vm2, %v2175_v49, 0.0  ;;  %1165 = vadd.xlane.f32.xlu0 %v1164_v50  ;;  %1907 = vpow2.f32 %v1159_v56 }
 0x360   : > { %1162 = vadd.xlane.f32.xlu1 %v1161_v51 }
 0x365   : > { %v2187_v57 = vpop.eup %1905 }
 0x366   : > { %v1167_v58 = vsel %vm925_vm2, %v2187_v57, 0.0 }
 0x371   : > { %773 = vrot.lane.b32.xlu1 %v2085_v30, %s1945_s11  ;;  %v2191_v30 = vpop.eup %1907 }
 0x375   : > { %775 = vrot.lane.b32.xlu1 %v2074_v24, %s1945_s11  ;;  %771 = vrot.lane.b32.xlu0 %v2076_v25, %s1945_s11  ;;  %v1170_v24 = vsel %vm925_vm2, %v2191_v30, 0.0  ;;  %v770_v25 = vpop.permute.xlu1 %769 }
 0x394   : > { %1168 = vadd.xlane.f32.xlu0 %v1167_v58 }
 0x399   : > { %1171 = vadd.xlane.f32.xlu1 %v1170_v24 }
 0x3ec   : > { %v1166_v60 = vpop.xlane.xlu0 %1165 }
 0x3ed   : > { %v1163_v59 = vpop.xlane.xlu1 %1162  ;;  %1909 = vrcp.f32 %v1166_v60 }
 0x3ee   : > { %1911 = vrcp.f32 %v1163_v59 }
 0x3f0   : > { %v772_v0 = vpop.permute.xlu0 %771 }
 0x3f1   : > { %v774_v61 = vpop.permute.xlu1 %773 }
 0x3f2   : > { %v781_v62 = vcombine.low %v770_v25, %v774_v61  ;;  %v782_v63 = vcombine.high %v770_v25, %v774_v61 }
 0x3f4   : > { %v789_v6 = vrot.slane %v781_v62, %v2079_v27  ;;  %v796_v7 = vrot.slane %v782_v63, %v2079_v27 }
 0x3f5   : > { %v776_v1 = vpop.permute.xlu1 %775 }
 0x3f6   : > { %v797_v4 = vcombine.low %v772_v0, %v776_v1  ;;  %v798_v5 = vcombine.high %v772_v0, %v776_v1 }
 0x3f7   : > { %v1910_v36 = vpop.eup %1909 }
 0x3f8   : > { %v805_v8 = vrot.slane %v797_v4, %v2079_v27  ;;  %v812_v9 = vrot.slane %v798_v5, %v2079_v27  ;;  %v1912_v41 = vpop.eup %1911  ;;  %v1178_v47 = vmul.f32 %v1910_v36, %v2173_v48 }
 0x3f9   : > { %v1177_v46 = vmul.f32 %v1912_v41, %v2175_v49 }
 0x3fa   : > { %v813_v10 = vcombine.low %v789_v6, %v805_v8  ;;  %v814_v11 = vcombine.high %v789_v6, %v805_v8  ;;  %v829_v12 = vcombine.low %v796_v7, %v812_v9  ;;  %v830_v14 = vcombine.high %v796_v7, %v812_v9 }
 0x3fb   : > { %v1181_v55 = vpack.c.bf16 %v1177_v46, %v1177_v46  ;;  %v1182_v56 = vpack.c.bf16 %v1178_v47, %v1178_v47 }
 0x3fc   : > { %v821_v15 = vrot.slane %v813_v10, %v2092_v33  ;;  %v828_v16 = vrot.slane %v814_v11, %v2092_v33  ;;  %v837_v17 = vrot.slane %v829_v12, %v2092_v33  ;;  %v844_v18 = vrot.slane %v830_v14, %v2092_v33 }
 0x3fe   : > { %v849_v19 = vcombine.low %v821_v15, %v828_v16  ;;  %v1744_v23 = vcombine.high %v821_v15, %v828_v16  ;;  %v865_v20 = vcombine.low %v837_v17, %v844_v18  ;;  %v1745_v21 = vcombine.high %v837_v17, %v844_v18 }
 0x400   : > { %v856_v22 = vrot.slane %v849_v19, %v2079_v27  ;;  %v864_v26 = vrot.slane %v1744_v23, %v2079_v27  ;;  %v872_v28 = vrot.slane %v865_v20, %v2079_v27  ;;  %v880_v29 = vrot.slane %v1745_v21, %v2079_v27 }
 0x402   : > { %v881_v31 = vcombine.low %v856_v22, %v864_v26  ;;  %v897_v32 = vcombine.low %v872_v28, %v880_v29  ;;  %v882_v34 = vcombine.high %v856_v22, %v864_v26  ;;  %v898_v35 = vcombine.high %v872_v28, %v880_v29  ;;  %v1899_v28 = vld [vmem:[%s2287_s4] sm:$0xff]  }
 0x404   : > { %v889_v37 = vrot.slane %v881_v31, %v2092_v33  ;;  %v905_v38 = vrot.slane %v897_v32, %v2092_v33  ;;  %v896_v39 = vrot.slane %v882_v34, %v2092_v33  ;;  %v912_v40 = vrot.slane %v898_v35, %v2092_v33 }
 0x406   : > { %v913_v42 = vcombine.low %v889_v37, %v905_v38  ;;  %v914_v43 = vcombine.high %v889_v37, %v905_v38  ;;  %v915_v44 = vcombine.low %v896_v39, %v912_v40  ;;  %v916_v45 = vcombine.high %v896_v39, %v912_v40  ;;  %v1900_v39 = vld [vmem:[%s2287_s4 + $0x8] sm:$0xff]  }
 0x408   : > { %v1185_v50 = vpack.c.bf16 %v913_v42, %v913_v42  ;;  %v1186_v51 = vpack.c.bf16 %v914_v43, %v914_v43  ;;  %v1187_v53 = vpack.c.bf16 %v915_v44, %v915_v44  ;;  %v1188_v54 = vpack.c.bf16 %v916_v45, %v916_v45 }
 0x40a   : > { %v1194_v13 = vsel %vm1192_vm7, %v1185_v50, 0  ;;  %v1240_v52 = vsel %vm1192_vm7, %v1186_v51, 0  ;;  %v1286_v48 = vsel %vm1192_vm7, %v1187_v53, 0  ;;  %v1332_v49 = vsel %vm1192_vm7, %v1188_v54, 0 }
 0x40b   : > { %1830 = vmatpush3.bf16.msra.mxu0 %v1194_v13  ;;  %1836 = vmatpush3.bf16.msra.mxu1 %v1240_v52 }
 0x40c   : > { %1841 = vmatprep.subr.bf16.mxu0 %v1946_v2  ;;  %1847 = vmatprep.subr.bf16.mxu1 %v1946_v2 }
 0x40e   : > { %1832 = vmatmul.mubr.msk.bf16.vlgmr.msra.gmra.mrb[12].mxu0 %vm925_vm2, %v1181_v55  ;;  %1838 = vmatmul.mubr.msk.bf16.vlgmr.msra.gmra.mrb[12].mxu1 %vm925_vm2, %v1182_v56 }
 0x40f   : > { %1842 = vmatpush3.bf16.msra.mxu0 %v1286_v48  ;;  %1848 = vmatpush3.bf16.msra.mxu1 %v1332_v49 }
 0x410   : > { %1843 = vmatprep.mubr.msk.bf16.mxu0 %vm1947_vm0, %v1946_v2  ;;  %1849 = vmatprep.mubr.msk.bf16.mxu1 %vm1947_vm0, %v1946_v2 }
 0x411   : > { %1853 = vmatprep.subr.bf16.mxu0 %v1946_v2 }
 0x421   : > { %v1169_v58 = vpop.xlane.xlu0 %1168 }
 0x422   : > { %1913 = vrcp.f32 %v1169_v58 }
 0x426   : > { %v1172_v24 = vpop.xlane.xlu1 %1171 }
 0x427   : > { %1915 = vrcp.f32 %v1172_v24 }
 0x42c   : > { %v1914_v25 = vpop.eup %1913 }
 0x42d   : > { %v1179_v59 = vmul.f32 %v1914_v25, %v2187_v57 }
 0x42f   : > { %v1183_v60 = vpack.c.bf16 %v1179_v59, %v1179_v59 }
 0x431   : > { %v1916_v61 = vpop.eup %1915  ;;  %1844 = vmatmul.mubr.msk.bf16.vlgmr.msra.gmra.mrb[16].mxu0 %vm925_vm2, %v1183_v60 }
 0x432   : > { %v1180_v62 = vmul.f32 %v1916_v61, %v2191_v30  ;;  %1857 = vmatprep.mubr.msk.bf16.mxu0 %vm1947_vm0, %v1946_v2  ;;  %1854 = vmatpush3.bf16.msra.mxu0 %v1899_v28 }
 0x433   : > { %1855 = vmatprep.subr.bf16.mxu0 %v1946_v2 }
 0x434   : > { %v1184_v63 = vpack.c.bf16 %v1180_v62, %v1180_v62  ;;  %v1756_v62 = vld [vmem:[%s2288_s5] ss:$0 sm:$0xff] }
 0x436   : > { %1850 = vmatmul.mubr.msk.bf16.vlgmr.msra.gmra.mrb[16].mxu1 %vm925_vm2, %v1184_v63  ;;  %1856 = vmatpush3.bf16.msra.mxu0 %v1900_v39 }
 0x4e1   : > { %v1230_v0 = vpop.f32.mrb[12].mxu0  ;;  %v1276_v1 = vpop.f32.mrb[12].mxu1 }
 0x4e2   : > { %v1833_v4 = vpop.f32.mrb[13].mxu0  ;;  %v1839_v5 = vpop.f32.mrb[13].mxu1 }
 0x4e3   : > { %v1233_v6 = vpop.f32.mrb[14].mxu0  ;;  %v1279_v7 = vpop.f32.mrb[14].mxu1 }
 0x4e4   : > { %v1834_v8 = vpop.f32.mrb[15].mxu0  ;;  %v1840_v57 = vpop.f32.mrb[15].mxu1 }
 0x504   : > { %v1322_v9 = vpop.f32.mrb[16].mxu0 }
 0x505   : > { %v1374_v10 = vcombine.low %v1230_v0, %v1322_v9  ;;  %v1375_v11 = vcombine.high %v1230_v0, %v1322_v9  ;;  %v1845_v12 = vpop.f32.mrb[17].mxu0 }
 0x506   : > { %v1325_v14 = vpop.f32.mrb[18].mxu0 }
 0x507   : > { %v1846_v30 = vpop.f32.mrb[19].mxu0  ;;  %v1382_v23 = vrot.slane %v1374_v10, %v2079_v27  ;;  %v1389_v20 = vrot.slane %v1375_v11, %v2079_v27 }
 0x509   : > { %v1368_v15 = vpop.f32.mrb[16].mxu1 }
 0x50a   : > { %v1390_v16 = vcombine.low %v1276_v1, %v1368_v15  ;;  %v1391_v17 = vcombine.high %v1276_v1, %v1368_v15  ;;  %v1851_v18 = vpop.f32.mrb[17].mxu1 }
 0x50b   : > { %v1371_v19 = vpop.f32.mrb[18].mxu1 }
 0x50c   : > { %v1398_v21 = vrot.slane %v1390_v16, %v2079_v27  ;;  %v1405_v22 = vrot.slane %v1391_v17, %v2079_v27  ;;  %v1852_v26 = vpop.f32.mrb[19].mxu1 }
 0x50e   : > { %v1406_v29 = vcombine.low %v1382_v23, %v1398_v21  ;;  %v1407_v31 = vcombine.high %v1382_v23, %v1398_v21  ;;  %v1422_v32 = vcombine.low %v1389_v20, %v1405_v22  ;;  %v1423_v34 = vcombine.high %v1389_v20, %v1405_v22  ;;  %v1760_v23 = vld [vmem:[%s2289_s6] ss:$0 sm:$0xff] }
 0x50f   : > { %v1761_v21 = vld [vmem:[%s2290_s7] ss:$0 sm:$0xff] }
 0x510   : > { %v1414_v35 = vrot.slane %v1406_v29, %v2092_v33  ;;  %v1421_v36 = vrot.slane %v1407_v31, %v2092_v33  ;;  %v1430_v37 = vrot.slane %v1422_v32, %v2092_v33  ;;  %v1437_v38 = vrot.slane %v1423_v34, %v2092_v33 }
 0x512   : > { %v1442_v40 = vcombine.low %v1414_v35, %v1421_v36  ;;  %v1754_v41 = vcombine.high %v1414_v35, %v1421_v36  ;;  %v1458_v42 = vcombine.low %v1430_v37, %v1437_v38  ;;  %v1755_v43 = vcombine.high %v1430_v37, %v1437_v38 }
 0x514   : > { %v1449_v44 = vrot.slane %v1442_v40, %v2079_v27  ;;  %v1457_v45 = vrot.slane %v1754_v41, %v2079_v27  ;;  %v1465_v46 = vrot.slane %v1458_v42, %v2079_v27  ;;  %v1473_v47 = vrot.slane %v1755_v43, %v2079_v27 }
 0x516   : > { %v1475_v50 = vcombine.high %v1449_v44, %v1457_v45  ;;  %v1491_v51 = vcombine.high %v1465_v46, %v1473_v47  ;;  %v1474_v2 = vcombine.low %v1449_v44, %v1457_v45  ;;  %v1490_v13 = vcombine.low %v1465_v46, %v1473_v47 }
 0x518   : > { %v1489_v52 = vrot.slane %v1475_v50, %v2092_v33  ;;  %v1505_v53 = vrot.slane %v1491_v51, %v2092_v33  ;;  %v1482_v54 = vrot.slane %v1474_v2, %v2092_v33  ;;  %v1498_v55 = vrot.slane %v1490_v13, %v2092_v33 }
 0x51a   : > { %v1508_v56 = vcombine.low %v1489_v52, %v1505_v53  ;;  %v1507_v48 = vcombine.high %v1482_v54, %v1498_v55  ;;  %v1509_v49 = vcombine.high %v1489_v52, %v1505_v53  ;;  %v1506_v58 = vcombine.low %v1482_v54, %v1498_v55 }
 0x51c   : > { %1515 = vrot.lane.b32.xlu1 %v1508_v56, %s1954_s12  ;;  %1511 = vrot.lane.b32.xlu0 %v1507_v48, %s1955_s13 }
 0x520   : > { %1519 = vrot.lane.b32.xlu0 %v1509_v49, %s1956_s15 }
 0x58e   : > { %v1512_v27 = vpop.permute.xlu0 %1511  ;;  %v1516_v24 = vpop.permute.xlu1 %1515 }
 0x58f   : > { %v1522_v25 = vsel %vm925_vm2, %v1506_v58, %v1512_v27 }
 0x590   : > { %v1524_v60 = vsel %vm1523_vm8, %v1522_v25, %v1516_v24 }
 0x592   : > { %v1520_v59 = vpop.permute.xlu0 %1519 }
 0x593   : > { %v1526_v61 = vsel %vm1525_vm9, %v1524_v60, %v1520_v59 }
 0x594   : > { %v1527_v33 = vpack.c.bf16 %v1526_v61, %v1526_v61 }
 0x596   : > { %1858 = vmatmul.mubr.msk.bf16.vlgmr.msra.gmra.mrb[20].mxu0 %vm383_vm1, %v1527_v33 }
 0x669   : > { %v1588_v63 = vpop.f32.mrb[20].mxu0 }
 0x66a   : > { %v1589_v0 = vadd.f32 %v1756_v62, %v1588_v63  ;;  %v1859_v1 = vpop.f32.mrb[21].mxu0 }
 0x66b   : > { %v1591_v4 = vpop.f32.mrb[22].mxu0 }
 0x66c   : > { %v1860_v5 = vpop.f32.mrb[23].mxu0  ;;  %v1594_v6 = vadd.f32 %v1589_v0, %v2044_v3 }
 0x66e   : > { %v1595_v7 = vsel %vm383_vm1, %v1594_v6, 0.0 }
 0x66f   : > { %1596 = vadd.xlane.f32.xlu1 %v1595_v7 }
 0x6fc   : > { %v1597_v8 = vpop.xlane.xlu1 %1596 }
 0x6fd   : > { %v1599_v57 = vmul.f32 0.03125, %v1597_v8 }
 0x6ff   : > { %v1600_v9 = vsub.f32 %v1594_v6, %v1599_v57 }
 0x701   : > { %v1601_v10 = vmul.f32 %v1600_v9, %v1600_v9 }
 0x703   : > { %v1602_v11 = vsel %vm383_vm1, %v1601_v10, 0.0 }
 0x704   : > { %1603 = vadd.xlane.f32.xlu0 %v1602_v11 }
 0x791   : > { %v1604_v12 = vpop.xlane.xlu0 %1603 }
 0x792   : > { %v1605_v14 = vmul.f32 0.032258064, %v1604_v12 }
 0x794   : > { %1917 = vrsqrt.f32 %v1605_v14  ;;  %vm1608_vm10 = vcmp.eq.f32.partialorder %v1605_v14, inf  ;;  %v1611_v16 = vand.u32 2147483648, %v1605_v14  ;;  %vm1610_vm11 = vcmp.eq.f32.partialorder %v1605_v14, 0.0 }
 0x79e   : > { %v1918_v30 = vpop.eup %1917 }
 0x79f   : > { %v1607_v15 = vmul.f32 %v1918_v30, %v1605_v14 }
 0x7a1   : > { %v1609_v17 = vsel %vm1608_vm10, %v1605_v14, %v1607_v15 }
 0x7a2   : > { %v1612_v3 = vsel %vm1610_vm11, %v1611_v16, %v1609_v17 }
 0x7a3   : > { %v1613_v18 = vadd.f32 0.001, %v1612_v3 }
 0x7a5   : > { %1919 = vrcp.f32 %v1613_v18 }
 0x7af   : > { %v1920_v19 = vpop.eup %1919 }
 0x7b0   : > { %v1615_v20 = vmul.f32 %v1920_v19, %v1600_v9 }
 0x7b2   : > { %v1623_v22 = vmul.f32 %v1760_v23, %v1615_v20 }
 0x7b4   : > { %v1631_v26 = vadd.f32 %v1761_v21, %v1623_v22 }
 0x7b6   : > { %1632 = vst.msk [vmem:[%s362_s24] sm:$0xff] %vm383_vm1, %v1631_v26 }
 0x7b7 PF: > { %s18_s29 = sadd.s32 1, %s1943_s29   ;;  %s2294_s27 = smov %s1939_s28 }
 0x7b8   : > { %p15_p5 = scmp.ge.s32.totalorder %s18_s29, 4   ;;  %s2295_s28 = smov %s2297_s30 }
 0x7ba   :  { %17 = sbr.rel (!%p15_p5) target bundleno = 2 (0x2), region = 88 }

// kernel: transformer_forward.11
= control target key start
LH: loop header
LB: loop body
LE: loop exit
PB: predicated region body
PF: predicated region fallthrough
CT: control target
= control target key end

     0   :  { %s2430_s27 = smov 0   ;;  %s2432_s28 = smov 0   ;;  %s2812_s0 = inlined_call_operand.vmem [shape: f32[2,10,32], index: 0, kind: input, shape index: {}, may-alias: {0,1}]   ;;  %s2813_s1 = inlined_call_operand.vmem [shape: f32[2,10,32], index: 1, kind: input, shape index: {}, may-alias: {0,1}]   ;;  %s2814_s2 = inlined_call_operand.vmem [shape: s32[2,1,10], index: 2, kind: input, shape index: {}]   ;;  %s2815_s3 = inlined_call_operand.vmem [shape: bf16[32,96], index: 3, kind: input, shape index: {}]   ;;  %s2816_s4 = inlined_call_operand.vmem [shape: bf16[32,32], index: 4, kind: input, shape index: {}]   ;;  %s2817_s5 = inlined_call_operand.vmem [shape: f32[1,32], index: 5, kind: input, shape index: {}]   ;;  %s2818_s6 = inlined_call_operand.vmem [shape: f32[1,32], index: 6, kind: input, shape index: {}]   ;;  %s2819_s7 = inlined_call_operand.vmem [shape: f32[1,32], index: 7, kind: input, shape index: {}]   ;;  %s2820_s8 = inlined_call_operand.vmem [shape: f32[2,10,32], index: 8, kind: output, shape index: {}]  }
   0x1   :  { %s2434_s29 = smov 0  }
   0x2 LB: > { %s30_s30 = sadd.s32 1, %s2367_s28  ;;  %p2117_p0 = scmp.ge.s32.totalorder %s2371_s29, 1  ;;  %s2371_s29 = sphi %s2434_s29, %s18_s29   ;;  %s2367_s28 = sphi %s2432_s28, %s2822_s28   ;;  %s2363_s27 = sphi %s2430_s27, %s2821_s27  }
   0x3   : > { %p32_p1 = scmp.ge.s32.totalorder %s30_s30, 2  ;;  %p301_p2 = scmp.lt.s32.totalorder %s2371_s29, 3 }
   0x5   : > { %s2824_s30 = smov (%p32_p1, %s30_s30), 0  ;;  %p302_p3 = pnand %p2117_p0, %p301_p2 }
   0x6   : > { %v2303_v0 = vld [vmem:[%s2815_s3] sm:$0xff] (!%p302_p3)   ;;  %s2373_s11 = smov (!%p302_p3), 96   ;;  %v2304_v1 = vld [vmem:[%s2815_s3 + $0x8] sm:$0xff] (!%p302_p3)   ;;  %v2374_v2 = vmov (!%p302_p3), 0.0   ;;  %p352_p4 = scmp.lt.s32.totalorder (!%p302_p3), %s2363_s27, 1  ;;  %vm2375_vm0 = vmmov (!%p302_p3), 0   ;;  %v522_v21 = vlaneseq (!%p302_p3) }
   0x7   : > { %305 = sbr.rel (%p302_p3) target bundleno = 1991 (0x7c7), region = 52  ;;  %447 = vrot.lane.b32.xlu0 (!%p302_p3), %v2303_v0, %s2373_s11  ;;  %2180 = vmatprep.subr.bf16.mxu0 (!%p302_p3), %v2374_v2  ;;  %vm401_vm1 = vcmask (!%p302_p3), 261120   ;;  %s2376_s21 = smov (!%p302_p3), 120   ;;  %v2379_v19 = vmov (!%p302_p3), 1983009808   ;;  %vm1148_vm2 = vcmask (!%p302_p3), 64512  }
   0x8   : > { %2181 = vmatpush3.bf16.msra.mxu0 (!%p302_p3), %v2303_v0  ;;  %2184 = vmatprep.mubr.msk.bf16.mxu0 (!%p302_p3), %vm2375_vm0, %v2374_v2  ;;  %s2377_s22 = smov (!%p302_p3), 112   ;;  %s2378_s23 = smov (!%p302_p3), 104   ;;  %v520_v20 = vunpack.c.l.s4 (!%p302_p3), %v2379_v19  ;;  %v2380_v24 = vmov (!%p302_p3), 1934713408   ;;  %v2511_v27 = vshrl.u32 (!%p302_p3), %v522_v21, 7  ;;  %vm1361_vm5 = vcmask (!%p302_p3), 80896  }
   0x9   : > { %2182 = vmatprep.subr.bf16.mxu0 (!%p302_p3), %v2374_v2  ;;  %2188 = vmatprep.subr.bf16.mxu1 (!%p302_p3), %v2374_v2  ;;  %v552_v25 = vunpack.c.l.s4 (!%p302_p3), %v2380_v24  ;;  %vm1365_vm6 = vcmask (!%p302_p3), 74752   ;;  %vm1462_vm7 = vcmask (!%p302_p3), 1044480   ;;  %s2382_s12 = smov (!%p302_p3), 16   ;;  %s2383_s13 = smov (!%p302_p3), 8   ;;  %vm1867_vm8 = vcmask (!%p302_p3), 130048  }
   0xa   : > { %2192 = vmatprep.mubr.msk.bf16.mxu1 (!%p302_p3), %vm2375_vm0, %v2374_v2  ;;  %v521_v26 = vunpack.c.0.s8 (!%p302_p3), %v520_v20  ;;  %s2384_s15 = smov (!%p302_p3), 24   ;;  %vm1870_vm9 = vcmask (!%p302_p3), 195584   ;;  %vm1946_vm10 = vcmask (!%p302_p3), 254976  }
   0xb   : > { %449 = vrot.lane.b32.xlu0 (!%p302_p3), %v2304_v1, %s2373_s11  ;;  %v553_v30 = vunpack.c.0.s8 (!%p302_p3), %v552_v25 }
   0xc   : > { %2183 = vmatpush3.bf16.msra.mxu0 (!%p302_p3), %v2304_v1  ;;  %v2518_v31 = vsub.s32 (!%p302_p3), %v521_v26, %v2511_v27 }
   0xd   : > { %2196 = vmatprep.subr.bf16.mxu0 (!%p302_p3), %v2374_v2  ;;  %v2533_v38 = vsub.s32 (!%p302_p3), %v553_v30, %v2511_v27 }
   0xe   : > { %s2826_s27 = smov (!%p352_p4, %s2363_s27), 1 }
   0xf   : > { %s2466_s14 = sshll.u32 %s2826_s27, 4  ;;  %s368_s26 = scalar_lea.vmem %s2814_s2, %s2826_s27 }
  0x10   : > { %s2472_s17 = scalar_lea.vmem %s2812_s0, %s2466_s14  ;;  %s365_s20 = scalar_lea.vmem %s2813_s1, %s2466_s14 }
  0x11   : > { %v380_v3 = vld [vmem:[%s2472_s17] sm:$0xff]  ;;  %v381_v4 = vld [vmem:[%s2472_s17 + $0x8] sm:$0x3]  ;;  %s377_s24 = scalar_lea.vmem %s2820_s8, %s2466_s14 }
  0x12   : > { %v388_v5 = vpack.c.bf16 %v381_v4, %v380_v3  ;;  %v382_v7 = vld [vmem:[%s365_s20] sm:$0xff]  ;;  %v383_v8 = vld [vmem:[%s365_s20 + $0x8] sm:$0x3] }
  0x13   : > { %v446_v10 = vpack.c.bf16 %v383_v8, %v382_v7 }
  0x14   : > { %2185 = vmatmul.mubr.msk.bf16.vlgmr.msra.gmra.mrb[0].mxu0 %vm401_vm1, %v388_v5 }
  0x15   : > { %2198 = vmatprep.mubr.msk.bf16.mxu0 %vm2375_vm0, %v2374_v2 }
  0x79   : > { %v448_v6 = vpop.permute.xlu0 %447 }
  0x7a   : > { %2189 = vmatpush3.bf16.msra.mxu1 %v448_v6 }
  0x7b   : > { %2190 = vmatprep.subr.bf16.mxu1 %v2374_v2 }
  0x7d   : > { %v450_v9 = vpop.permute.xlu0 %449 }
  0x7e   : > { %2191 = vmatpush3.bf16.msra.mxu1 %v450_v9 }
  0x7f   : > { %2202 = vmatprep.subr.bf16.mxu1 %v2374_v2 }
  0x81   : > { %2193 = vmatmul.mubr.msk.bf16.vlgmr.msra.gmra.mrb[0].mxu1 %vm401_vm1, %v446_v10 }
  0x82   : > { %2204 = vmatprep.mubr.msk.bf16.mxu1 %vm2375_vm0, %v2374_v2 }
  0xe7   : > { %v2489_v11 = vpop.f32.mrb[0].mxu0 }
  0xe8   : > { %v2186_v12 = vpop.f32.mrb[1].mxu0  ;;  %499 = vrot.lane.b32.xlu0 %v2489_v11, %s2376_s21 }
  0xe9   : > { %v2492_v13 = vpop.f32.mrb[2].mxu0 }
  0xea   : > { %v2187_v14 = vpop.f32.mrb[3].mxu0  ;;  %501 = vrot.lane.b32.xlu1 %v2492_v13, %s2376_s21 }
 0x154   : > { %v2495_v15 = vpop.f32.mrb[0].mxu1 }
 0x155   : > { %v2194_v16 = vpop.f32.mrb[1].mxu1  ;;  %718 = vrot.lane.b32.xlu0 %v2495_v15, %s2377_s22  ;;  %712 = vrot.lane.b32.xlu1 %v2495_v15, %s2376_s21 }
 0x156   : > { %v2499_v17 = vpop.f32.mrb[2].mxu1 }
 0x157   : > { %v2195_v18 = vpop.f32.mrb[3].mxu1 }
 0x159   : > { %724 = vrot.lane.b32.xlu0 %v2495_v15, %s2378_s23  ;;  %714 = vrot.lane.b32.xlu1 %v2499_v17, %s2376_s21 }
 0x15a   : > { %v500_v22 = vpop.permute.xlu0 %499 }
 0x15c   : > { %v2509_v23 = vpop.permute.xlu1 %501 }
 0x15d   : > { %505 = vrot.lane.b32.xlu0 %v2489_v11, %s2377_s22  ;;  %720 = vrot.lane.b32.xlu1 %v2499_v17, %s2377_s22 }
 0x161   : > { %511 = vrot.lane.b32.xlu0 %v2489_v11, %s2378_s23  ;;  %726 = vrot.lane.b32.xlu1 %v2499_v17, %s2378_s23 }
 0x165   : > { %507 = vrot.lane.b32.xlu1 %v2492_v13, %s2377_s22 }
 0x169   : > { %513 = vrot.lane.b32.xlu1 %v2492_v13, %s2378_s23 }
 0x1c7   : > { %v2513_v28 = vpop.permute.xlu0 %718  ;;  %v2515_v29 = vpop.permute.xlu1 %712 }
 0x1c8   : > { %v730_v32 = vcombine.low %v2495_v15, %v2513_v28  ;;  %v731_v33 = vcombine.high %v2495_v15, %v2513_v28 }
 0x1ca   : > { %v738_v39 = vrot.slane %v730_v32, %v2518_v31  ;;  %v745_v40 = vrot.slane %v731_v33, %v2518_v31 }
 0x1cb   : > { %v2524_v34 = vpop.permute.xlu0 %724  ;;  %v2526_v35 = vpop.permute.xlu1 %714 }
 0x1cc   : > { %v746_v36 = vcombine.low %v2515_v29, %v2524_v34  ;;  %v747_v37 = vcombine.high %v2515_v29, %v2524_v34 }
 0x1ce   : > { %v754_v41 = vrot.slane %v746_v36, %v2518_v31  ;;  %v761_v42 = vrot.slane %v747_v37, %v2518_v31 }
 0x1cf   : > { %v506_v43 = vpop.permute.xlu0 %505  ;;  %v2539_v44 = vpop.permute.xlu1 %720 }
 0x1d0   : > { %v762_v45 = vcombine.low %v738_v39, %v754_v41  ;;  %v763_v46 = vcombine.high %v738_v39, %v754_v41  ;;  %v778_v47 = vcombine.low %v745_v40, %v761_v42  ;;  %v779_v48 = vcombine.high %v745_v40, %v761_v42 }
 0x1d1   : > { %v517_v49 = vcombine.low %v2489_v11, %v506_v43  ;;  %v518_v54 = vcombine.high %v2489_v11, %v506_v43  ;;  %v798_v55 = vcombine.low %v2499_v17, %v2539_v44 }
 0x1d2   : > { %v770_v50 = vrot.slane %v762_v45, %v2533_v38  ;;  %v777_v51 = vrot.slane %v763_v46, %v2533_v38  ;;  %v786_v52 = vrot.slane %v778_v47, %v2533_v38  ;;  %v793_v53 = vrot.slane %v779_v48, %v2533_v38 }
 0x1d3   : > { %v512_v56 = vpop.permute.xlu0 %511  ;;  %v2549_v57 = vpop.permute.xlu1 %726  ;;  %v525_v62 = vrot.slane %v517_v49, %v2518_v31  ;;  %v532_v7 = vrot.slane %v518_v54, %v2518_v31  ;;  %v805_v12 = vrot.slane %v798_v55, %v2518_v31 }
 0x1d4   : > { %v822_v58 = vcombine.low %v770_v50, %v777_v51  ;;  %v2130_v59 = vcombine.high %v770_v50, %v777_v51  ;;  %v838_v60 = vcombine.low %v786_v52, %v793_v53  ;;  %v2131_v61 = vcombine.high %v786_v52, %v793_v53 }
 0x1d5   : > { %v533_v63 = vcombine.low %v500_v22, %v512_v56  ;;  %v534_v0 = vcombine.high %v500_v22, %v512_v56  ;;  %v806_v1 = vcombine.low %v2526_v35, %v2549_v57 }
 0x1d6   : > { %v829_v3 = vrot.slane %v822_v58, %v2518_v31  ;;  %v837_v4 = vrot.slane %v2130_v59, %v2518_v31  ;;  %v845_v5 = vrot.slane %v838_v60, %v2518_v31  ;;  %v853_v6 = vrot.slane %v2131_v61, %v2518_v31 }
 0x1d7   : > { %v541_v8 = vrot.slane %v533_v63, %v2518_v31  ;;  %v548_v9 = vrot.slane %v534_v0, %v2518_v31  ;;  %v813_v10 = vrot.slane %v806_v1, %v2518_v31  ;;  %v508_v11 = vpop.permute.xlu1 %507 }
 0x1d8   : > { %v585_v14 = vcombine.low %v2492_v13, %v508_v11  ;;  %v854_v16 = vcombine.low %v829_v3, %v837_v4  ;;  %v870_v24 = vcombine.low %v845_v5, %v853_v6  ;;  %v855_v25 = vcombine.high %v829_v3, %v837_v4 }
 0x1d9   : > { %v549_v18 = vcombine.low %v525_v62, %v541_v8  ;;  %v550_v19 = vcombine.high %v525_v62, %v541_v8  ;;  %v565_v20 = vcombine.low %v532_v7, %v548_v9  ;;  %v566_v21 = vcombine.high %v532_v7, %v548_v9 }
 0x1da   : > { %v814_v22 = vcombine.low %v805_v12, %v813_v10  ;;  %v592_v13 = vrot.slane %v585_v14, %v2518_v31  ;;  %v862_v40 = vrot.slane %v854_v16, %v2533_v38  ;;  %v878_v49 = vrot.slane %v870_v24, %v2533_v38 }
 0x1db   : > { %v557_v26 = vrot.slane %v549_v18, %v2533_v38  ;;  %v564_v30 = vrot.slane %v550_v19, %v2533_v38  ;;  %v573_v32 = vrot.slane %v565_v20, %v2533_v38  ;;  %v580_v33 = vrot.slane %v566_v21, %v2533_v38  ;;  %v514_v36 = vpop.permute.xlu1 %513 }
 0x1dc   : > { %v821_v37 = vrot.slane %v814_v22, %v2533_v38  ;;  %v593_v39 = vcombine.low %v2509_v23, %v514_v36  ;;  %v869_v55 = vrot.slane %v855_v25, %v2533_v38  ;;  %v871_v56 = vcombine.high %v845_v5, %v853_v6 }
 0x1dd   : > { %v609_v41 = vcombine.low %v557_v26, %v564_v30  ;;  %v2128_v42 = vcombine.high %v557_v26, %v564_v30  ;;  %v625_v43 = vcombine.low %v573_v32, %v580_v33  ;;  %v2129_v45 = vcombine.high %v573_v32, %v580_v33 }
 0x1de   : > { %v896_v46 = vrot.slane %v821_v37, %v2518_v31  ;;  %v897_v47 = vcombine.high %v821_v37, %v2374_v2  ;;  %v600_v48 = vrot.slane %v593_v39, %v2518_v31  ;;  %v885_v0 = vrot.slane %v871_v56, %v2533_v38 }
 0x1df   : > { %v616_v50 = vrot.slane %v609_v41, %v2518_v31  ;;  %v624_v51 = vrot.slane %v2128_v42, %v2518_v31  ;;  %v632_v23 = vrot.slane %v625_v43, %v2518_v31  ;;  %v640_v52 = vrot.slane %v2129_v45, %v2518_v31 }
 0x1e0   : > { %v601_v53 = vcombine.low %v592_v13, %v600_v48  ;;  %v904_v54 = vrot.slane %v897_v47, %v2518_v31  ;;  %v886_v3 = vcombine.low %v862_v40, %v878_v49  ;;  %v887_v4 = vcombine.high %v862_v40, %v878_v49 }
 0x1e1   : > { %v641_v58 = vcombine.low %v616_v50, %v624_v51  ;;  %v642_v59 = vcombine.high %v616_v50, %v624_v51  ;;  %v657_v60 = vcombine.low %v632_v23, %v640_v52  ;;  %v658_v61 = vcombine.high %v632_v23, %v640_v52  ;;  %v1345_v51 = vld [vmem:[%s368_s26] sm:$0x1] }
 0x1e2   : > { %v608_v62 = vrot.slane %v601_v53, %v2533_v38  ;;  %v905_v63 = vcombine.low %v896_v46, %v904_v54  ;;  %v906_v1 = vcombine.high %v896_v46, %v904_v54  ;;  %v888_v11 = vcombine.low %v869_v55, %v885_v0 }
 0x1e3   : > { %v649_v7 = vrot.slane %v641_v58, %v2533_v38  ;;  %v656_v8 = vrot.slane %v642_v59, %v2533_v38  ;;  %v665_v6 = vrot.slane %v657_v60, %v2533_v38  ;;  %v672_v10 = vrot.slane %v658_v61, %v2533_v38 }
 0x1e4   : > { %v684_v9 = vcombine.high %v608_v62, %v2374_v2  ;;  %v913_v5 = vrot.slane %v905_v63, %v2533_v38  ;;  %v920_v12 = vrot.slane %v906_v1, %v2533_v38  ;;  %v683_v14 = vrot.slane %v608_v62, %v2518_v31 }
 0x1e5   : > { %v889_v21 = vcombine.high %v869_v55, %v885_v0  ;;  %v673_v32 = vcombine.low %v649_v7, %v665_v6  ;;  %v675_v39 = vcombine.low %v656_v8, %v672_v10  ;;  %v674_v40 = vcombine.high %v649_v7, %v665_v6 }
 0x1e6   : > { %v691_v16 = vrot.slane %v684_v9, %v2518_v31  ;;  %v1144_v18 = vpack.c.bf16 %v913_v5, %v886_v3  ;;  %v921_v19 = vcombine.high %v913_v5, %v2374_v2  ;;  %v1146_v20 = vpack.c.bf16 %v920_v12, %v888_v11 }
 0x1e7   : > { %v922_v22 = vcombine.high %v920_v12, %v2374_v2  ;;  %v676_v41 = vcombine.high %v656_v8, %v672_v10  ;;  %vm1346_vm3 = vcmp.eq.s32.totalorder %v1345_v51, 0  ;;  %v1350_v23 = vsub.s32 0, %v2511_v27 }
 0x1e8   : > { %v692_v24 = vcombine.low %v683_v14, %v691_v16  ;;  %v693_v25 = vcombine.high %v683_v14, %v691_v16  ;;  %v1153_v26 = vsel %vm1148_vm2, %v1144_v18, 0  ;;  %v1145_v30 = vpack.c.bf16 %v921_v19, %v887_v4 }
 0x1e9   : > { %2197 = vmatpush3.bf16.xpose.msra.mxu0 %v1153_v26  ;;  %v1147_v33 = vpack.c.bf16 %v922_v22, %v889_v21  ;;  %v1247_v49 = vsel %vm1148_vm2, %v1146_v20, 0  ;;  %v2381_v52 = vmov 0  }
 0x1ea   : > { %v700_v36 = vrot.slane %v692_v24, %v2533_v38  ;;  %v707_v37 = vrot.slane %v693_v25, %v2533_v38  ;;  %v1200_v13 = vsel %vm1148_vm2, %v1145_v30, 0  ;;  %2208 = vmatprep.subr.bf16.mxu0 %v2374_v2  ;;  %v1347_v53 = vsel %vm1346_vm3, 1, %v2381_v52 }
 0x1eb   : > { %2203 = vmatpush3.bf16.xpose.msra.mxu1 %v1200_v13  ;;  %v1294_v50 = vsel %vm1148_vm2, %v1147_v33, 0  ;;  %v1351_v54 = vrot.slane %v1347_v53, %v1350_v23 }
 0x1ec   : > { %v1140_v42 = vpack.c.bf16 %v700_v36, %v673_v32  ;;  %v708_v43 = vcombine.high %v700_v36, %v2374_v2  ;;  %2214 = vmatprep.subr.bf16.mxu1 %v2374_v2  ;;  %v1142_v45 = vpack.c.bf16 %v707_v37, %v675_v39  ;;  %v709_v46 = vcombine.high %v707_v37, %v2374_v2 }
 0x1ed   : > { %vm1352_vm4 = vcmp.eq.s32.totalorder %v1351_v54, 1 }
 0x1ee   : > { %v1141_v47 = vpack.c.bf16 %v708_v43, %v674_v40  ;;  %v1143_v48 = vpack.c.bf16 %v709_v46, %v676_v41 }
 0x1f0   : > { %2199 = vmatmul.mubr.msk.bf16.vlgmr.msra.gmra.mrb[4].mxu0 %vm1148_vm2, %v1140_v42 }
 0x1f1   : > { %2209 = vmatpush3.bf16.xpose.msra.mxu0 %v1247_v49  ;;  %2210 = vmatprep.mubr.msk.bf16.mxu0 %vm2375_vm0, %v2374_v2 }
 0x1f2   : > { %2205 = vmatmul.mubr.msk.bf16.vlgmr.msra.gmra.mrb[4].mxu1 %vm1148_vm2, %v1141_v47  ;;  %2220 = vmatprep.subr.bf16.mxu0 %v2374_v2 }
 0x1f3   : > { %2215 = vmatpush3.bf16.xpose.msra.mxu1 %v1294_v50  ;;  %2216 = vmatprep.mubr.msk.bf16.mxu1 %vm2375_vm0, %v2374_v2 }
 0x1f4   : > { %2226 = vmatprep.subr.bf16.mxu1 %v2374_v2 }
 0x1f8   : > { %2211 = vmatmul.mubr.msk.bf16.vlgmr.msra.gmra.mrb[8].mxu0 %vm1148_vm2, %v1142_v45 }
 0x1f9   : > { %2222 = vmatprep.mubr.msk.bf16.mxu0 %vm2375_vm0, %v2374_v2 }
 0x1fa   : > { %2217 = vmatmul.mubr.msk.bf16.vlgmr.msra.gmra.mrb[8].mxu1 %vm1148_vm2, %v1143_v48 }
 0x1fb   : > { %2228 = vmatprep.mubr.msk.bf16.mxu1 %vm2375_vm0, %v2374_v2 }
 0x2c3   : > { %v1189_v55 = vpop.f32.mrb[4].mxu0 }
 0x2c4   : > { %v1337_v56 = vmul.f32 0.17677669, %v1189_v55  ;;  %v2200_v58 = vpop.f32.mrb[5].mxu0 }
 0x2c5   : > { %v1192_v59 = vpop.f32.mrb[6].mxu0  ;;  %v1236_v60 = vpop.f32.mrb[4].mxu1 }
 0x2c6   : > { %v1338_v61 = vmul.f32 0.17677669, %v1192_v59  ;;  %v1339_v62 = vmul.f32 0.17677669, %v1236_v60  ;;  %v2201_v63 = vpop.f32.mrb[7].mxu0  ;;  %v2206_v0 = vpop.f32.mrb[5].mxu1 }
 0x2c7   : > { %v1239_v1 = vpop.f32.mrb[6].mxu1  ;;  %v1353_v3 = vsel %vm1352_vm4, -1e+30, %v1337_v56 }
 0x2c8   : > { %v1340_v4 = vmul.f32 0.17677669, %v1239_v1  ;;  %v2207_v27 = vpop.f32.mrb[7].mxu1  ;;  %v1362_v7 = vsel %vm1361_vm5, %v1353_v3, -inf  ;;  %v1354_v8 = vsel %vm1352_vm4, -1e+30, %v1338_v61 }
 0x2c9   : > { %1363 = vmax.xlane.f32.xlu0 %v1362_v7  ;;  %v1366_v9 = vsel %vm1365_vm6, %v1354_v8, -inf  ;;  %v1355_v5 = vsel %vm1352_vm4, -1e+30, %v1339_v62 }
 0x2ca   : > { %1367 = vmax.xlane.f32.xlu1 %v1366_v9  ;;  %v1356_v6 = vsel %vm1352_vm4, -1e+30, %v1340_v4  ;;  %v1369_v12 = vsel %vm1361_vm5, %v1355_v5, -inf }
 0x2cb   : > { %v1283_v10 = vpop.f32.mrb[8].mxu0  ;;  %v1372_v25 = vsel %vm1365_vm6, %v1356_v6, -inf }
 0x2cc   : > { %v1341_v11 = vmul.f32 0.17677669, %v1283_v10  ;;  %v2212_v14 = vpop.f32.mrb[9].mxu0 }
 0x2cd   : > { %1370 = vmax.xlane.f32.xlu0 %v1369_v12  ;;  %v1286_v16 = vpop.f32.mrb[10].mxu0  ;;  %v1330_v18 = vpop.f32.mrb[8].mxu1 }
 0x2ce   : > { %v1342_v19 = vmul.f32 0.17677669, %v1286_v16  ;;  %v1343_v20 = vmul.f32 0.17677669, %v1330_v18  ;;  %v2213_v21 = vpop.f32.mrb[11].mxu0  ;;  %v2218_v22 = vpop.f32.mrb[9].mxu1 }
 0x2cf   : > { %v1333_v24 = vpop.f32.mrb[10].mxu1  ;;  %v1357_v26 = vsel %vm1352_vm4, -1e+30, %v1341_v11 }
 0x2d0   : > { %v1344_v30 = vmul.f32 0.17677669, %v1333_v24  ;;  %v2219_v32 = vpop.f32.mrb[11].mxu1  ;;  %v1375_v33 = vsel %vm1361_vm5, %v1357_v26, -inf  ;;  %v1359_v36 = vsel %vm1352_vm4, -1e+30, %v1343_v20 }
 0x2d1   : > { %1373 = vmax.xlane.f32.xlu0 %v1372_v25  ;;  %1376 = vmax.xlane.f32.xlu1 %v1375_v33  ;;  %v2636_v37 = vsel %vm1352_vm4, -1e+30, %v1342_v19  ;;  %v1381_v39 = vsel %vm1361_vm5, %v1359_v36, -inf }
 0x2d2   : > { %v1360_v13 = vsel %vm1352_vm4, -1e+30, %v1344_v30  ;;  %v1378_v40 = vsel %vm1365_vm6, %v2636_v37, -inf }
 0x2d3   : > { %v1384_v41 = vsel %vm1365_vm6, %v1360_v13, -inf }
 0x2d5   : > { %1382 = vmax.xlane.f32.xlu1 %v1381_v39  ;;  %1379 = vmax.xlane.f32.xlu0 %v1378_v40 }
 0x2d9   : > { %1385 = vmax.xlane.f32.xlu0 %v1384_v41 }
 0x2e6   : > { %923 = vrot.lane.b32.xlu1 %v2495_v15, %s2373_s11 }
 0x2ea   : > { %927 = vrot.lane.b32.xlu1 %v2515_v29, %s2373_s11 }
 0x2ee   : > { %929 = vrot.lane.b32.xlu1 %v2526_v35, %s2373_s11 }
 0x2ef   : > { %925 = vrot.lane.b32.xlu0 %v2499_v17, %s2373_s11 }
 0x2f2   : > { %933 = vrot.lane.b32.xlu1 %v2539_v44, %s2373_s11 }
 0x2f3   : > { %931 = vrot.lane.b32.xlu0 %v2513_v28, %s2373_s11 }
 0x2f7   : > { %935 = vrot.lane.b32.xlu0 %v2524_v34, %s2373_s11 }
 0x356   : > { %v1364_v42 = vpop.xlane.xlu0 %1363 }
 0x357   : > { %v1387_v15 = vsub.f32 %v1353_v3, %v1364_v42  ;;  %v1368_v43 = vpop.xlane.xlu1 %1367 }
 0x358   : > { %v1388_v45 = vsub.f32 %v1354_v8, %v1368_v43 }
 0x359   : > { %v1395_v29 = vmul.f32 1.442695, %v1387_v15 }
 0x35a   : > { %v1397_v46 = vmul.f32 1.442695, %v1388_v45  ;;  %v1371_v47 = vpop.xlane.xlu0 %1370 }
 0x35b   : > { %2307 = vpow2.f32 %v1395_v29  ;;  %v1389_v35 = vsub.f32 %v1355_v5, %v1371_v47 }
 0x35c   : > { %2309 = vpow2.f32 %v1397_v46 }
 0x35d   : > { %v1399_v17 = vmul.f32 1.442695, %v1389_v35 }
 0x35e   : > { %v1374_v48 = vpop.xlane.xlu0 %1373  ;;  %v1377_v49 = vpop.xlane.xlu1 %1376 }
 0x35f   : > { %2311 = vpow2.f32 %v1399_v17  ;;  %v1390_v44 = vsub.f32 %v1356_v6, %v1374_v48  ;;  %v1391_v50 = vsub.f32 %v1357_v26, %v1377_v49 }
 0x361   : > { %v1401_v28 = vmul.f32 1.442695, %v1390_v44  ;;  %v1403_v51 = vmul.f32 1.442695, %v1391_v50 }
 0x362   : > { %v1383_v23 = vpop.xlane.xlu1 %1382  ;;  %v1380_v34 = vpop.xlane.xlu0 %1379 }
 0x363   : > { %2313 = vpow2.f32 %v1401_v28  ;;  %v1393_v52 = vsub.f32 %v1359_v36, %v1383_v23  ;;  %v1392_v5 = vsub.f32 %v2636_v37, %v1380_v34 }
 0x364   : > { %2315 = vpow2.f32 %v1403_v51 }
 0x365   : > { %v2657_v53 = vpop.eup %2307  ;;  %v1407_v54 = vmul.f32 1.442695, %v1393_v52  ;;  %v1405_v6 = vmul.f32 1.442695, %v1392_v5 }
 0x366   : > { %v2659_v55 = vpop.eup %2309  ;;  %v1386_v56 = vpop.xlane.xlu0 %1385  ;;  %v1411_v58 = vsel %vm1361_vm5, %v2657_v53, 0.0 }
 0x367   : > { %v1394_v59 = vsub.f32 %v1360_v13, %v1386_v56  ;;  %1412 = vadd.xlane.f32.xlu1 %v1411_v58  ;;  %v1414_v60 = vsel %vm1365_vm6, %v2659_v55, 0.0  ;;  %2317 = vpow2.f32 %v1407_v54  ;;  %v924_v14 = vpop.permute.xlu1 %923 }
 0x368   : > { %1415 = vadd.xlane.f32.xlu0 %v1414_v60 }
 0x369   : > { %v2665_v61 = vpop.eup %2311  ;;  %v1409_v62 = vmul.f32 1.442695, %v1394_v59 }
 0x36a   : > { %v1417_v63 = vsel %vm1361_vm5, %v2665_v61, 0.0  ;;  %v926_v12 = vpop.permute.xlu0 %925 }
 0x36b   : > { %1418 = vadd.xlane.f32.xlu1 %v1417_v63  ;;  %2319 = vpow2.f32 %v1409_v62  ;;  %v928_v18 = vpop.permute.xlu1 %927 }
 0x36c   : > { %2321 = vpow2.f32 %v1405_v6 }
 0x36d   : > { %v2669_v0 = vpop.eup %2313 }
 0x36e   : > { %v1420_v1 = vsel %vm1365_vm6, %v2669_v0, 0.0  ;;  %v2673_v3 = vpop.eup %2315  ;;  %v932_v16 = vpop.permute.xlu0 %931 }
 0x36f   : > { %1421 = vadd.xlane.f32.xlu0 %v1420_v1  ;;  %v1423_v4 = vsel %vm1361_vm5, %v2673_v3, 0.0  ;;  %v930_v20 = vpop.permute.xlu1 %929  ;;  %v947_v24 = vcombine.low %v924_v14, %v932_v16 }
 0x371   : > { %v2677_v27 = vpop.eup %2317  ;;  %v955_v30 = vrot.slane %v947_v24, %v2518_v31 }
 0x372   : > { %v1429_v7 = vsel %vm1361_vm5, %v2677_v27, 0.0  ;;  %v936_v19 = vpop.permute.xlu0 %935 }
 0x373   : > { %1424 = vadd.xlane.f32.xlu0 %v1423_v4  ;;  %v963_v21 = vcombine.low %v928_v18, %v936_v19  ;;  %v964_v22 = vcombine.high %v928_v18, %v936_v19  ;;  %v934_v32 = vpop.permute.xlu1 %933 }
 0x374   : > { %v1015_v46 = vcombine.low %v926_v12, %v934_v32 }
 0x375   : > { %v2681_v8 = vpop.eup %2319  ;;  %v971_v25 = vrot.slane %v963_v21, %v2518_v31  ;;  %v978_v26 = vrot.slane %v964_v22, %v2518_v31 }
 0x376   : > { %v1432_v9 = vsel %vm1365_vm6, %v2681_v8, 0.0  ;;  %v2688_v10 = vpop.eup %2321  ;;  %v1022_v28 = vrot.slane %v1015_v46, %v2518_v31 }
 0x377   : > { %1430 = vadd.xlane.f32.xlu0 %v1429_v7  ;;  %v1426_v11 = vsel %vm1365_vm6, %v2688_v10, 0.0  ;;  %v979_v36 = vcombine.low %v955_v30, %v971_v25  ;;  %v980_v37 = vcombine.high %v955_v30, %v971_v25 }
 0x379   : > { %v987_v41 = vrot.slane %v979_v36, %v2533_v38  ;;  %v994_v42 = vrot.slane %v980_v37, %v2533_v38 }
 0x37b   : > { %1433 = vadd.xlane.f32.xlu0 %v1432_v9  ;;  %v1039_v47 = vcombine.low %v987_v41, %v994_v42  ;;  %v2132_v35 = vcombine.high %v987_v41, %v994_v42 }
 0x37c   : > { %937 = vrot.lane.b32.xlu1 %v2549_v57, %s2373_s11  ;;  %v948_v57 = vcombine.high %v924_v14, %v932_v16 }
 0x37d   : > { %v1046_v51 = vrot.slane %v1039_v47, %v2518_v31  ;;  %v1054_v23 = vrot.slane %v2132_v35, %v2518_v31 }
 0x37e   : > { %v962_v33 = vrot.slane %v948_v57, %v2518_v31 }
 0x37f   : > { %v1071_v60 = vcombine.low %v1046_v51, %v1054_v23  ;;  %v1072_v1 = vcombine.high %v1046_v51, %v1054_v23 }
 0x380   : > { %v995_v13 = vcombine.low %v962_v33, %v978_v26  ;;  %v996_v39 = vcombine.high %v962_v33, %v978_v26 }
 0x381   : > { %v1079_v6 = vrot.slane %v1071_v60, %v2533_v38  ;;  %v1086_v14 = vrot.slane %v1072_v1, %v2533_v38 }
 0x382   : > { %v1003_v15 = vrot.slane %v995_v13, %v2533_v38  ;;  %v1010_v43 = vrot.slane %v996_v39, %v2533_v38 }
 0x384   : > { %v1055_v17 = vcombine.low %v1003_v15, %v1010_v43  ;;  %v2133_v48 = vcombine.high %v1003_v15, %v1010_v43 }
 0x386   : > { %v1062_v34 = vrot.slane %v1055_v17, %v2518_v31  ;;  %v1070_v52 = vrot.slane %v2133_v48, %v2518_v31 }
 0x388   : > { %v1087_v62 = vcombine.low %v1062_v34, %v1070_v52  ;;  %v1088_v4 = vcombine.high %v1062_v34, %v1070_v52 }
 0x38a   : > { %v1102_v16 = vrot.slane %v1088_v4, %v2533_v38 }
 0x38c   : > { %v1105_v30 = vcombine.low %v1086_v14, %v1102_v16 }
 0x3a0   : > { %1427 = vadd.xlane.f32.xlu1 %v1426_v11  ;;  %v1095_v11 = vrot.slane %v1087_v62, %v2533_v38 }
 0x3a2   : > { %v1103_v22 = vcombine.low %v1079_v6, %v1095_v11  ;;  %v1104_v26 = vcombine.high %v1079_v6, %v1095_v11 }
 0x3f4   : > { %v1413_v40 = vpop.xlane.xlu1 %1412 }
 0x3f5   : > { %v1416_v45 = vpop.xlane.xlu0 %1415 }
 0x3f6   : > { %2323 = vrcp.f32 %v1416_v45 }
 0x3f7   : > { %2325 = vrcp.f32 %v1413_v40  ;;  %v1106_v40 = vcombine.high %v1086_v14, %v1102_v16 }
 0x3f8   : > { %v1419_v29 = vpop.xlane.xlu1 %1418 }
 0x3fc   : > { %v938_v49 = vpop.permute.xlu1 %937  ;;  %v1422_v44 = vpop.xlane.xlu0 %1421 }
 0x3fd   : > { %v1023_v50 = vcombine.low %v930_v20, %v938_v49  ;;  %2327 = vrcp.f32 %v1422_v44 }
 0x3fe   : > { %2329 = vrcp.f32 %v1419_v29 }
 0x3ff   : > { %v1030_v54 = vrot.slane %v1023_v50, %v2518_v31 }
 0x400   : > { %v2706_v56 = vpop.xlane.xlu0 %1424  ;;  %v2324_v20 = vpop.eup %2323 }
 0x401   : > { %v1031_v58 = vcombine.low %v1022_v28, %v1030_v54  ;;  %v2326_v21 = vpop.eup %2325  ;;  %v1444_v32 = vmul.f32 %v2324_v20, %v2659_v55 }
 0x402   : > { %v1443_v39 = vmul.f32 %v2326_v21, %v2657_v53 }
 0x403   : > { %v1038_v59 = vrot.slane %v1031_v58, %v2533_v38 }
 0x404   : > { %v1431_v63 = vpop.xlane.xlu0 %1430  ;;  %v1451_v29 = vpack.c.bf16 %v1444_v32, %v1443_v39 }
 0x405   : > { %v1114_v7 = vcombine.high %v1038_v59, %v2374_v2  ;;  %v1113_v9 = vrot.slane %v1038_v59, %v2518_v31 }
 0x407   : > { %v1121_v5 = vrot.slane %v1114_v7, %v2518_v31  ;;  %v2328_v25 = vpop.eup %2327 }
 0x408   : > { %v1434_v12 = vpop.xlane.xlu0 %1433  ;;  %v2330_v13 = vpop.eup %2329  ;;  %v1446_v41 = vmul.f32 %v2328_v25, %v2669_v0 }
 0x409   : > { %v1122_v18 = vcombine.low %v1113_v9, %v1121_v5  ;;  %v1123_v19 = vcombine.high %v1113_v9, %v1121_v5  ;;  %2331 = vrcp.f32 %v1434_v12  ;;  %v1445_v45 = vmul.f32 %v2330_v13, %v2665_v61 }
 0x40a   : > { %2333 = vrcp.f32 %v1431_v63 }
 0x40b   : > { %v1130_v24 = vrot.slane %v1122_v18, %v2533_v38  ;;  %v1137_v57 = vrot.slane %v1123_v19, %v2533_v38  ;;  %v1452_v47 = vpack.c.bf16 %v1446_v41, %v1445_v45  ;;  %2335 = vrcp.f32 %v2706_v56 }
 0x40d   : > { %v1455_v33 = vpack.c.bf16 %v1130_v24, %v1103_v22  ;;  %v1138_v36 = vcombine.high %v1130_v24, %v2374_v2  ;;  %v1139_v37 = vcombine.high %v1137_v57, %v2374_v2  ;;  %v1457_v43 = vpack.c.bf16 %v1137_v57, %v1105_v30 }
 0x40f   : > { %v1464_v42 = vsel %vm1462_vm7, %v1455_v33, 0  ;;  %v1456_v15 = vpack.c.bf16 %v1138_v36, %v1104_v26  ;;  %v1458_v46 = vpack.c.bf16 %v1139_v37, %v1106_v40  ;;  %v1558_v53 = vsel %vm1462_vm7, %v1457_v43, 0 }
 0x410   : > { %2221 = vmatpush3.bf16.msra.mxu0 %v1464_v42 }
 0x411   : > { %v1511_v55 = vsel %vm1462_vm7, %v1456_v15, 0  ;;  %2232 = vmatprep.subr.bf16.mxu0 %v2374_v2  ;;  %v1605_v61 = vsel %vm1462_vm7, %v1458_v46, 0 }
 0x412   : > { %2227 = vmatpush3.bf16.msra.mxu1 %v1511_v55 }
 0x413   : > { %2223 = vmatmul.mubr.msk.bf16.vlgmr.msra.gmra.mrb[12].mxu0 %vm1361_vm5, %v1451_v29  ;;  %2238 = vmatprep.subr.bf16.mxu1 %v2374_v2  ;;  %v2332_v0 = vpop.eup %2331 }
 0x414   : > { %2233 = vmatpush3.bf16.msra.mxu0 %v1558_v53  ;;  %2234 = vmatprep.mubr.msk.bf16.mxu0 %vm2375_vm0, %v2374_v2  ;;  %v2334_v35 = vpop.eup %2333  ;;  %v1450_v17 = vmul.f32 %v2332_v0, %v2681_v8 }
 0x415   : > { %2229 = vmatmul.mubr.msk.bf16.vlgmr.msra.gmra.mrb[12].mxu1 %vm1361_vm5, %v1452_v47  ;;  %2244 = vmatprep.subr.bf16.mxu0 %v2374_v2  ;;  %v1449_v48 = vmul.f32 %v2334_v35, %v2677_v27  ;;  %v2336_v50 = vpop.eup %2335  ;;  %v2305_v35 = vld [vmem:[%s2816_s4] sm:$0xff]  }
 0x416   : > { %2239 = vmatpush3.bf16.msra.mxu1 %v1605_v61  ;;  %2240 = vmatprep.mubr.msk.bf16.mxu1 %vm2375_vm0, %v2374_v2  ;;  %v1447_v51 = vmul.f32 %v2336_v50, %v2673_v3 }
 0x417   : > { %v1454_v49 = vpack.c.bf16 %v1450_v17, %v1449_v48 }
 0x41d   : > { %2241 = vmatmul.mubr.msk.bf16.vlgmr.msra.gmra.mrb[16].mxu1 %vm1361_vm5, %v1454_v49 }
 0x42d   : > { %v1428_v44 = vpop.xlane.xlu1 %1427 }
 0x42e   : > { %2337 = vrcp.f32 %v1428_v44 }
 0x438   : > { %v2338_v28 = vpop.eup %2337 }
 0x439   : > { %v1448_v23 = vmul.f32 %v2338_v28, %v2688_v10 }
 0x43b   : > { %v1453_v34 = vpack.c.bf16 %v1448_v23, %v1447_v51 }
 0x43d   : > { %2235 = vmatmul.mubr.msk.bf16.vlgmr.msra.gmra.mrb[16].mxu0 %vm1361_vm5, %v1453_v34 }
 0x43e   : > { %2248 = vmatprep.mubr.msk.bf16.mxu0 %vm2375_vm0, %v2374_v2  ;;  %2245 = vmatpush3.bf16.msra.mxu0 %v2305_v35 }
 0x43f   : > { %2246 = vmatprep.subr.bf16.mxu0 %v2374_v2 }
 0x4e6   : > { %v1500_v27 = vpop.f32.mrb[12].mxu0 }
 0x4e7   : > { %v2224_v8 = vpop.f32.mrb[13].mxu0 }
 0x4e8   : > { %v1503_v52 = vpop.f32.mrb[14].mxu0  ;;  %v1547_v54 = vpop.f32.mrb[12].mxu1 }
 0x4e9   : > { %v2225_v58 = vpop.f32.mrb[15].mxu0  ;;  %v2230_v56 = vpop.f32.mrb[13].mxu1 }
 0x4ea   : > { %v1550_v59 = vpop.f32.mrb[14].mxu1  ;;  %v2306_v58 = vld [vmem:[%s2816_s4 + $0x8] sm:$0xff]  }
 0x4eb   : > { %v2231_v60 = vpop.f32.mrb[15].mxu1  ;;  %2247 = vmatpush3.bf16.msra.mxu0 %v2306_v58  ;;  %v2149_v58 = vld [vmem:[%s2819_s7] ss:$0 sm:$0xff] }
 0x4f0   : > { %v1641_v62 = vpop.f32.mrb[16].mxu1 }
 0x4f1   : > { %v1664_v63 = vcombine.low %v1547_v54, %v1641_v62  ;;  %v1665_v1 = vcombine.high %v1547_v54, %v1641_v62  ;;  %v2242_v3 = vpop.f32.mrb[17].mxu1 }
 0x4f2   : > { %v1644_v4 = vpop.f32.mrb[18].mxu1 }
 0x4f3   : > { %v1724_v10 = vcombine.low %v1550_v59, %v1644_v4  ;;  %v2243_v7 = vpop.f32.mrb[19].mxu1  ;;  %v1672_v12 = vrot.slane %v1664_v63, %v2518_v31  ;;  %v1679_v16 = vrot.slane %v1665_v1, %v2518_v31 }
 0x4f5   : > { %v1731_v26 = vrot.slane %v1724_v10, %v2518_v31 }
 0x510   : > { %v1594_v9 = vpop.f32.mrb[16].mxu0 }
 0x511   : > { %v1648_v5 = vcombine.low %v1500_v27, %v1594_v9  ;;  %v1649_v6 = vcombine.high %v1500_v27, %v1594_v9  ;;  %v2236_v11 = vpop.f32.mrb[17].mxu0 }
 0x512   : > { %v1597_v14 = vpop.f32.mrb[18].mxu0 }
 0x513   : > { %v1656_v18 = vrot.slane %v1648_v5, %v2518_v31  ;;  %v1663_v19 = vrot.slane %v1649_v6, %v2518_v31  ;;  %v1716_v20 = vcombine.low %v1503_v52, %v1597_v14  ;;  %v2237_v21 = vpop.f32.mrb[19].mxu0 }
 0x515   : > { %v1680_v22 = vcombine.low %v1656_v18, %v1672_v12  ;;  %v1681_v24 = vcombine.high %v1656_v18, %v1672_v12  ;;  %v1696_v57 = vcombine.low %v1663_v19, %v1679_v16  ;;  %v1697_v25 = vcombine.high %v1663_v19, %v1679_v16 }
 0x516   : > { %v1723_v30 = vrot.slane %v1716_v20, %v2518_v31  ;;  %v2144_v20 = vld [vmem:[%s2817_s5] ss:$0 sm:$0xff] }
 0x517   : > { %v1688_v32 = vrot.slane %v1680_v22, %v2533_v38  ;;  %v1695_v33 = vrot.slane %v1681_v24, %v2533_v38  ;;  %v1704_v36 = vrot.slane %v1696_v57, %v2533_v38  ;;  %v1711_v37 = vrot.slane %v1697_v25, %v2533_v38 }
 0x518   : > { %v1732_v13 = vcombine.low %v1723_v30, %v1731_v26  ;;  %v2347_v30 = vld [vmem:[%s2472_s17] sm:$0xff] }
 0x519   : > { %v1740_v39 = vcombine.low %v1688_v32, %v1695_v33  ;;  %v2142_v40 = vcombine.high %v1688_v32, %v1695_v33  ;;  %v1756_v41 = vcombine.low %v1704_v36, %v1711_v37  ;;  %v2143_v42 = vcombine.high %v1704_v36, %v1711_v37  ;;  %v2348_v36 = vld [vmem:[%s2472_s17 + $0x8] sm:$0x3] }
 0x51a   : > { %v1739_v15 = vrot.slane %v1732_v13, %v2533_v38 }
 0x51b   : > { %v1747_v43 = vrot.slane %v1740_v39, %v2518_v31  ;;  %v1755_v45 = vrot.slane %v2142_v40, %v2518_v31  ;;  %v1763_v55 = vrot.slane %v1756_v41, %v2518_v31  ;;  %v1771_v29 = vrot.slane %v2143_v42, %v2518_v31 }
 0x51c   : > { %v1815_v46 = vcombine.high %v1739_v15, %v2374_v2  ;;  %v1814_v17 = vrot.slane %v1739_v15, %v2518_v31 }
 0x51d   : > { %v1773_v53 = vcombine.high %v1747_v43, %v1755_v45  ;;  %v1789_v47 = vcombine.high %v1763_v55, %v1771_v29  ;;  %v1772_v0 = vcombine.low %v1747_v43, %v1755_v45  ;;  %v1788_v61 = vcombine.low %v1763_v55, %v1771_v29 }
 0x51e   : > { %v1822_v48 = vrot.slane %v1815_v46, %v2518_v31 }
 0x51f   : > { %v1787_v49 = vrot.slane %v1773_v53, %v2533_v38  ;;  %v1803_v44 = vrot.slane %v1789_v47, %v2533_v38  ;;  %v1780_v50 = vrot.slane %v1772_v0, %v2533_v38  ;;  %v1796_v28 = vrot.slane %v1788_v61, %v2533_v38 }
 0x520   : > { %v1824_v51 = vcombine.high %v1814_v17, %v1822_v48  ;;  %v1823_v23 = vcombine.low %v1814_v17, %v1822_v48 }
 0x521   : > { %v1806_v34 = vcombine.low %v1787_v49, %v1803_v44  ;;  %v1804_v27 = vcombine.low %v1780_v50, %v1796_v28  ;;  %v1805_v8 = vcombine.high %v1780_v50, %v1796_v28  ;;  %v1807_v52 = vcombine.high %v1787_v49, %v1803_v44 }
 0x522   : > { %v1838_v54 = vrot.slane %v1824_v51, %v2533_v38  ;;  %v1831_v31 = vrot.slane %v1823_v23, %v2533_v38 }
 0x524   : > { %v2288_v56 = vpack.i.bf16 %v1838_v54, %v1806_v34  ;;  %v1839_v59 = vcombine.high %v1831_v31, %v2374_v2  ;;  %v1840_v60 = vcombine.high %v1838_v54, %v2374_v2  ;;  %v2148_v54 = vld [vmem:[%s2818_s6] ss:$0 sm:$0xff] }
 0x526   : > { %2289 = vrot.lane.b32.xlu0 %v2288_v56, %s2382_s12  ;;  %v2293_v62 = vpack.i.bf16 %v1839_v59, %v1805_v8  ;;  %v2298_v63 = vpack.i.bf16 %v1840_v60, %v1807_v52 }
 0x528   : > { %2294 = vrot.lane.b32.xlu1 %v2293_v62, %s2383_s13 }
 0x52c   : > { %2299 = vrot.lane.b32.xlu1 %v2298_v63, %s2384_s15 }
 0x598   : > { %v2290_v38 = vpop.permute.xlu0 %2289 }
 0x599   : > { %v2292_v9 = vunpack.i.h.bf16 %v2290_v38  ;;  %v2291_v2 = vunpack.i.l.bf16 %v2290_v38 }
 0x59a   : > { %v2295_v1 = vpop.permute.xlu1 %2294 }
 0x59b   : > { %v2297_v3 = vunpack.i.h.bf16 %v2295_v1  ;;  %v2296_v4 = vunpack.i.l.bf16 %v2295_v1 }
 0x59d   : > { %v1866_v10 = vsel %vm1148_vm2, %v1831_v31, %v2297_v3  ;;  %v1865_v7 = vsel %vm1148_vm2, %v1804_v27, %v2296_v4 }
 0x59e   : > { %v2300_v5 = vpop.permute.xlu1 %2299  ;;  %v1868_v12 = vsel %vm1867_vm8, %v1865_v7, %v2291_v2  ;;  %v1869_v14 = vsel %vm1867_vm8, %v1866_v10, %v2292_v9 }
 0x59f   : > { %v2302_v6 = vunpack.i.h.bf16 %v2300_v5  ;;  %v2301_v11 = vunpack.i.l.bf16 %v2300_v5 }
 0x5a1   : > { %v1871_v16 = vsel %vm1870_vm9, %v1868_v12, %v2301_v11  ;;  %v1872_v18 = vsel %vm1870_vm9, %v1869_v14, %v2302_v6 }
 0x5a2   : > { %v1873_v19 = vpack.c.bf16 %v1872_v18, %v1871_v16 }
 0x5a4   : > { %2249 = vmatmul.mubr.msk.bf16.vlgmr.msra.gmra.mrb[20].mxu0 %vm401_vm1, %v1873_v19 }
 0x677   : > { %v1934_v21 = vpop.f32.mrb[20].mxu0 }
 0x678   : > { %v1935_v22 = vadd.f32 %v2144_v20, %v1934_v21  ;;  %v2250_v24 = vpop.f32.mrb[21].mxu0 }
 0x679   : > { %v1937_v57 = vpop.f32.mrb[22].mxu0 }
 0x67a   : > { %v1938_v25 = vadd.f32 %v2144_v20, %v1937_v57  ;;  %v2251_v26 = vpop.f32.mrb[23].mxu0  ;;  %v1941_v32 = vadd.f32 %v2347_v30, %v1935_v22 }
 0x67c   : > { %v1943_v33 = vsel %vm401_vm1, %v1941_v32, 0.0  ;;  %v1942_v37 = vadd.f32 %v2348_v36, %v1938_v25 }
 0x67d   : > { %1944 = vadd.xlane.f32.xlu1 %v1943_v33 }
 0x67e   : > { %v1947_v13 = vsel %vm1946_vm10, %v1942_v37, 0.0 }
 0x67f   : > { %1948 = vadd.xlane.f32.xlu0 %v1947_v13 }
 0x70a   : > { %v1945_v39 = vpop.xlane.xlu1 %1944 }
 0x70b   : > { %v1951_v40 = vmul.f32 0.03125, %v1945_v39 }
 0x70c   : > { %v1949_v41 = vpop.xlane.xlu0 %1948 }
 0x70d   : > { %v1953_v42 = vsub.f32 %v1941_v32, %v1951_v40  ;;  %v1952_v15 = vmul.f32 0.03125, %v1949_v41 }
 0x70f   : > { %v1954_v43 = vsub.f32 %v1942_v37, %v1952_v15  ;;  %v1955_v45 = vmul.f32 %v1953_v42, %v1953_v42 }
 0x711   : > { %v1957_v55 = vsel %vm401_vm1, %v1955_v45, 0.0  ;;  %v1956_v29 = vmul.f32 %v1954_v43, %v1954_v43 }
 0x712   : > { %1958 = vadd.xlane.f32.xlu0 %v1957_v55 }
 0x713   : > { %v1960_v46 = vsel %vm1946_vm10, %v1956_v29, 0.0 }
 0x714   : > { %1961 = vadd.xlane.f32.xlu1 %v1960_v46 }
 0x79f   : > { %v1959_v53 = vpop.xlane.xlu0 %1958 }
 0x7a0   : > { %v1963_v47 = vmul.f32 0.032258064, %v1959_v53 }
 0x7a1   : > { %v1962_v0 = vpop.xlane.xlu1 %1961 }
 0x7a2   : > { %2339 = vrsqrt.f32 %v1963_v47  ;;  %v1964_v61 = vmul.f32 0.032258064, %v1962_v0  ;;  %vm1967_vm11 = vcmp.eq.f32.partialorder %v1963_v47, inf  ;;  %v1970_v48 = vand.u32 2147483648, %v1963_v47 }
 0x7a3   : > { %vm1969_vm12 = vcmp.eq.f32.partialorder %v1963_v47, 0.0 }
 0x7a4   : > { %2341 = vrsqrt.f32 %v1964_v61  ;;  %vm1974_vm13 = vcmp.eq.f32.partialorder %v1964_v61, inf  ;;  %v1977_v23 = vand.u32 2147483648, %v1964_v61  ;;  %vm1976_vm14 = vcmp.eq.f32.partialorder %v1964_v61, 0.0 }
 0x7ac   : > { %v2340_v35 = vpop.eup %2339 }
 0x7ad   : > { %v1966_v17 = vmul.f32 %v2340_v35, %v1963_v47 }
 0x7ae   : > { %v2342_v49 = vpop.eup %2341 }
 0x7af   : > { %v1968_v44 = vsel %vm1967_vm11, %v1963_v47, %v1966_v17  ;;  %v1973_v28 = vmul.f32 %v2342_v49, %v1964_v61 }
 0x7b0   : > { %v1971_v50 = vsel %vm1969_vm12, %v1970_v48, %v1968_v44 }
 0x7b1   : > { %v1979_v51 = vadd.f32 0.001, %v1971_v50  ;;  %v1975_v34 = vsel %vm1974_vm13, %v1964_v61, %v1973_v28 }
 0x7b2   : > { %v1978_v27 = vsel %vm1976_vm14, %v1977_v23, %v1975_v34 }
 0x7b3   : > { %2343 = vrcp.f32 %v1979_v51  ;;  %v1980_v8 = vadd.f32 0.001, %v1978_v27 }
 0x7b5   : > { %2345 = vrcp.f32 %v1980_v8 }
 0x7bd   : > { %v2344_v52 = vpop.eup %2343 }
 0x7be   : > { %v1983_v31 = vmul.f32 %v2344_v52, %v1953_v42 }
 0x7bf   : > { %v2346_v56 = vpop.eup %2345 }
 0x7c0   : > { %v1992_v59 = vmul.f32 %v2148_v54, %v1983_v31  ;;  %v1984_v60 = vmul.f32 %v2346_v56, %v1954_v43 }
 0x7c2   : > { %v2001_v62 = vadd.f32 %v2149_v58, %v1992_v59  ;;  %v1993_v63 = vmul.f32 %v2148_v54, %v1984_v60 }
 0x7c4   : > { %2003 = vst.msk [vmem:[%s377_s24] sm:$0xff] %vm401_vm1, %v2001_v62  ;;  %v2002_v1 = vadd.f32 %v2149_v58, %v1993_v63 }
 0x7c6   : > { %2004 = vst.msk [vmem:[%s377_s24 + $0x8] sm:$0x3] %vm1946_vm10, %v2002_v1 }
 0x7c7 PF: > { %s18_s29 = sadd.s32 1, %s2371_s29   ;;  %s2821_s27 = smov %s2367_s28 }
 0x7c8   : > { %p15_p5 = scmp.ge.s32.totalorder %s18_s29, 4   ;;  %s2822_s28 = smov %s2824_s30 }
 0x7ca   :  { %17 = sbr.rel (!%p15_p5) target bundleno = 2 (0x2), region = 88 }

// kernel: transformer_forward.16
= control target key start
LH: loop header
LB: loop body
LE: loop exit
PB: predicated region body
PF: predicated region fallthrough
CT: control target
= control target key end

     0   :  { %s2135_s27 = smov 0   ;;  %s2137_s28 = smov 0   ;;  %s2424_s0 = inlined_call_operand.vmem [shape: f32[2,8,32], index: 0, kind: input, shape index: {}]   ;;  %s2425_s1 = inlined_call_operand.vmem [shape: f32[2,10,32], index: 1, kind: input, shape index: {}]   ;;  %s2426_s2 = inlined_call_operand.vmem [shape: s32[2,1,10], index: 2, kind: input, shape index: {}]   ;;  %s2427_s3 = inlined_call_operand.vmem [shape: bf16[32,96], index: 3, kind: input, shape index: {}]   ;;  %s2428_s4 = inlined_call_operand.vmem [shape: bf16[32,32], index: 4, kind: input, shape index: {}]   ;;  %s2429_s5 = inlined_call_operand.vmem [shape: f32[1,32], index: 5, kind: input, shape index: {}]   ;;  %s2430_s6 = inlined_call_operand.vmem [shape: f32[1,32], index: 6, kind: input, shape index: {}]   ;;  %s2431_s7 = inlined_call_operand.vmem [shape: f32[1,32], index: 7, kind: input, shape index: {}]   ;;  %s2432_s8 = inlined_call_operand.vmem [shape: f32[2,8,32], index: 8, kind: output, shape index: {}]  }
   0x1   :  { %s2139_s29 = smov 0  }
   0x2 LB: > { %s30_s30 = sadd.s32 1, %s2072_s28  ;;  %p1863_p0 = scmp.ge.s32.totalorder %s2076_s29, 1  ;;  %s2076_s29 = sphi %s2139_s29, %s18_s29   ;;  %s2072_s28 = sphi %s2137_s28, %s2434_s28   ;;  %s2068_s27 = sphi %s2135_s27, %s2433_s27  }
   0x3   : > { %p32_p1 = scmp.ge.s32.totalorder %s30_s30, 2  ;;  %p298_p2 = scmp.lt.s32.totalorder %s2076_s29, 3 }
   0x5   : > { %s2436_s30 = smov (%p32_p1, %s30_s30), 0  ;;  %p299_p3 = pnand %p1863_p0, %p298_p2 }
   0x6   : > { %v2030_v0 = vld [vmem:[%s2427_s3] sm:$0xff] (!%p299_p3)   ;;  %s2078_s11 = smov (!%p299_p3), 96   ;;  %v2031_v1 = vld [vmem:[%s2427_s3 + $0x8] sm:$0xff] (!%p299_p3)   ;;  %v2079_v2 = vmov (!%p299_p3), 0.0   ;;  %p344_p4 = scmp.lt.s32.totalorder (!%p299_p3), %s2068_s27, 1  ;;  %vm2080_vm0 = vmmov (!%p299_p3), 0   ;;  %v497_v20 = vlaneseq (!%p299_p3) }
   0x7   : > { %302 = sbr.rel (%p299_p3) target bundleno = 1978 (0x7ba), region = 52  ;;  %432 = vrot.lane.b32.xlu0 (!%p299_p3), %v2030_v0, %s2078_s11  ;;  %1930 = vmatprep.subr.bf16.mxu1 (!%p299_p3), %v2079_v2  ;;  %vm387_vm1 = vcmask (!%p299_p3), 261120   ;;  %s2081_s22 = smov (!%p299_p3), 112   ;;  %v2084_v18 = vmov (!%p299_p3), 1983009808   ;;  %vm1066_vm2 = vcmask (!%p299_p3), 64512  }
   0x8   : > { %1934 = vmatprep.mubr.msk.bf16.mxu1 (!%p299_p3), %vm2080_vm0, %v2079_v2  ;;  %1922 = vmatprep.subr.bf16.mxu0 (!%p299_p3), %v2079_v2  ;;  %s2082_s23 = smov (!%p299_p3), 120   ;;  %s2083_s24 = smov (!%p299_p3), 104   ;;  %v495_v19 = vunpack.c.l.s4 (!%p299_p3), %v2084_v18  ;;  %v2085_v21 = vmov (!%p299_p3), 1934713408   ;;  %v2200_v24 = vshrl.u32 (!%p299_p3), %v497_v20, 7  ;;  %vm1267_vm5 = vcmask (!%p299_p3), 80896  }
   0x9   : > { %1923 = vmatpush3.bf16.msra.mxu0 (!%p299_p3), %v2030_v0  ;;  %1926 = vmatprep.mubr.msk.bf16.mxu0 (!%p299_p3), %vm2080_vm0, %v2079_v2  ;;  %v527_v22 = vunpack.c.l.s4 (!%p299_p3), %v2085_v21  ;;  %vm1323_vm6 = vcmask (!%p299_p3), 1044480   ;;  %s2087_s15 = smov (!%p299_p3), 16   ;;  %s2088_s16 = smov (!%p299_p3), 8   ;;  %vm1654_vm7 = vcmask (!%p299_p3), 130048   ;;  %vm1656_vm8 = vcmask (!%p299_p3), 195584  }
   0xa   : > { %1924 = vmatprep.subr.bf16.mxu0 (!%p299_p3), %v2079_v2  ;;  %v496_v23 = vunpack.c.0.s8 (!%p299_p3), %v495_v19 }
   0xb   : > { %434 = vrot.lane.b32.xlu0 (!%p299_p3), %v2031_v1, %s2078_s11  ;;  %v528_v27 = vunpack.c.0.s8 (!%p299_p3), %v527_v22 }
   0xc   : > { %v2206_v28 = vsub.s32 (!%p299_p3), %v496_v23, %v2200_v24 }
   0xd   : > { %1925 = vmatpush3.bf16.msra.mxu0 (!%p299_p3), %v2031_v1  ;;  %v2216_v35 = vsub.s32 (!%p299_p3), %v528_v27, %v2200_v24 }
   0xe   : > { %s2438_s27 = smov (!%p344_p4, %s2068_s27), 1  ;;  %1938 = vmatprep.subr.bf16.mxu0 %v2079_v2 }
   0xf   : > { %s1864_s14 = sshll.u32 %s2438_s27, 3  ;;  %s1896_s18 = sshll.u32 %s2438_s27, 4 }
  0x10   : > { %s350_s17 = scalar_lea.vmem %s2424_s0, %s1864_s14  ;;  %s355_s21 = scalar_lea.vmem %s2425_s1, %s1896_s18 }
  0x11   : > { %v2176_v3 = vld [vmem:[%s350_s17] sm:$0xff]  ;;  %v369_v7 = vld [vmem:[%s355_s21 + $0x8] sm:$0x3]  ;;  %s358_s9 = scalar_lea.vmem %s2426_s2, %s2438_s27  ;;  %s2089_s17 = smov 24  }
  0x12   : > { %v374_v4 = vpack.c.bf16 %v2176_v3, %v2176_v3  ;;  %v368_v6 = vld [vmem:[%s355_s21] sm:$0xff]  ;;  %s365_s26 = scalar_lea.vmem %s2432_s8, %s1864_s14 }
  0x13   : > { %v431_v9 = vpack.c.bf16 %v369_v7, %v368_v6 }
  0x14   : > { %1927 = vmatmul.mubr.msk.bf16.vlgmr.msra.gmra.mrb[0].mxu0 %vm387_vm1, %v374_v4 }
  0x15   : > { %1940 = vmatprep.mubr.msk.bf16.mxu0 %vm2080_vm0, %v2079_v2 }
  0x79   : > { %v433_v5 = vpop.permute.xlu0 %432 }
  0x7a   : > { %1931 = vmatpush3.bf16.msra.mxu1 %v433_v5 }
  0x7b   : > { %1932 = vmatprep.subr.bf16.mxu1 %v2079_v2 }
  0x7d   : > { %v435_v8 = vpop.permute.xlu0 %434 }
  0x7e   : > { %1933 = vmatpush3.bf16.msra.mxu1 %v435_v8 }
  0x7f   : > { %1944 = vmatprep.subr.bf16.mxu1 %v2079_v2 }
  0x81   : > { %1935 = vmatmul.mubr.msk.bf16.vlgmr.msra.gmra.mrb[0].mxu1 %vm387_vm1, %v431_v9 }
  0x82   : > { %1946 = vmatprep.mubr.msk.bf16.mxu1 %vm2080_vm0, %v2079_v2 }
  0xe7   : > { %v2193_v10 = vpop.f32.mrb[0].mxu0 }
  0xe8   : > { %v1928_v11 = vpop.f32.mrb[1].mxu0 }
  0xe9   : > { %v428_v12 = vpop.f32.mrb[2].mxu0 }
  0xea   : > { %v1929_v13 = vpop.f32.mrb[3].mxu0 }
 0x154   : > { %v475_v14 = vpop.f32.mrb[0].mxu1 }
 0x155   : > { %636 = vrot.lane.b32.xlu0 %v475_v14, %s2081_s22  ;;  %630 = vrot.lane.b32.xlu1 %v475_v14, %s2082_s23  ;;  %v1936_v15 = vpop.f32.mrb[1].mxu1 }
 0x156   : > { %v478_v16 = vpop.f32.mrb[2].mxu1 }
 0x157   : > { %v1937_v17 = vpop.f32.mrb[3].mxu1 }
 0x159   : > { %642 = vrot.lane.b32.xlu0 %v475_v14, %s2083_s24  ;;  %632 = vrot.lane.b32.xlu1 %v478_v16, %s2082_s23 }
 0x15d   : > { %638 = vrot.lane.b32.xlu1 %v478_v16, %s2081_s22  ;;  %483 = vrot.lane.b32.xlu0 %v2193_v10, %s2082_s23 }
 0x161   : > { %644 = vrot.lane.b32.xlu1 %v478_v16, %s2083_s24  ;;  %489 = vrot.lane.b32.xlu0 %v2193_v10, %s2083_s24 }
 0x165   : > { %486 = vrot.lane.b32.xlu1 %v2193_v10, %s2081_s22  ;;  %841 = vrot.lane.b32.xlu0 %v475_v14, %s2078_s11 }
 0x169   : > { %843 = vrot.lane.b32.xlu1 %v478_v16, %s2078_s11 }
 0x1c7   : > { %v2202_v25 = vpop.permute.xlu0 %636  ;;  %v631_v26 = vpop.permute.xlu1 %630 }
 0x1c8   : > { %845 = vrot.lane.b32.xlu1 %v631_v26, %s2078_s11  ;;  %v648_v29 = vcombine.low %v475_v14, %v2202_v25  ;;  %v649_v30 = vcombine.high %v475_v14, %v2202_v25 }
 0x1ca   : > { %v656_v36 = vrot.slane %v648_v29, %v2206_v28  ;;  %v663_v37 = vrot.slane %v649_v30, %v2206_v28 }
 0x1cb   : > { %v2210_v31 = vpop.permute.xlu0 %642  ;;  %v633_v32 = vpop.permute.xlu1 %632 }
 0x1cc   : > { %v664_v33 = vcombine.low %v631_v26, %v2210_v31  ;;  %v665_v34 = vcombine.high %v631_v26, %v2210_v31  ;;  %847 = vrot.lane.b32.xlu0 %v633_v32, %s2078_s11 }
 0x1ce   : > { %v672_v38 = vrot.slane %v664_v33, %v2206_v28  ;;  %v679_v39 = vrot.slane %v665_v34, %v2206_v28 }
 0x1cf   : > { %v2222_v40 = vpop.permute.xlu1 %638  ;;  %v484_v41 = vpop.permute.xlu0 %483 }
 0x1d0   : > { %v680_v42 = vcombine.low %v656_v36, %v672_v38  ;;  %v681_v43 = vcombine.high %v656_v36, %v672_v38  ;;  %v696_v44 = vcombine.low %v663_v37, %v679_v39  ;;  %v697_v45 = vcombine.high %v663_v37, %v679_v39 }
 0x1d1   : > { %v716_v50 = vcombine.low %v478_v16, %v2222_v40 }
 0x1d2   : > { %v688_v46 = vrot.slane %v680_v42, %v2216_v35  ;;  %v695_v47 = vrot.slane %v681_v43, %v2216_v35  ;;  %v704_v48 = vrot.slane %v696_v44, %v2216_v35  ;;  %v711_v49 = vrot.slane %v697_v45, %v2216_v35 }
 0x1d3   : > { %v2229_v51 = vpop.permute.xlu1 %644  ;;  %v490_v56 = vpop.permute.xlu0 %489  ;;  %v723_v0 = vrot.slane %v716_v50, %v2206_v28 }
 0x1d4   : > { %v740_v52 = vcombine.low %v688_v46, %v695_v47  ;;  %v1874_v53 = vcombine.high %v688_v46, %v695_v47  ;;  %v756_v54 = vcombine.low %v704_v48, %v711_v49  ;;  %v1875_v55 = vcombine.high %v704_v48, %v711_v49 }
 0x1d5   : > { %v724_v57 = vcombine.low %v633_v32, %v2229_v51  ;;  %v508_v58 = vcombine.low %v484_v41, %v490_v56  ;;  %v509_v59 = vcombine.high %v484_v41, %v490_v56 }
 0x1d6   : > { %v747_v60 = vrot.slane %v740_v52, %v2206_v28  ;;  %v755_v61 = vrot.slane %v1874_v53, %v2206_v28  ;;  %v763_v62 = vrot.slane %v756_v54, %v2206_v28  ;;  %v771_v63 = vrot.slane %v1875_v55, %v2206_v28 }
 0x1d7   : > { %v731_v1 = vrot.slane %v724_v57, %v2206_v28  ;;  %v487_v4 = vpop.permute.xlu1 %486  ;;  %v516_v5 = vrot.slane %v508_v58, %v2206_v28  ;;  %v523_v6 = vrot.slane %v509_v59, %v2206_v28 }
 0x1d8   : > { %v492_v7 = vcombine.low %v2193_v10, %v487_v4  ;;  %v493_v8 = vcombine.high %v2193_v10, %v487_v4  ;;  %v772_v11 = vcombine.low %v747_v60, %v755_v61  ;;  %v788_v12 = vcombine.low %v763_v62, %v771_v63 }
 0x1d9   : > { %v732_v9 = vcombine.low %v723_v0, %v731_v1  ;;  %v773_v16 = vcombine.high %v747_v60, %v755_v61  ;;  %v789_v17 = vcombine.high %v763_v62, %v771_v63 }
 0x1da   : > { %v500_v13 = vrot.slane %v492_v7, %v2206_v28  ;;  %v507_v14 = vrot.slane %v493_v8, %v2206_v28  ;;  %v780_v23 = vrot.slane %v772_v11, %v2216_v35  ;;  %v796_v10 = vrot.slane %v788_v12, %v2216_v35 }
 0x1db   : > { %v739_v15 = vrot.slane %v732_v9, %v2216_v35  ;;  %v787_v34 = vrot.slane %v773_v16, %v2216_v35  ;;  %v803_v36 = vrot.slane %v789_v17, %v2216_v35 }
 0x1dc   : > { %v524_v18 = vcombine.low %v500_v13, %v516_v5  ;;  %v525_v19 = vcombine.high %v500_v13, %v516_v5  ;;  %v540_v20 = vcombine.low %v507_v14, %v523_v6  ;;  %v541_v21 = vcombine.high %v507_v14, %v523_v6 }
 0x1dd   : > { %v815_v22 = vcombine.high %v739_v15, %v2079_v2  ;;  %v814_v32 = vrot.slane %v739_v15, %v2206_v28  ;;  %v804_v48 = vcombine.low %v780_v23, %v796_v10  ;;  %v806_v50 = vcombine.low %v787_v34, %v803_v36 }
 0x1de   : > { %v532_v26 = vrot.slane %v524_v18, %v2216_v35  ;;  %v539_v27 = vrot.slane %v525_v19, %v2216_v35  ;;  %v548_v29 = vrot.slane %v540_v20, %v2216_v35  ;;  %v555_v30 = vrot.slane %v541_v21, %v2216_v35  ;;  %v1255_v20 = vld [vmem:[%s358_s9] sm:$0x1] }
 0x1df   : > { %v822_v33 = vrot.slane %v815_v22, %v2206_v28  ;;  %v805_v55 = vcombine.high %v780_v23, %v796_v10  ;;  %v807_v56 = vcombine.high %v787_v34, %v803_v36  ;;  %vm1256_vm3 = vcmp.eq.s32.totalorder %v1255_v20, 0 }
 0x1e0   : > { %v560_v37 = vcombine.low %v532_v26, %v539_v27  ;;  %v1872_v38 = vcombine.high %v532_v26, %v539_v27  ;;  %v576_v39 = vcombine.low %v548_v29, %v555_v30  ;;  %v1873_v41 = vcombine.high %v548_v29, %v555_v30 }
 0x1e1   : > { %v823_v42 = vcombine.low %v814_v32, %v822_v33  ;;  %v824_v43 = vcombine.high %v814_v32, %v822_v33  ;;  %v1260_v21 = vsub.s32 0, %v2200_v24  ;;  %v2086_v22 = vmov 0  }
 0x1e2   : > { %v567_v44 = vrot.slane %v560_v37, %v2206_v28  ;;  %v575_v45 = vrot.slane %v1872_v38, %v2206_v28  ;;  %v583_v46 = vrot.slane %v576_v39, %v2206_v28  ;;  %v591_v47 = vrot.slane %v1873_v41, %v2206_v28 }
 0x1e3   : > { %v831_v49 = vrot.slane %v823_v42, %v2216_v35  ;;  %v838_v52 = vrot.slane %v824_v43, %v2216_v35  ;;  %v1257_v23 = vsel %vm1256_vm3, 1, %v2086_v22 }
 0x1e4   : > { %v592_v53 = vcombine.low %v567_v44, %v575_v45  ;;  %v608_v54 = vcombine.low %v583_v46, %v591_v47  ;;  %v593_v4 = vcombine.high %v567_v44, %v575_v45  ;;  %v609_v5 = vcombine.high %v583_v46, %v591_v47 }
 0x1e5   : > { %v1062_v57 = vpack.c.bf16 %v831_v49, %v804_v48  ;;  %v839_v58 = vcombine.high %v831_v49, %v2079_v2  ;;  %v1064_v59 = vpack.c.bf16 %v838_v52, %v806_v50  ;;  %v840_v60 = vcombine.high %v838_v52, %v2079_v2 }
 0x1e6   : > { %v600_v61 = vrot.slane %v592_v53, %v2216_v35  ;;  %v616_v62 = vrot.slane %v608_v54, %v2216_v35  ;;  %v607_v11 = vrot.slane %v593_v4, %v2216_v35  ;;  %v623_v12 = vrot.slane %v609_v5, %v2216_v35 }
 0x1e7   : > { %v1071_v63 = vsel %vm1066_vm2, %v1062_v57, 0  ;;  %v1063_v0 = vpack.c.bf16 %v839_v58, %v805_v55  ;;  %v1065_v1 = vpack.c.bf16 %v840_v60, %v807_v56  ;;  %v1163_v13 = vsel %vm1066_vm2, %v1064_v59, 0  ;;  %v844_v58 = vpop.permute.xlu1 %843  ;;  %v842_v59 = vpop.permute.xlu0 %841 }
 0x1e8   : > { %1939 = vmatpush3.bf16.xpose.msra.mxu0 %v1071_v63  ;;  %v624_v7 = vcombine.low %v600_v61, %v616_v62  ;;  %v625_v8 = vcombine.high %v600_v61, %v616_v62  ;;  %v626_v16 = vcombine.low %v607_v11, %v623_v12  ;;  %v627_v17 = vcombine.high %v607_v11, %v623_v12 }
 0x1e9   : > { %v1117_v6 = vsel %vm1066_vm2, %v1063_v0, 0  ;;  %1950 = vmatprep.subr.bf16.mxu0 %v2079_v2  ;;  %v1209_v15 = vsel %vm1066_vm2, %v1065_v1, 0  ;;  %v1261_v10 = vrot.slane %v1257_v23, %v1260_v21 }
 0x1ea   : > { %1945 = vmatpush3.bf16.xpose.msra.mxu1 %v1117_v6  ;;  %v1058_v9 = vpack.c.bf16 %v624_v7, %v624_v7  ;;  %v1059_v14 = vpack.c.bf16 %v625_v8, %v625_v8  ;;  %v1060_v18 = vpack.c.bf16 %v626_v16, %v626_v16  ;;  %v1061_v19 = vpack.c.bf16 %v627_v17, %v627_v17 }
 0x1eb   : > { %1956 = vmatprep.subr.bf16.mxu1 %v2079_v2  ;;  %vm1262_vm4 = vcmp.eq.s32.totalorder %v1261_v10, 1 }
 0x1ef   : > { %1941 = vmatmul.mubr.msk.bf16.vlgmr.msra.gmra.mrb[4].mxu0 %vm1066_vm2, %v1058_v9 }
 0x1f0   : > { %1951 = vmatpush3.bf16.xpose.msra.mxu0 %v1163_v13  ;;  %1952 = vmatprep.mubr.msk.bf16.mxu0 %vm2080_vm0, %v2079_v2 }
 0x1f1   : > { %1947 = vmatmul.mubr.msk.bf16.vlgmr.msra.gmra.mrb[4].mxu1 %vm1066_vm2, %v1059_v14  ;;  %1962 = vmatprep.subr.bf16.mxu0 %v2079_v2 }
 0x1f2   : > { %1957 = vmatpush3.bf16.xpose.msra.mxu1 %v1209_v15  ;;  %1958 = vmatprep.mubr.msk.bf16.mxu1 %vm2080_vm0, %v2079_v2 }
 0x1f3   : > { %1968 = vmatprep.subr.bf16.mxu1 %v2079_v2 }
 0x1f7   : > { %1953 = vmatmul.mubr.msk.bf16.vlgmr.msra.gmra.mrb[8].mxu0 %vm1066_vm2, %v1060_v18 }
 0x1f8   : > { %1964 = vmatprep.mubr.msk.bf16.mxu0 %vm2080_vm0, %v2079_v2 }
 0x1f9   : > { %1959 = vmatmul.mubr.msk.bf16.vlgmr.msra.gmra.mrb[8].mxu1 %vm1066_vm2, %v1061_v19 }
 0x1fa   : > { %1970 = vmatprep.mubr.msk.bf16.mxu1 %vm2080_vm0, %v2079_v2 }
 0x23a   : > { %v846_v60 = vpop.permute.xlu1 %845 }
 0x23e   : > { %v848_v61 = vpop.permute.xlu0 %847 }
 0x2c2   : > { %v1107_v26 = vpop.f32.mrb[4].mxu0 }
 0x2c3   : > { %v1251_v27 = vmul.f32 0.17677669, %v1107_v26  ;;  %v1942_v29 = vpop.f32.mrb[5].mxu0 }
 0x2c4   : > { %v1110_v30 = vpop.f32.mrb[6].mxu0  ;;  %v1153_v32 = vpop.f32.mrb[4].mxu1 }
 0x2c5   : > { %v1252_v33 = vmul.f32 0.17677669, %v1153_v32  ;;  %v1943_v34 = vpop.f32.mrb[7].mxu0  ;;  %v1948_v36 = vpop.f32.mrb[5].mxu1  ;;  %v1263_v37 = vsel %vm1262_vm4, -1e+30, %v1251_v27 }
 0x2c6   : > { %v1156_v38 = vpop.f32.mrb[6].mxu1  ;;  %v1268_v39 = vsel %vm1267_vm5, %v1263_v37, -inf }
 0x2c7   : > { %v1949_v41 = vpop.f32.mrb[7].mxu1  ;;  %1269 = vmax.xlane.f32.xlu1 %v1268_v39  ;;  %v1264_v24 = vsel %vm1262_vm4, -1e+30, %v1252_v33 }
 0x2c8   : > { %v1271_v42 = vsel %vm1267_vm5, %v1264_v24, -inf }
 0x2c9   : > { %1272 = vmax.xlane.f32.xlu0 %v1271_v42 }
 0x2ca   : > { %v1199_v43 = vpop.f32.mrb[8].mxu0 }
 0x2cb   : > { %v1253_v44 = vmul.f32 0.17677669, %v1199_v43  ;;  %v1954_v45 = vpop.f32.mrb[9].mxu0 }
 0x2cc   : > { %v1202_v46 = vpop.f32.mrb[10].mxu0  ;;  %v1245_v47 = vpop.f32.mrb[8].mxu1 }
 0x2cd   : > { %v1254_v48 = vmul.f32 0.17677669, %v1245_v47  ;;  %v1955_v49 = vpop.f32.mrb[11].mxu0  ;;  %v1960_v50 = vpop.f32.mrb[9].mxu1  ;;  %v1265_v52 = vsel %vm1262_vm4, -1e+30, %v1253_v44 }
 0x2ce   : > { %v1248_v53 = vpop.f32.mrb[10].mxu1  ;;  %v1274_v54 = vsel %vm1267_vm5, %v1265_v52, -inf }
 0x2cf   : > { %v1961_v55 = vpop.f32.mrb[11].mxu1  ;;  %1275 = vmax.xlane.f32.xlu0 %v1274_v54  ;;  %v1266_v56 = vsel %vm1262_vm4, -1e+30, %v1254_v48 }
 0x2d0   : > { %v1277_v57 = vsel %vm1267_vm5, %v1266_v56, -inf }
 0x2d1   : > { %1278 = vmax.xlane.f32.xlu1 %v1277_v57 }
 0x2e2   : > { %849 = vrot.lane.b32.xlu1 %v2202_v25, %s2078_s11 }
 0x2e5   : > { %851 = vrot.lane.b32.xlu0 %v2222_v40, %s2078_s11 }
 0x354   : > { %v1270_v62 = vpop.xlane.xlu1 %1269 }
 0x355   : > { %v1280_v63 = vsub.f32 %v1263_v37, %v1270_v62 }
 0x356   : > { %v1273_v0 = vpop.xlane.xlu0 %1272 }
 0x357   : > { %v1284_v1 = vmul.f32 1.442695, %v1280_v63  ;;  %v1281_v4 = vsub.f32 %v1264_v24, %v1273_v0 }
 0x359   : > { %2034 = vpow2.f32 %v1284_v1  ;;  %v1286_v5 = vmul.f32 1.442695, %v1281_v4 }
 0x35b   : > { %2036 = vpow2.f32 %v1286_v5 }
 0x35c   : > { %v1276_v9 = vpop.xlane.xlu0 %1275 }
 0x35d   : > { %v1282_v12 = vsub.f32 %v1265_v52, %v1276_v9 }
 0x35e   : > { %v1279_v8 = vpop.xlane.xlu1 %1278 }
 0x35f   : > { %v1283_v11 = vsub.f32 %v1266_v56, %v1279_v8  ;;  %v1288_v14 = vmul.f32 1.442695, %v1282_v12 }
 0x361   : > { %v1290_v13 = vmul.f32 1.442695, %v1283_v11 }
 0x362   : > { %v850_v18 = vpop.permute.xlu1 %849 }
 0x363   : > { %v2305_v6 = vpop.eup %2034  ;;  %2038 = vpow2.f32 %v1290_v13  ;;  %v865_v22 = vcombine.low %v842_v59, %v850_v18  ;;  %v866_v10 = vcombine.high %v842_v59, %v850_v18 }
 0x364   : > { %v1292_v25 = vsel %vm1267_vm5, %v2305_v6, 0.0  ;;  %2040 = vpow2.f32 %v1288_v14 }
 0x365   : > { %v2309_v7 = vpop.eup %2036  ;;  %1293 = vadd.xlane.f32.xlu0 %v1292_v25  ;;  %v873_v34 = vrot.slane %v865_v22, %v2206_v28  ;;  %v880_v36 = vrot.slane %v866_v10, %v2206_v28 }
 0x366   : > { %v1295_v40 = vsel %vm1267_vm5, %v2309_v7, 0.0 }
 0x367   : > { %1296 = vadd.xlane.f32.xlu1 %v1295_v40 }
 0x36d   : > { %v2317_v15 = vpop.eup %2038 }
 0x36e   : > { %v2319_v16 = vpop.eup %2040  ;;  %v1301_v17 = vsel %vm1267_vm5, %v2317_v15, 0.0 }
 0x378   : > { %853 = vrot.lane.b32.xlu1 %v2210_v31, %s2078_s11  ;;  %v1298_v31 = vsel %vm1267_vm5, %v2319_v16, 0.0 }
 0x37b   : > { %855 = vrot.lane.b32.xlu0 %v2229_v51, %s2078_s11  ;;  %v852_v51 = vpop.permute.xlu0 %851 }
 0x37c   : > { %v933_v21 = vcombine.low %v844_v58, %v852_v51 }
 0x37e   : > { %v940_v29 = vrot.slane %v933_v21, %v2206_v28 }
 0x39a   : > { %1302 = vadd.xlane.f32.xlu0 %v1301_v17 }
 0x39c   : > { %1299 = vadd.xlane.f32.xlu1 %v1298_v31 }
 0x3f2   : > { %v1294_v19 = vpop.xlane.xlu0 %1293 }
 0x3f3   : > { %2042 = vrcp.f32 %v1294_v19 }
 0x3f4   : > { %v1297_v20 = vpop.xlane.xlu1 %1296 }
 0x3f5   : > { %2044 = vrcp.f32 %v1297_v20 }
 0x3f6   : > { %v856_v23 = vpop.permute.xlu0 %855 }
 0x3f7   : > { %v941_v26 = vcombine.low %v848_v61, %v856_v23 }
 0x3f8   : > { %v854_v27 = vpop.permute.xlu1 %853 }
 0x3f9   : > { %v948_v30 = vrot.slane %v941_v26, %v2206_v28  ;;  %v881_v32 = vcombine.low %v846_v60, %v854_v27  ;;  %v882_v33 = vcombine.high %v846_v60, %v854_v27 }
 0x3fb   : > { %v949_v37 = vcombine.low %v940_v29, %v948_v30  ;;  %v889_v38 = vrot.slane %v881_v32, %v2206_v28  ;;  %v896_v39 = vrot.slane %v882_v33, %v2206_v28 }
 0x3fd   : > { %v956_v41 = vrot.slane %v949_v37, %v2216_v35  ;;  %v897_v24 = vcombine.low %v873_v34, %v889_v38  ;;  %v898_v42 = vcombine.high %v873_v34, %v889_v38  ;;  %v913_v43 = vcombine.low %v880_v36, %v896_v39  ;;  %v2043_v8 = vpop.eup %2042 }
 0x3fe   : > { %v914_v44 = vcombine.high %v880_v36, %v896_v39  ;;  %v1308_v19 = vmul.f32 %v2043_v8, %v2305_v6 }
 0x3ff   : > { %v1032_v45 = vcombine.high %v956_v41, %v2079_v2  ;;  %v905_v46 = vrot.slane %v897_v24, %v2216_v35  ;;  %v912_v47 = vrot.slane %v898_v42, %v2216_v35  ;;  %v921_v48 = vrot.slane %v913_v43, %v2216_v35  ;;  %v2045_v13 = vpop.eup %2044 }
 0x400   : > { %v928_v49 = vrot.slane %v914_v44, %v2216_v35  ;;  %v1031_v50 = vrot.slane %v956_v41, %v2206_v28  ;;  %v1309_v20 = vmul.f32 %v2045_v13, %v2309_v7  ;;  %v1312_v30 = vpack.c.bf16 %v1308_v19, %v1308_v19 }
 0x401   : > { %v1039_v52 = vrot.slane %v1032_v45, %v2206_v28  ;;  %v957_v53 = vcombine.low %v905_v46, %v912_v47  ;;  %v1876_v54 = vcombine.high %v905_v46, %v912_v47 }
 0x402   : > { %v973_v55 = vcombine.low %v921_v48, %v928_v49  ;;  %v1877_v56 = vcombine.high %v921_v48, %v928_v49  ;;  %v1313_v32 = vpack.c.bf16 %v1309_v20, %v1309_v20 }
 0x403   : > { %v964_v57 = vrot.slane %v957_v53, %v2206_v28  ;;  %v972_v58 = vrot.slane %v1876_v54, %v2206_v28  ;;  %v1040_v59 = vcombine.low %v1031_v50, %v1039_v52  ;;  %v1041_v62 = vcombine.high %v1031_v50, %v1039_v52 }
 0x404   : > { %v980_v60 = vrot.slane %v973_v55, %v2206_v28  ;;  %v988_v61 = vrot.slane %v1877_v56, %v2206_v28 }
 0x405   : > { %v989_v63 = vcombine.low %v964_v57, %v972_v58  ;;  %v1048_v0 = vrot.slane %v1040_v59, %v2216_v35  ;;  %v990_v1 = vcombine.high %v964_v57, %v972_v58  ;;  %v1055_v12 = vrot.slane %v1041_v62, %v2216_v35 }
 0x406   : > { %v1005_v4 = vcombine.low %v980_v60, %v988_v61  ;;  %v1006_v5 = vcombine.high %v980_v60, %v988_v61 }
 0x407   : > { %v997_v25 = vrot.slane %v989_v63, %v2216_v35  ;;  %v1004_v40 = vrot.slane %v990_v1, %v2216_v35  ;;  %v1056_v14 = vcombine.high %v1048_v0, %v2079_v2  ;;  %v1057_v23 = vcombine.high %v1055_v12, %v2079_v2 }
 0x408   : > { %v1013_v9 = vrot.slane %v1005_v4, %v2216_v35  ;;  %v1020_v11 = vrot.slane %v1006_v5, %v2216_v35 }
 0x40a   : > { %v1021_v17 = vcombine.low %v997_v25, %v1013_v9  ;;  %v1022_v31 = vcombine.high %v997_v25, %v1013_v9  ;;  %v1023_v51 = vcombine.low %v1004_v40, %v1020_v11  ;;  %v1024_v18 = vcombine.high %v1004_v40, %v1020_v11  ;;  %v2032_v40 = vld [vmem:[%s2428_s4] sm:$0xff]  }
 0x40c   : > { %v1316_v21 = vpack.c.bf16 %v1048_v0, %v1021_v17  ;;  %v1317_v22 = vpack.c.bf16 %v1056_v14, %v1022_v31  ;;  %v1318_v27 = vpack.c.bf16 %v1055_v12, %v1023_v51  ;;  %v1319_v29 = vpack.c.bf16 %v1057_v23, %v1024_v18  ;;  %v2033_v51 = vld [vmem:[%s2428_s4 + $0x8] sm:$0xff]  }
 0x40e   : > { %v1325_v10 = vsel %vm1323_vm6, %v1316_v21, 0  ;;  %v1371_v26 = vsel %vm1323_vm6, %v1317_v22, 0  ;;  %v1417_v6 = vsel %vm1323_vm6, %v1318_v27, 0  ;;  %v1463_v7 = vsel %vm1323_vm6, %v1319_v29, 0 }
 0x40f   : > { %1963 = vmatpush3.bf16.msra.mxu0 %v1325_v10  ;;  %1969 = vmatpush3.bf16.msra.mxu1 %v1371_v26 }
 0x410   : > { %1974 = vmatprep.subr.bf16.mxu0 %v2079_v2  ;;  %1980 = vmatprep.subr.bf16.mxu1 %v2079_v2 }
 0x412   : > { %1965 = vmatmul.mubr.msk.bf16.vlgmr.msra.gmra.mrb[12].mxu0 %vm1267_vm5, %v1312_v30  ;;  %1971 = vmatmul.mubr.msk.bf16.vlgmr.msra.gmra.mrb[12].mxu1 %vm1267_vm5, %v1313_v32 }
 0x413   : > { %1975 = vmatpush3.bf16.msra.mxu0 %v1417_v6  ;;  %1981 = vmatpush3.bf16.msra.mxu1 %v1463_v7 }
 0x414   : > { %1982 = vmatprep.mubr.msk.bf16.mxu1 %vm2080_vm0, %v2079_v2  ;;  %1976 = vmatprep.mubr.msk.bf16.mxu0 %vm2080_vm0, %v2079_v2 }
 0x415   : > { %1986 = vmatprep.subr.bf16.mxu0 %v2079_v2 }
 0x427   : > { %v1303_v33 = vpop.xlane.xlu0 %1302 }
 0x428   : > { %2046 = vrcp.f32 %v1303_v33 }
 0x429   : > { %v1300_v34 = vpop.xlane.xlu1 %1299 }
 0x42a   : > { %2048 = vrcp.f32 %v1300_v34 }
 0x432   : > { %v2047_v36 = vpop.eup %2046 }
 0x433   : > { %v1311_v37 = vmul.f32 %v2047_v36, %v2317_v15 }
 0x434   : > { %v2049_v38 = vpop.eup %2048 }
 0x435   : > { %v1310_v39 = vmul.f32 %v2049_v38, %v2319_v16  ;;  %v1315_v41 = vpack.c.bf16 %v1311_v37, %v1311_v37 }
 0x437   : > { %1983 = vmatmul.mubr.msk.bf16.vlgmr.msra.gmra.mrb[16].mxu1 %vm1267_vm5, %v1315_v41  ;;  %v1314_v24 = vpack.c.bf16 %v1310_v39, %v1310_v39  ;;  %v1888_v41 = vld [vmem:[%s2429_s5] ss:$0 sm:$0xff] }
 0x439   : > { %1977 = vmatmul.mubr.msk.bf16.vlgmr.msra.gmra.mrb[16].mxu0 %vm1267_vm5, %v1314_v24 }
 0x43a   : > { %1990 = vmatprep.mubr.msk.bf16.mxu0 %vm2080_vm0, %v2079_v2  ;;  %1987 = vmatpush3.bf16.msra.mxu0 %v2032_v40 }
 0x43b   : > { %1988 = vmatprep.subr.bf16.mxu0 %v2079_v2 }
 0x43e   : > { %1989 = vmatpush3.bf16.msra.mxu0 %v2033_v51 }
 0x4e5   : > { %v1361_v42 = vpop.f32.mrb[12].mxu0  ;;  %v1407_v43 = vpop.f32.mrb[12].mxu1 }
 0x4e6   : > { %v1966_v44 = vpop.f32.mrb[13].mxu0  ;;  %v1972_v45 = vpop.f32.mrb[13].mxu1 }
 0x4e7   : > { %v1364_v46 = vpop.f32.mrb[14].mxu0  ;;  %v1410_v47 = vpop.f32.mrb[14].mxu1 }
 0x4e8   : > { %v1967_v48 = vpop.f32.mrb[15].mxu0  ;;  %v1973_v15 = vpop.f32.mrb[15].mxu1 }
 0x50a   : > { %v1499_v49 = vpop.f32.mrb[16].mxu1 }
 0x50b   : > { %v1521_v50 = vcombine.low %v1407_v43, %v1499_v49  ;;  %v1522_v16 = vcombine.high %v1407_v43, %v1499_v49  ;;  %v1984_v52 = vpop.f32.mrb[17].mxu1 }
 0x50c   : > { %v1453_v53 = vpop.f32.mrb[16].mxu0  ;;  %v1502_v54 = vpop.f32.mrb[18].mxu1 }
 0x50d   : > { %v1505_v55 = vcombine.low %v1361_v42, %v1453_v53  ;;  %v1506_v56 = vcombine.high %v1361_v42, %v1453_v53  ;;  %v1978_v57 = vpop.f32.mrb[17].mxu0  ;;  %v1985_v58 = vpop.f32.mrb[19].mxu1  ;;  %v1529_v60 = vrot.slane %v1521_v50, %v2206_v28  ;;  %v1536_v61 = vrot.slane %v1522_v16, %v2206_v28 }
 0x50e   : > { %v1456_v59 = vpop.f32.mrb[18].mxu0 }
 0x50f   : > { %v1513_v62 = vrot.slane %v1505_v55, %v2206_v28  ;;  %v1520_v63 = vrot.slane %v1506_v56, %v2206_v28  ;;  %v1979_v0 = vpop.f32.mrb[19].mxu0 }
 0x511   : > { %v1537_v1 = vcombine.low %v1513_v62, %v1529_v60  ;;  %v1538_v4 = vcombine.high %v1513_v62, %v1529_v60  ;;  %v1553_v5 = vcombine.low %v1520_v63, %v1536_v61  ;;  %v1554_v25 = vcombine.high %v1520_v63, %v1536_v61  ;;  %v1892_v60 = vld [vmem:[%s2430_s6] ss:$0 sm:$0xff] }
 0x512   : > { %v1893_v62 = vld [vmem:[%s2431_s7] ss:$0 sm:$0xff] }
 0x513   : > { %v1545_v8 = vrot.slane %v1537_v1, %v2216_v35  ;;  %v1552_v9 = vrot.slane %v1538_v4, %v2216_v35  ;;  %v1561_v11 = vrot.slane %v1553_v5, %v2216_v35  ;;  %v1568_v12 = vrot.slane %v1554_v25, %v2216_v35 }
 0x515   : > { %v1573_v13 = vcombine.low %v1545_v8, %v1552_v9  ;;  %v1886_v14 = vcombine.high %v1545_v8, %v1552_v9  ;;  %v1589_v17 = vcombine.low %v1561_v11, %v1568_v12  ;;  %v1887_v31 = vcombine.high %v1561_v11, %v1568_v12 }
 0x517   : > { %v1580_v18 = vrot.slane %v1573_v13, %v2206_v28  ;;  %v1588_v19 = vrot.slane %v1886_v14, %v2206_v28  ;;  %v1596_v20 = vrot.slane %v1589_v17, %v2206_v28  ;;  %v1604_v21 = vrot.slane %v1887_v31, %v2206_v28 }
 0x519   : > { %v1606_v22 = vcombine.high %v1580_v18, %v1588_v19  ;;  %v1622_v23 = vcombine.high %v1596_v20, %v1604_v21  ;;  %v1605_v10 = vcombine.low %v1580_v18, %v1588_v19  ;;  %v1621_v26 = vcombine.low %v1596_v20, %v1604_v21 }
 0x51b   : > { %v1620_v27 = vrot.slane %v1606_v22, %v2216_v35  ;;  %v1636_v2 = vrot.slane %v1622_v23, %v2216_v35  ;;  %v1613_v29 = vrot.slane %v1605_v10, %v2216_v35  ;;  %v1629_v30 = vrot.slane %v1621_v26, %v2216_v35 }
 0x51d   : > { %v1639_v32 = vcombine.low %v1620_v27, %v1636_v2  ;;  %v1638_v6 = vcombine.high %v1613_v29, %v1629_v30  ;;  %v1640_v7 = vcombine.high %v1620_v27, %v1636_v2  ;;  %v1637_v33 = vcombine.low %v1613_v29, %v1629_v30 }
 0x51f   : > { %1646 = vrot.lane.b32.xlu1 %v1639_v32, %s2087_s15  ;;  %1642 = vrot.lane.b32.xlu0 %v1638_v6, %s2088_s16 }
 0x523   : > { %1650 = vrot.lane.b32.xlu1 %v1640_v7, %s2089_s17 }
 0x591   : > { %v1647_v28 = vpop.permute.xlu1 %1646  ;;  %v1643_v34 = vpop.permute.xlu0 %1642 }
 0x592   : > { %v1653_v36 = vsel %vm1066_vm2, %v1637_v33, %v1643_v34 }
 0x593   : > { %v1655_v38 = vsel %vm1654_vm7, %v1653_v36, %v1647_v28 }
 0x595   : > { %v1651_v37 = vpop.permute.xlu1 %1650 }
 0x596   : > { %v1657_v39 = vsel %vm1656_vm8, %v1655_v38, %v1651_v37 }
 0x597   : > { %v1658_v35 = vpack.c.bf16 %v1657_v39, %v1657_v39 }
 0x599   : > { %1991 = vmatmul.mubr.msk.bf16.vlgmr.msra.gmra.mrb[20].mxu0 %vm387_vm1, %v1658_v35 }
 0x66c   : > { %v1719_v24 = vpop.f32.mrb[20].mxu0 }
 0x66d   : > { %v1720_v42 = vadd.f32 %v1888_v41, %v1719_v24  ;;  %v1992_v43 = vpop.f32.mrb[21].mxu0 }
 0x66e   : > { %v1722_v44 = vpop.f32.mrb[22].mxu0 }
 0x66f   : > { %v1993_v45 = vpop.f32.mrb[23].mxu0  ;;  %v1725_v46 = vadd.f32 %v1720_v42, %v2176_v3 }
 0x671   : > { %v1726_v47 = vsel %vm387_vm1, %v1725_v46, 0.0 }
 0x672   : > { %1727 = vadd.xlane.f32.xlu0 %v1726_v47 }
 0x6ff   : > { %v1728_v48 = vpop.xlane.xlu0 %1727 }
 0x700   : > { %v1730_v15 = vmul.f32 0.03125, %v1728_v48 }
 0x702   : > { %v1731_v49 = vsub.f32 %v1725_v46, %v1730_v15 }
 0x704   : > { %v1732_v50 = vmul.f32 %v1731_v49, %v1731_v49 }
 0x706   : > { %v1733_v16 = vsel %vm387_vm1, %v1732_v50, 0.0 }
 0x707   : > { %1734 = vadd.xlane.f32.xlu1 %v1733_v16 }
 0x794   : > { %v1735_v52 = vpop.xlane.xlu1 %1734 }
 0x795   : > { %v1736_v53 = vmul.f32 0.032258064, %v1735_v52 }
 0x797   : > { %2050 = vrsqrt.f32 %v1736_v53  ;;  %vm1739_vm9 = vcmp.eq.f32.partialorder %v1736_v53, inf  ;;  %v1742_v56 = vand.u32 2147483648, %v1736_v53  ;;  %vm1741_vm10 = vcmp.eq.f32.partialorder %v1736_v53, 0.0 }
 0x7a1   : > { %v2051_v54 = vpop.eup %2050 }
 0x7a2   : > { %v1738_v55 = vmul.f32 %v2051_v54, %v1736_v53 }
 0x7a4   : > { %v1740_v57 = vsel %vm1739_vm9, %v1736_v53, %v1738_v55 }
 0x7a5   : > { %v1743_v3 = vsel %vm1741_vm10, %v1742_v56, %v1740_v57 }
 0x7a6   : > { %v1744_v58 = vadd.f32 0.001, %v1743_v3 }
 0x7a8   : > { %2052 = vrcp.f32 %v1744_v58 }
 0x7b2   : > { %v2053_v59 = vpop.eup %2052 }
 0x7b3   : > { %v1746_v61 = vmul.f32 %v2053_v59, %v1731_v49 }
 0x7b5   : > { %v1754_v63 = vmul.f32 %v1892_v60, %v1746_v61 }
 0x7b7   : > { %v1762_v0 = vadd.f32 %v1893_v62, %v1754_v63 }
 0x7b9   : > { %1763 = vst.msk [vmem:[%s365_s26] sm:$0xff] %vm387_vm1, %v1762_v0 }
 0x7ba PF: > { %s18_s29 = sadd.s32 1, %s2076_s29   ;;  %s2433_s27 = smov %s2072_s28 }
 0x7bb   : > { %p15_p5 = scmp.ge.s32.totalorder %s18_s29, 4   ;;  %s2434_s28 = smov %s2436_s30 }
 0x7bd   :  { %17 = sbr.rel (!%p15_p5) target bundleno = 2 (0x2), region = 88 }

// kernel: transformer_forward.17
= control target key start
LH: loop header
LB: loop body
LE: loop exit
PB: predicated region body
PF: predicated region fallthrough
CT: control target
= control target key end

     0   :  { %v308_v0 = vmov 0.0   ;;  %vm309_vm0 = vmmov 0   ;;  %vm53_vm1 = vcmask 261120   ;;  %vm140_vm2 = vcmask 523264   ;;  %s399_s1 = inlined_call_operand.vmem [shape: bf16[32,64], index: 1, kind: input, shape index: {}]   ;;  %s400_s0 = inlined_call_operand.vmem [shape: f32[16,32], index: 0, kind: input, shape index: {}]   ;;  %s401_s3 = inlined_call_operand.vmem [shape: bf16[64,32], index: 3, kind: input, shape index: {}]   ;;  %s402_s2 = inlined_call_operand.vmem [shape: f32[1,64], index: 2, kind: input, shape index: {}]   ;;  %s403_s4 = inlined_call_operand.vmem [shape: f32[1,32], index: 4, kind: input, shape index: {}]   ;;  %s404_s5 = inlined_call_operand.vmem [shape: f32[1,32], index: 5, kind: input, shape index: {}]   ;;  %s405_s6 = inlined_call_operand.vmem [shape: f32[1,32], index: 6, kind: input, shape index: {}]   ;;  %s406_s7 = inlined_call_operand.vmem [shape: f32[16,32], index: 7, kind: output, shape index: {}]  }
   0x1   :  { %272 = vmatprep.subr.bf16.mxu0 %v308_v0  ;;  %v294_v1 = vld [vmem:[%s399_s1] sm:$0xff]   ;;  %276 = vmatprep.mubr.msk.bf16.mxu0 %vm309_vm0, %v308_v0  ;;  %v295_v2 = vld [vmem:[%s399_s1 + $0x8] sm:$0xff]   ;;  %v298_v8 = vld [vmem:[%s401_s3 + $0x10] sm:$0xff]  }
   0x2   :  { %280 = vmatprep.subr.bf16.mxu1 %v308_v0  ;;  %288 = vmatprep.mubr.msk.bf16.mxu1 %vm309_vm0, %v308_v0  ;;  %v27_v3 = vld [vmem:[%s400_s0] sm:$0xff]  ;;  %v28_v4 = vld [vmem:[%s400_s0 + $0x8] sm:$0xff]  ;;  %v299_v9 = vld [vmem:[%s401_s3 + $0x18] sm:$0xff]  }
   0x3   :  { %273 = vmatpush3.bf16.msra.mxu0 %v294_v1  ;;  %v296_v5 = vld [vmem:[%s401_s3] sm:$0xff]   ;;  %v297_v6 = vld [vmem:[%s401_s3 + $0x8] sm:$0xff]   ;;  %v29_v7 = vpack.c.bf16 %v28_v4, %v27_v3 }
   0x4   :  { %274 = vmatprep.subr.bf16.mxu0 %v308_v0  ;;  %281 = vmatpush3.bf16.msra.mxu1 %v296_v5  ;;  %v252_v10 = vld [vmem:[%s402_s2] ss:$0 sm:$0xff] }
   0x5   :  { %282 = vmatprep.subr.bf16.mxu1 %v308_v0  ;;  %v256_v20 = vld [vmem:[%s403_s4] ss:$0 sm:$0xff] }
   0x6   :  { %v262_v58 = vld [vmem:[%s404_s5] ss:$0 sm:$0xff] }
   0x7   :  { %275 = vmatpush3.bf16.msra.mxu0 %v295_v2  ;;  %v263_v60 = vld [vmem:[%s405_s6] ss:$0 sm:$0xff] }
   0x8   :  { %283 = vmatpush3.bf16.msra.mxu1 %v297_v6 }
   0x9   :  { %284 = vmatprep.subr.bf16.mxu1 %v308_v0 }
   0xa   :  { %277 = vmatmul.mubr.msk.bf16.vlgmr.msra.gmra.mrb[0].mxu0 %vm53_vm1, %v29_v7 }
   0xc   :  { %285 = vmatpush3.bf16.msra.mxu1 %v298_v8 }
   0xd   :  { %286 = vmatprep.subr.bf16.mxu1 %v308_v0 }
  0x10   :  { %287 = vmatpush3.bf16.msra.mxu1 %v299_v9 }
  0xdd   :  { %v91_v11 = vpop.f32.mrb[0].mxu0 }
  0xde   :  { %v92_v12 = vadd.f32 %v252_v10, %v91_v11  ;;  %v278_v13 = vpop.f32.mrb[1].mxu0 }
  0xdf   :  { %v94_v14 = vpop.f32.mrb[2].mxu0 }
  0xe0   :  { %v95_v15 = vadd.f32 %v252_v10, %v94_v14  ;;  %v279_v16 = vpop.f32.mrb[3].mxu0  ;;  %v98_v17 = vmax.f32 %v92_v12, 0.0 }
  0xe2   :  { %v99_v18 = vmax.f32 %v95_v15, 0.0 }
  0xe4   :  { %v100_v19 = vpack.c.bf16 %v99_v18, %v98_v17 }
  0xe6   :  { %289 = vmatmul.mubr.msk.bf16.vlgmr.msra.gmra.mrb[0].mxu1 %vm140_vm2, %v100_v19 }
 0x1b9   :  { %v178_v21 = vpop.f32.mrb[0].mxu1 }
 0x1ba   :  { %v179_v22 = vadd.f32 %v256_v20, %v178_v21  ;;  %v290_v23 = vpop.f32.mrb[1].mxu1 }
 0x1bb   :  { %v181_v24 = vpop.f32.mrb[2].mxu1 }
 0x1bc   :  { %v182_v25 = vadd.f32 %v256_v20, %v181_v24  ;;  %v291_v26 = vpop.f32.mrb[3].mxu1  ;;  %v185_v27 = vadd.f32 %v179_v22, %v27_v3 }
 0x1be   :  { %v187_v28 = vsel %vm53_vm1, %v185_v27, 0.0  ;;  %v186_v29 = vadd.f32 %v182_v25, %v28_v4 }
 0x1bf   :  { %188 = vadd.xlane.f32.xlu0 %v187_v28 }
 0x1c0   :  { %v190_v30 = vsel %vm53_vm1, %v186_v29, 0.0 }
 0x1c3   :  { %191 = vadd.xlane.f32.xlu0 %v190_v30 }
 0x24c   :  { %v189_v31 = vpop.xlane.xlu0 %188 }
 0x24d   :  { %v194_v32 = vmul.f32 0.03125, %v189_v31 }
 0x24f   :  { %v196_v33 = vsub.f32 %v185_v27, %v194_v32 }
 0x250   :  { %v192_v34 = vpop.xlane.xlu0 %191 }
 0x251   :  { %v195_v35 = vmul.f32 0.03125, %v192_v34  ;;  %v198_v36 = vmul.f32 %v196_v33, %v196_v33 }
 0x253   :  { %v197_v37 = vsub.f32 %v186_v29, %v195_v35  ;;  %v200_v38 = vsel %vm53_vm1, %v198_v36, 0.0 }
 0x254   :  { %201 = vadd.xlane.f32.xlu1 %v200_v38 }
 0x255   :  { %v199_v39 = vmul.f32 %v197_v37, %v197_v37 }
 0x257   :  { %v203_v40 = vsel %vm53_vm1, %v199_v39, 0.0 }
 0x258   :  { %204 = vadd.xlane.f32.xlu1 %v203_v40 }
 0x2e1   :  { %v202_v41 = vpop.xlane.xlu1 %201 }
 0x2e2   :  { %v206_v42 = vmul.f32 0.032258064, %v202_v41 }
 0x2e4   :  { %300 = vrsqrt.f32 %v206_v42  ;;  %vm210_vm3 = vcmp.eq.f32.partialorder %v206_v42, inf  ;;  %v213_v47 = vand.u32 2147483648, %v206_v42  ;;  %vm212_vm4 = vcmp.eq.f32.partialorder %v206_v42, 0.0 }
 0x2e5   :  { %v205_v43 = vpop.xlane.xlu1 %204 }
 0x2e6   :  { %v207_v44 = vmul.f32 0.032258064, %v205_v43 }
 0x2e8   :  { %302 = vrsqrt.f32 %v207_v44  ;;  %vm217_vm5 = vcmp.eq.f32.partialorder %v207_v44, inf  ;;  %v220_v53 = vand.u32 2147483648, %v207_v44  ;;  %vm219_vm6 = vcmp.eq.f32.partialorder %v207_v44, 0.0 }
 0x2ee   :  { %v301_v45 = vpop.eup %300 }
 0x2ef   :  { %v209_v46 = vmul.f32 %v301_v45, %v206_v42 }
 0x2f1   :  { %v211_v48 = vsel %vm210_vm3, %v206_v42, %v209_v46 }
 0x2f2   :  { %v303_v49 = vpop.eup %302  ;;  %v214_v50 = vsel %vm212_vm4, %v213_v47, %v211_v48 }
 0x2f3   :  { %v222_v51 = vadd.f32 0.001, %v214_v50  ;;  %v216_v52 = vmul.f32 %v303_v49, %v207_v44 }
 0x2f5   :  { %304 = vrcp.f32 %v222_v51  ;;  %v218_v54 = vsel %vm217_vm5, %v207_v44, %v216_v52 }
 0x2f6   :  { %v221_v55 = vsel %vm219_vm6, %v220_v53, %v218_v54 }
 0x2f7   :  { %v223_v56 = vadd.f32 0.001, %v221_v55 }
 0x2f9   :  { %306 = vrcp.f32 %v223_v56 }
 0x2ff   :  { %v305_v57 = vpop.eup %304 }
 0x300   :  { %v226_v59 = vmul.f32 %v305_v57, %v196_v33 }
 0x302   :  { %v235_v61 = vmul.f32 %v262_v58, %v226_v59 }
 0x303   :  { %v307_v62 = vpop.eup %306 }
 0x304   :  { %v244_v63 = vadd.f32 %v263_v60, %v235_v61  ;;  %v227_v0 = vmul.f32 %v307_v62, %v197_v37 }
 0x306   :  { %246 = vst.msk [vmem:[%s406_s7] sm:$0xff] %vm53_vm1, %v244_v63  ;;  %v236_v1 = vmul.f32 %v262_v58, %v227_v0 }
 0x308   :  { %v245_v2 = vadd.f32 %v263_v60, %v236_v1 }
 0x30a   :  { %247 = vst.msk [vmem:[%s406_s7 + $0x8] sm:$0xff] %vm53_vm1, %v245_v2 }

// kernel: transformer_forward.21
= control target key start
LH: loop header
LB: loop body
LE: loop exit
PB: predicated region body
PF: predicated region fallthrough
CT: control target
= control target key end

     0   :  { %vm71_vm0 = vcmask 261120   ;;  %v194_v0 = vmov 0.0   ;;  %vm195_vm1 = vmmov 0   ;;  %s256_s1 = inlined_call_operand.vmem [shape: bf16[128,32], index: 1, kind: input, shape index: {}]   ;;  %s257_s0 = inlined_call_operand.vmem [shape: f32[16,32], index: 0, kind: input, shape index: {}]   ;;  %s258_s2 = inlined_call_operand.vmem [shape: f32[16,128], index: 2, kind: output, shape index: {}]  }
   0x1   :  { %164 = vmatprep.subr.bf16.mxu0 %v194_v0  ;;  %v186_v1 = vld [vmem:[%s256_s1] sm:$0xff]   ;;  %180 = vmatprep.mubr.msk.bf16.mxu0 %vm195_vm1, %v194_v0  ;;  %v187_v3 = vld [vmem:[%s256_s1 + $0x8] sm:$0xff]   ;;  %v188_v5 = vld [vmem:[%s256_s1 + $0x10] sm:$0xff]  }
   0x2   :  { %v76_v2 = vsel %vm71_vm0, %v186_v1, 0  ;;  %v79_v4 = vsel %vm71_vm0, %v187_v3, 0  ;;  %v82_v6 = vsel %vm71_vm0, %v188_v5, 0  ;;  %v189_v7 = vld [vmem:[%s256_s1 + $0x18] sm:$0xff]   ;;  %v190_v9 = vld [vmem:[%s256_s1 + $0x20] sm:$0xff]   ;;  %v191_v11 = vld [vmem:[%s256_s1 + $0x28] sm:$0xff]  }
   0x3   :  { %165 = vmatpush3.bf16.xpose.msra.mxu0 %v76_v2  ;;  %v85_v8 = vsel %vm71_vm0, %v189_v7, 0  ;;  %v88_v10 = vsel %vm71_vm0, %v190_v9, 0  ;;  %v91_v12 = vsel %vm71_vm0, %v191_v11, 0  ;;  %v192_v13 = vld [vmem:[%s256_s1 + $0x30] sm:$0xff]   ;;  %v193_v15 = vld [vmem:[%s256_s1 + $0x38] sm:$0xff]   ;;  %v12_v17 = vld [vmem:[%s257_s0] sm:$0xff] }
   0x4   :  { %166 = vmatprep.subr.bf16.mxu0 %v194_v0  ;;  %v94_v14 = vsel %vm71_vm0, %v192_v13, 0  ;;  %v97_v16 = vsel %vm71_vm0, %v193_v15, 0  ;;  %v13_v18 = vld [vmem:[%s257_s0 + $0x8] sm:$0xff] }
   0x5   :  { %v14_v19 = vpack.c.bf16 %v13_v18, %v12_v17 }
   0xb   :  { %167 = vmatpush3.bf16.xpose.msra.mxu0 %v79_v4 }
   0xc   :  { %168 = vmatprep.subr.bf16.mxu0 %v194_v0 }
  0x13   :  { %169 = vmatpush3.bf16.xpose.msra.mxu0 %v82_v6 }
  0x14   :  { %170 = vmatprep.subr.bf16.mxu0 %v194_v0 }
  0x1b   :  { %171 = vmatpush3.bf16.xpose.msra.mxu0 %v85_v8 }
  0x1c   :  { %172 = vmatprep.subr.bf16.mxu0 %v194_v0 }
  0x23   :  { %173 = vmatpush3.bf16.xpose.msra.mxu0 %v88_v10 }
  0x24   :  { %174 = vmatprep.subr.bf16.mxu0 %v194_v0 }
  0x2b   :  { %175 = vmatpush3.bf16.xpose.msra.mxu0 %v91_v12 }
  0x2c   :  { %176 = vmatprep.subr.bf16.mxu0 %v194_v0 }
  0x33   :  { %177 = vmatpush3.bf16.xpose.msra.mxu0 %v94_v14 }
  0x34   :  { %178 = vmatprep.subr.bf16.mxu0 %v194_v0 }
  0x3b   :  { %179 = vmatpush3.bf16.xpose.msra.mxu0 %v97_v16 }
  0x42   :  { %181 = vmatmul.mubr.msk.bf16.vlgmr.msra.gmra.mrb[0].mxu0 %vm71_vm0, %v14_v19 }
 0x115   :  { %v133_v20 = vpop.f32.mrb[0].mxu0 }
 0x116   :  { %140 = vst [vmem:[%s258_s2] sm:$0xff] %v133_v20  ;;  %v182_v21 = vpop.f32.mrb[1].mxu0 }
 0x117   :  { %v136_v22 = vpop.f32.mrb[2].mxu0 }
 0x118   :  { %141 = vst [vmem:[%s258_s2 + $0x8] sm:$0xff] %v136_v22  ;;  %v183_v23 = vpop.f32.mrb[3].mxu0 }

</bundles_post_ra>
